<compile_context>
chip_gen: v5e
topology: v5e:2x2
jax: 0.10.0
libtpu: 0.0.40
codegen_flags: <defaults>
</compile_context>

<pallas_src>
import functools

import numpy as np
import jax
import jax.numpy as jnp
from jax.experimental import pallas as pl
from jax.experimental.pallas import tpu as pltpu

LANE = 128  # TPU lane width; dense output is padded to this for unmasked vst


# -----------------------------------------------------------------------------
# Fused forward kernel
# -----------------------------------------------------------------------------
def _conv_relu_pool_block(pad_ref, im_ref, act, w_ref, b_ref, *, N, H, W, Cin, Cout):
    """One Conv3x3(pad=1) + bias + ReLU + MaxPool2x2 block.

    act:     (N, H, W, Cin) f32 value (vregs/VMEM only, never HBM).
    pad_ref: (N, H+2, W+2, Cin) f32 VMEM scratch (zero halo + interior copy).
    im_ref:  (N*H*W, 9*Cin) bf16 VMEM scratch -- im2col matrix written in place.
    w_ref:   (9*Cin, Cout) bf16 im2col weights, rows ordered (kh, kw, ci).
    b_ref:   (1, Cout) f32 bias.
    returns: (N, H//2, W//2, Cout) f32 pooled activation value.
    """
    Ho, Wo = H // 2, W // 2

    # Zero only the 1-pixel halo (not the whole buffer), then copy the interior once.
    zrow = jnp.zeros((N, 1, W + 2, Cin), jnp.float32)
    zcol = jnp.zeros((N, H, 1, Cin), jnp.float32)
    pad_ref[:, 0:1, :, :] = zrow
    pad_ref[:, H + 1:H + 2, :, :] = zrow
    pad_ref[:, 1:H + 1, 0:1, :] = zcol
    pad_ref[:, 1:H + 1, W + 1:W + 2, :] = zcol
    pad_ref[:, 1:H + 1, 1:W + 1, :] = act

    # im2col: nine shifted windows written straight into VMEM scratch (no concatenate).
    # Cast to bf16 here so the matmul runs on the native MXU path (f32 accumulation below).
    for kh in range(3):
        for kw in range(3):
            k = 3 * kh + kw
            win = pad_ref[:, kh:kh + H, kw:kw + W, :].reshape(N * H * W, Cin)
            im_ref[:, k * Cin:(k + 1) * Cin] = win.astype(jnp.bfloat16)

    # ONE MXU matmul per conv layer: (N*H*W, 9*Cin) @ (9*Cin, Cout).
    y = jnp.dot(im_ref[...], w_ref[...], preferred_element_type=jnp.float32)
    y = jnp.maximum(y + b_ref[...], 0.0)      # bias + ReLU (f32 elementwise, v5e-safe)
    # nn.Dropout(p=0) is the identity -> nothing to do.

    # Vectorized 2x2 / stride-2 max pool (no per-pixel masked stores).
    y = y.reshape(N, Ho, 2, Wo, 2, Cout)
    return jnp.maximum(jnp.maximum(y[:, :, 0, :, 0, :], y[:, :, 1, :, 0, :]),
                       jnp.maximum(y[:, :, 0, :, 1, :], y[:, :, 1, :, 1, :]))


def convnet_kernel(x_ref, w1_ref, b1_ref, w2_ref, b2_ref, w3_ref, b3_ref,
                   wd_ref, bd_ref, o_ref,
                   p1_ref, im1_ref, p2_ref, im2_ref, p3_ref, im3_ref,
                   *, N, H, W, channels):
    C0, C1, C2, C3 = channels

    a = _conv_relu_pool_block(p1_ref, im1_ref, x_ref[...], w1_ref, b1_ref,
                              N=N, H=H, W=W, Cin=C0, Cout=C1)
    a = _conv_relu_pool_block(p2_ref, im2_ref, a, w2_ref, b2_ref,
                              N=N, H=H // 2, W=W // 2, Cin=C1, Cout=C2)
    a = _conv_relu_pool_block(p3_ref, im3_ref, a, w3_ref, b3_ref,
                              N=N, H=H // 4, W=W // 4, Cin=C2, Cout=C3)

    # Final fmap is (N, 1, 1, 512) -> torch's out.view(-1, 512).
    feat = a.reshape(N, C3).astype(jnp.bfloat16)
    o_ref[...] = (jnp.dot(feat, wd_ref[...], preferred_element_type=jnp.float32)
                  + bd_ref[...]).astype(o_ref.dtype)


# -----------------------------------------------------------------------------
# One-time parameter preparation (NOT per forward call)
# -----------------------------------------------------------------------------
def prepare_params(params):
    prep = {"conv": []}
    for (w, b) in params["conv"]:
        cout, cin = w.shape[0], w.shape[1]
        # OIHW -> (kh, kw, ci, co) -> (9*Cin, Cout), row order (kh, kw, ci) to match im2col.
        wk = jnp.transpose(w, (2, 3, 1, 0)).reshape(9 * cin, cout).astype(jnp.bfloat16)
        prep["conv"].append((wk, b.reshape(1, cout).astype(jnp.float32)))
    wd = params["dense_w"].T                                          # (Din, num_classes)
    nc = wd.shape[1]
    assert nc <= LANE, "lane-dense output padding assumes num_classes <= 128"
    prep["dense_w"] = jnp.pad(wd, ((0, 0), (0, LANE - nc))).astype(jnp.bfloat16)   # (Din, 128)
    prep["dense_b"] = jnp.pad(params["dense_b"].reshape(1, -1),
                              ((0, 0), (0, LANE - nc))).astype(jnp.float32)        # (1, 128)
    return prep


# -----------------------------------------------------------------------------
# Forward pass wrapper: single fused pallas_call, everything resident in VMEM
# -----------------------------------------------------------------------------
def convnet_forward(x_nchw, prep, *, num_classes):
    x = jnp.transpose(x_nchw, (0, 2, 3, 1)).astype(jnp.float32)   # NCHW -> NHWC boundary glue
    N, H, W, C0 = x.shape
    (w1, b1), (w2, b2), (w3, b3) = prep["conv"]
    C1, C2, C3 = w1.shape[1], w2.shape[1], w3.shape[1]

    assert H % 8 == 0 and W % 8 == 0, "three 2x2 pools require spatial dims divisible by 8"
    assert (H // 8) * (W // 8) == 1 and C3 == 512, "out.view(-1, 512) needs a final 1x1x512 fmap"
    assert num_classes <= LANE

    H2, W2, H4, W4 = H // 2, W // 2, H // 4, W // 4
    kern = functools.partial(convnet_kernel, N=N, H=H, W=W, channels=(C0, C1, C2, C3))
    vmem = pltpu.MemorySpace.VMEM
    out = pl.pallas_call(
        kern,
        out_shape=jax.ShapeDtypeStruct((N, LANE), jnp.float32),       # lane-dense (128) output
        in_specs=[pl.BlockSpec(memory_space=vmem)] * 9,
        out_specs=pl.BlockSpec(memory_space=vmem),
        scratch_shapes=[
            pltpu.VMEM((N, H + 2, W + 2, C0), jnp.float32),           # padded layer-1 input
            pltpu.VMEM((N * H * W, 9 * C0), jnp.bfloat16),            # layer-1 im2col
            pltpu.VMEM((N, H2 + 2, W2 + 2, C1), jnp.float32),         # padded layer-2 input
            pltpu.VMEM((N * H2 * W2, 9 * C1), jnp.bfloat16),          # layer-2 im2col
            pltpu.VMEM((N, H4 + 2, W4 + 2, C2), jnp.float32),         # padded layer-3 input
            pltpu.VMEM((N * H4 * W4, 9 * C2), jnp.bfloat16),          # layer-3 im2col
        ],
        compiler_params=pltpu.CompilerParams(vmem_limit_bytes=32 * 1024 * 1024),
    )(x, w1, b1, w2, b2, w3, b3, prep["dense_w"], prep["dense_b"])
    return out[:, :num_classes]


# -----------------------------------------------------------------------------
# Deterministic parameter init (shapes match the nn.Module; synthetic values)
# -----------------------------------------------------------------------------
def init_params(key, input_size, hidden_layers, num_classes):
    params = {"conv": []}
    cin = input_size
    for cout in hidden_layers:
        key, k1, k2 = jax.random.split(key, 3)
        fan_in = cin * 9
        w = jax.random.normal(k1, (cout, cin, 3, 3), jnp.float32) / np.sqrt(fan_in)
        b = jax.random.normal(k2, (cout,), jnp.float32) * 0.1
        params["conv"].append((w, b))
        cin = cout
    key, k1, k2 = jax.random.split(key, 3)
    params["dense_w"] = jax.random.normal(k1, (num_classes, cin), jnp.float32) / np.sqrt(cin)
    params["dense_b"] = jax.random.normal(k2, (num_classes,), jnp.float32) * 0.1
    return params


# -----------------------------------------------------------------------------
# Pure-JAX references (f32 HIGHEST, and bf16-operand / f32-accumulate matched precision)
# -----------------------------------------------------------------------------
def reference_forward(x_nchw, params, operand_dtype=jnp.float32):
    prec = (jax.lax.Precision.HIGHEST if operand_dtype == jnp.float32
            else jax.lax.Precision.DEFAULT)
    x = jnp.transpose(x_nchw, (0, 2, 3, 1)).astype(jnp.float32)
    for (w, b) in params["conv"]:
        wk = jnp.transpose(w, (2, 3, 1, 0))  # OIHW -> HWIO
        y = jax.lax.conv_general_dilated(
            x.astype(operand_dtype), wk.astype(operand_dtype),
            window_strides=(1, 1), padding=((1, 1), (1, 1)),
            dimension_numbers=("NHWC", "HWIO", "NHWC"),
            preferred_element_type=jnp.float32, precision=prec)
        y = jnp.maximum(y + b.reshape(1, 1, 1, -1), 0.0)
        x = jax.lax.reduce_window(y, -jnp.inf, jax.lax.max,
                                  (1, 2, 2, 1), (1, 2, 2, 1), "VALID")
    out = x.reshape(-1, 512)
    return (jnp.dot(out.astype(operand_dtype), params["dense_w"].T.astype(operand_dtype),
                    preferred_element_type=jnp.float32, precision=prec)
            + params["dense_b"])


if __name__ == "__main__":
    input_size = 3
    hidden_layers = [16, 32, 512]   # 8x8 -> pool x3 -> 1x1x512, so view(-1, 512) holds
    num_classes = 10
    N, Himg, Wimg = 2, 8, 8

    key = jax.random.PRNGKey(0)
    key, kx = jax.random.split(key)
    x = jax.random.normal(kx, (N, input_size, Himg, Wimg), jnp.float32)
    params = init_params(key, input_size, hidden_layers, num_classes)
    prep = prepare_params(params)   # one-time weight layout/dtype prep (bf16, im2col, padded dense)

    fwd = jax.jit(functools.partial(convnet_forward, num_classes=num_classes))
    out = jax.block_until_ready(fwd(x, prep))
    assert out.shape == (N, num_classes)

    # Tight check vs a matched-precision reference (bf16 operands, f32 accumulation).
    ref_bf16 = reference_forward(x, params, operand_dtype=jnp.bfloat16)
    np.testing.assert_allclose(np.asarray(out), np.asarray(ref_bf16), rtol=2e-3, atol=2e-3)

    # Sanity check vs the full-f32 HIGHEST reference; tolerance sized for bf16 MXU operands.
    ref_f32 = reference_forward(x, params, operand_dtype=jnp.float32)
    np.testing.assert_allclose(np.asarray(out), np.asarray(ref_f32), rtol=2e-2, atol=5e-2)

    print("KERNEL_OK")
</pallas_src>

<mosaic_0001>
module attributes {stable_mosaic.version = 11 : i64} {
  func.func @convnet_kernel(%arg0: memref<2x8x8x3xf32, #tpu.memory_space<vmem>>, %arg1: memref<27x16xbf16, #tpu.memory_space<vmem>>, %arg2: memref<1x16xf32, #tpu.memory_space<vmem>>, %arg3: memref<144x32xbf16, #tpu.memory_space<vmem>>, %arg4: memref<1x32xf32, #tpu.memory_space<vmem>>, %arg5: memref<288x512xbf16, #tpu.memory_space<vmem>>, %arg6: memref<1x512xf32, #tpu.memory_space<vmem>>, %arg7: memref<512x128xbf16, #tpu.memory_space<vmem>>, %arg8: memref<1x128xf32, #tpu.memory_space<vmem>>, %arg9: memref<2x128xf32, #tpu.memory_space<vmem>>, %arg10: memref<2x10x10x3xf32, #tpu.memory_space<vmem>>, %arg11: memref<128x27xbf16, #tpu.memory_space<vmem>>, %arg12: memref<2x6x6x16xf32, #tpu.memory_space<vmem>>, %arg13: memref<32x144xbf16, #tpu.memory_space<vmem>>, %arg14: memref<2x4x4x32xf32, #tpu.memory_space<vmem>>, %arg15: memref<8x288xbf16, #tpu.memory_space<vmem>>) attributes {dimension_semantics = [], scalar_prefetch = 0 : i64, scratch_operands = 6 : i64, tpu.core_type = #tpu.core_type<tc>} {
    %c0 = arith.constant 0 : index
    %c0_0 = arith.constant 0 : index
    %c0_1 = arith.constant 0 : index
    %c0_2 = arith.constant 0 : index
    %0 = vector.load %arg0[%c0, %c0_0, %c0_1, %c0_2] : memref<2x8x8x3xf32, #tpu.memory_space<vmem>>, vector<2x8x8x3xf32>
    %cst = arith.constant 0.000000e+00 : f32
    %1 = vector.broadcast %cst : f32 to vector<2x1x10x3xf32>
    %cst_3 = arith.constant 0.000000e+00 : f32
    %2 = vector.broadcast %cst_3 : f32 to vector<2x8x1x3xf32>
    %c0_4 = arith.constant 0 : index
    %c0_5 = arith.constant 0 : index
    %c0_6 = arith.constant 0 : index
    %c0_7 = arith.constant 0 : index
    %3 = vector.load %arg10[%c0_4, %c0_5, %c0_6, %c0_7] : memref<2x10x10x3xf32, #tpu.memory_space<vmem>>, vector<2x1x10x3xf32>
    tpu.vector_store %arg10[%c0_4, %c0_5, %c0_6, %c0_7], %1 {strides = array<i32>} : memref<2x10x10x3xf32, #tpu.memory_space<vmem>>, vector<2x1x10x3xf32>,
    %c0_8 = arith.constant 0 : index
    %c9 = arith.constant 9 : index
    %c0_9 = arith.constant 0 : index
    %c0_10 = arith.constant 0 : index
    %4 = vector.load %arg10[%c0_8, %c9, %c0_9, %c0_10] : memref<2x10x10x3xf32, #tpu.memory_space<vmem>>, vector<2x1x10x3xf32>
    tpu.vector_store %arg10[%c0_8, %c9, %c0_9, %c0_10], %1 {strides = array<i32>} : memref<2x10x10x3xf32, #tpu.memory_space<vmem>>, vector<2x1x10x3xf32>,
    %c0_11 = arith.constant 0 : index
    %c1 = arith.constant 1 : index
    %c0_12 = arith.constant 0 : index
    %c0_13 = arith.constant 0 : index
    %5 = vector.load %arg10[%c0_11, %c1, %c0_12, %c0_13] : memref<2x10x10x3xf32, #tpu.memory_space<vmem>>, vector<2x8x1x3xf32>
    tpu.vector_store %arg10[%c0_11, %c1, %c0_12, %c0_13], %2 {strides = array<i32>} : memref<2x10x10x3xf32, #tpu.memory_space<vmem>>, vector<2x8x1x3xf32>,
    %c0_14 = arith.constant 0 : index
    %c1_15 = arith.constant 1 : index
    %c9_16 = arith.constant 9 : index
    %c0_17 = arith.constant 0 : index
    %6 = vector.load %arg10[%c0_14, %c1_15, %c9_16, %c0_17] : memref<2x10x10x3xf32, #tpu.memory_space<vmem>>, vector<2x8x1x3xf32>
    tpu.vector_store %arg10[%c0_14, %c1_15, %c9_16, %c0_17], %2 {strides = array<i32>} : memref<2x10x10x3xf32, #tpu.memory_space<vmem>>, vector<2x8x1x3xf32>,
    %c0_18 = arith.constant 0 : index
    %c1_19 = arith.constant 1 : index
    %c1_20 = arith.constant 1 : index
    %c0_21 = arith.constant 0 : index
    %7 = vector.load %arg10[%c0_18, %c1_19, %c1_20, %c0_21] : memref<2x10x10x3xf32, #tpu.memory_space<vmem>>, vector<2x8x8x3xf32>
    tpu.vector_store %arg10[%c0_18, %c1_19, %c1_20, %c0_21], %0 {strides = array<i32>} : memref<2x10x10x3xf32, #tpu.memory_space<vmem>>, vector<2x8x8x3xf32>,
    %c0_22 = arith.constant 0 : index
    %c0_23 = arith.constant 0 : index
    %c0_24 = arith.constant 0 : index
    %c0_25 = arith.constant 0 : index
    %8 = vector.load %arg10[%c0_22, %c0_23, %c0_24, %c0_25] : memref<2x10x10x3xf32, #tpu.memory_space<vmem>>, vector<2x8x8x3xf32>
    %9 = vector.shape_cast %8 : vector<2x8x8x3xf32> to vector<128x3xf32>
    %10 = arith.truncf %9 : vector<128x3xf32> to vector<128x3xbf16>
    %c0_26 = arith.constant 0 : index
    %c0_27 = arith.constant 0 : index
    %11 = vector.load %arg11[%c0_26, %c0_27] : memref<128x27xbf16, #tpu.memory_space<vmem>>, vector<128x3xbf16>
    tpu.vector_store %arg11[%c0_26, %c0_27], %10 {strides = array<i32>} : memref<128x27xbf16, #tpu.memory_space<vmem>>, vector<128x3xbf16>,
    %c0_28 = arith.constant 0 : index
    %c0_29 = arith.constant 0 : index
    %c1_30 = arith.constant 1 : index
    %c0_31 = arith.constant 0 : index
    %12 = vector.load %arg10[%c0_28, %c0_29, %c1_30, %c0_31] : memref<2x10x10x3xf32, #tpu.memory_space<vmem>>, vector<2x8x8x3xf32>
    %13 = vector.shape_cast %12 : vector<2x8x8x3xf32> to vector<128x3xf32>
    %14 = arith.truncf %13 : vector<128x3xf32> to vector<128x3xbf16>
    %c0_32 = arith.constant 0 : index
    %c3 = arith.constant 3 : index
    %15 = vector.load %arg11[%c0_32, %c3] : memref<128x27xbf16, #tpu.memory_space<vmem>>, vector<128x3xbf16>
    tpu.vector_store %arg11[%c0_32, %c3], %14 {strides = array<i32>} : memref<128x27xbf16, #tpu.memory_space<vmem>>, vector<128x3xbf16>,
    %c0_33 = arith.constant 0 : index
    %c0_34 = arith.constant 0 : index
    %c2 = arith.constant 2 : index
    %c0_35 = arith.constant 0 : index
    %16 = vector.load %arg10[%c0_33, %c0_34, %c2, %c0_35] : memref<2x10x10x3xf32, #tpu.memory_space<vmem>>, vector<2x8x8x3xf32>
    %17 = vector.shape_cast %16 : vector<2x8x8x3xf32> to vector<128x3xf32>
    %18 = arith.truncf %17 : vector<128x3xf32> to vector<128x3xbf16>
    %c0_36 = arith.constant 0 : index
    %c6 = arith.constant 6 : index
    %19 = vector.load %arg11[%c0_36, %c6] : memref<128x27xbf16, #tpu.memory_space<vmem>>, vector<128x3xbf16>
    tpu.vector_store %arg11[%c0_36, %c6], %18 {strides = array<i32>} : memref<128x27xbf16, #tpu.memory_space<vmem>>, vector<128x3xbf16>,
    %c0_37 = arith.constant 0 : index
    %c1_38 = arith.constant 1 : index
    %c0_39 = arith.constant 0 : index
    %c0_40 = arith.constant 0 : index
    %20 = vector.load %arg10[%c0_37, %c1_38, %c0_39, %c0_40] : memref<2x10x10x3xf32, #tpu.memory_space<vmem>>, vector<2x8x8x3xf32>
    %21 = vector.shape_cast %20 : vector<2x8x8x3xf32> to vector<128x3xf32>
    %22 = arith.truncf %21 : vector<128x3xf32> to vector<128x3xbf16>
    %c0_41 = arith.constant 0 : index
    %c9_42 = arith.constant 9 : index
    %23 = vector.load %arg11[%c0_41, %c9_42] : memref<128x27xbf16, #tpu.memory_space<vmem>>, vector<128x3xbf16>
    tpu.vector_store %arg11[%c0_41, %c9_42], %22 {strides = array<i32>} : memref<128x27xbf16, #tpu.memory_space<vmem>>, vector<128x3xbf16>,
    %c0_43 = arith.constant 0 : index
    %c1_44 = arith.constant 1 : index
    %c1_45 = arith.constant 1 : index
    %c0_46 = arith.constant 0 : index
    %24 = vector.load %arg10[%c0_43, %c1_44, %c1_45, %c0_46] : memref<2x10x10x3xf32, #tpu.memory_space<vmem>>, vector<2x8x8x3xf32>
    %25 = vector.shape_cast %24 : vector<2x8x8x3xf32> to vector<128x3xf32>
    %26 = arith.truncf %25 : vector<128x3xf32> to vector<128x3xbf16>
    %c0_47 = arith.constant 0 : index
    %c12 = arith.constant 12 : index
    %27 = vector.load %arg11[%c0_47, %c12] : memref<128x27xbf16, #tpu.memory_space<vmem>>, vector<128x3xbf16>
    tpu.vector_store %arg11[%c0_47, %c12], %26 {strides = array<i32>} : memref<128x27xbf16, #tpu.memory_space<vmem>>, vector<128x3xbf16>,
    %c0_48 = arith.constant 0 : index
    %c1_49 = arith.constant 1 : index
    %c2_50 = arith.constant 2 : index
    %c0_51 = arith.constant 0 : index
    %28 = vector.load %arg10[%c0_48, %c1_49, %c2_50, %c0_51] : memref<2x10x10x3xf32, #tpu.memory_space<vmem>>, vector<2x8x8x3xf32>
    %29 = vector.shape_cast %28 : vector<2x8x8x3xf32> to vector<128x3xf32>
    %30 = arith.truncf %29 : vector<128x3xf32> to vector<128x3xbf16>
    %c0_52 = arith.constant 0 : index
    %c15 = arith.constant 15 : index
    %31 = vector.load %arg11[%c0_52, %c15] : memref<128x27xbf16, #tpu.memory_space<vmem>>, vector<128x3xbf16>
    tpu.vector_store %arg11[%c0_52, %c15], %30 {strides = array<i32>} : memref<128x27xbf16, #tpu.memory_space<vmem>>, vector<128x3xbf16>,
    %c0_53 = arith.constant 0 : index
    %c2_54 = arith.constant 2 : index
    %c0_55 = arith.constant 0 : index
    %c0_56 = arith.constant 0 : index
    %32 = vector.load %arg10[%c0_53, %c2_54, %c0_55, %c0_56] : memref<2x10x10x3xf32, #tpu.memory_space<vmem>>, vector<2x8x8x3xf32>
    %33 = vector.shape_cast %32 : vector<2x8x8x3xf32> to vector<128x3xf32>
    %34 = arith.truncf %33 : vector<128x3xf32> to vector<128x3xbf16>
    %c0_57 = arith.constant 0 : index
    %c18 = arith.constant 18 : index
    %35 = vector.load %arg11[%c0_57, %c18] : memref<128x27xbf16, #tpu.memory_space<vmem>>, vector<128x3xbf16>
    tpu.vector_store %arg11[%c0_57, %c18], %34 {strides = array<i32>} : memref<128x27xbf16, #tpu.memory_space<vmem>>, vector<128x3xbf16>,
    %c0_58 = arith.constant 0 : index
    %c2_59 = arith.constant 2 : index
    %c1_60 = arith.constant 1 : index
    %c0_61 = arith.constant 0 : index
    %36 = vector.load %arg10[%c0_58, %c2_59, %c1_60, %c0_61] : memref<2x10x10x3xf32, #tpu.memory_space<vmem>>, vector<2x8x8x3xf32>
    %37 = vector.shape_cast %36 : vector<2x8x8x3xf32> to vector<128x3xf32>
    %38 = arith.truncf %37 : vector<128x3xf32> to vector<128x3xbf16>
    %c0_62 = arith.constant 0 : index
    %c21 = arith.constant 21 : index
    %39 = vector.load %arg11[%c0_62, %c21] : memref<128x27xbf16, #tpu.memory_space<vmem>>, vector<128x3xbf16>
    tpu.vector_store %arg11[%c0_62, %c21], %38 {strides = array<i32>} : memref<128x27xbf16, #tpu.memory_space<vmem>>, vector<128x3xbf16>,
    %c0_63 = arith.constant 0 : index
    %c2_64 = arith.constant 2 : index
    %c2_65 = arith.constant 2 : index
    %c0_66 = arith.constant 0 : index
    %40 = vector.load %arg10[%c0_63, %c2_64, %c2_65, %c0_66] : memref<2x10x10x3xf32, #tpu.memory_space<vmem>>, vector<2x8x8x3xf32>
    %41 = vector.shape_cast %40 : vector<2x8x8x3xf32> to vector<128x3xf32>
    %42 = arith.truncf %41 : vector<128x3xf32> to vector<128x3xbf16>
    %c0_67 = arith.constant 0 : index
    %c24 = arith.constant 24 : index
    %43 = vector.load %arg11[%c0_67, %c24] : memref<128x27xbf16, #tpu.memory_space<vmem>>, vector<128x3xbf16>
    tpu.vector_store %arg11[%c0_67, %c24], %42 {strides = array<i32>} : memref<128x27xbf16, #tpu.memory_space<vmem>>, vector<128x3xbf16>,
    %c0_68 = arith.constant 0 : index
    %c0_69 = arith.constant 0 : index
    %44 = vector.load %arg11[%c0_68, %c0_69] : memref<128x27xbf16, #tpu.memory_space<vmem>>, vector<128x27xbf16>
    %c0_70 = arith.constant 0 : index
    %c0_71 = arith.constant 0 : index
    %45 = vector.load %arg1[%c0_70, %c0_71] : memref<27x16xbf16, #tpu.memory_space<vmem>>, vector<27x16xbf16>
    %cst_72 = arith.constant dense<0.000000e+00> : vector<128x16xf32>
    %46 = tpu.matmul %44, %45, %cst_72 {dimension_numbers = #tpu.dot_dimension_numbers<[1], [0], [0], [1], [0, 0, 1, 1], [], []>} : vector<128x27xbf16>, vector<27x16xbf16>, vector<128x16xf32> -> vector<128x16xf32>
    %c0_73 = arith.constant 0 : index
    %c0_74 = arith.constant 0 : index
    %47 = vector.load %arg2[%c0_73, %c0_74] : memref<1x16xf32, #tpu.memory_space<vmem>>, vector<1x16xf32>
    %48 = vector.broadcast %47 : vector<1x16xf32> to vector<128x16xf32>
    %49 = arith.addf %46, %48 : vector<128x16xf32>
    %cst_75 = arith.constant 0.000000e+00 : f32
    %50 = vector.broadcast %cst_75 : f32 to vector<128x16xf32>
    %51 = arith.maximumf %49, %50 : vector<128x16xf32>
    %52 = vector.shape_cast %51 : vector<128x16xf32> to vector<2x4x2x4x2x16xf32>
    %53 = vector.extract_strided_slice %52 {offsets = [0, 0, 0, 0, 0, 0], sizes = [2, 4, 1, 4, 1, 16], strides = [1, 1, 1, 1, 1, 1]} : vector<2x4x2x4x2x16xf32> to vector<2x4x1x4x1x16xf32>
    %54 = vector.shape_cast %53 : vector<2x4x1x4x1x16xf32> to vector<2x4x4x16xf32>
    %55 = vector.extract_strided_slice %52 {offsets = [0, 0, 1, 0, 0, 0], sizes = [2, 4, 1, 4, 1, 16], strides = [1, 1, 1, 1, 1, 1]} : vector<2x4x2x4x2x16xf32> to vector<2x4x1x4x1x16xf32>
    %56 = vector.shape_cast %55 : vector<2x4x1x4x1x16xf32> to vector<2x4x4x16xf32>
    %57 = arith.maximumf %54, %56 : vector<2x4x4x16xf32>
    %58 = vector.extract_strided_slice %52 {offsets = [0, 0, 0, 0, 1, 0], sizes = [2, 4, 1, 4, 1, 16], strides = [1, 1, 1, 1, 1, 1]} : vector<2x4x2x4x2x16xf32> to vector<2x4x1x4x1x16xf32>
    %59 = vector.shape_cast %58 : vector<2x4x1x4x1x16xf32> to vector<2x4x4x16xf32>
    %60 = vector.extract_strided_slice %52 {offsets = [0, 0, 1, 0, 1, 0], sizes = [2, 4, 1, 4, 1, 16], strides = [1, 1, 1, 1, 1, 1]} : vector<2x4x2x4x2x16xf32> to vector<2x4x1x4x1x16xf32>
    %61 = vector.shape_cast %60 : vector<2x4x1x4x1x16xf32> to vector<2x4x4x16xf32>
    %62 = arith.maximumf %59, %61 : vector<2x4x4x16xf32>
    %63 = arith.maximumf %57, %62 : vector<2x4x4x16xf32>
    %cst_76 = arith.constant 0.000000e+00 : f32
    %64 = vector.broadcast %cst_76 : f32 to vector<2x1x6x16xf32>
    %cst_77 = arith.constant 0.000000e+00 : f32
    %65 = vector.broadcast %cst_77 : f32 to vector<2x4x1x16xf32>
    %c0_78 = arith.constant 0 : index
    %c0_79 = arith.constant 0 : index
    %c0_80 = arith.constant 0 : index
    %c0_81 = arith.constant 0 : index
    %66 = vector.load %arg12[%c0_78, %c0_79, %c0_80, %c0_81] : memref<2x6x6x16xf32, #tpu.memory_space<vmem>>, vector<2x1x6x16xf32>
    tpu.vector_store %arg12[%c0_78, %c0_79, %c0_80, %c0_81], %64 {strides = array<i32>} : memref<2x6x6x16xf32, #tpu.memory_space<vmem>>, vector<2x1x6x16xf32>,
    %c0_82 = arith.constant 0 : index
    %c5 = arith.constant 5 : index
    %c0_83 = arith.constant 0 : index
    %c0_84 = arith.constant 0 : index
    %67 = vector.load %arg12[%c0_82, %c5, %c0_83, %c0_84] : memref<2x6x6x16xf32, #tpu.memory_space<vmem>>, vector<2x1x6x16xf32>
    tpu.vector_store %arg12[%c0_82, %c5, %c0_83, %c0_84], %64 {strides = array<i32>} : memref<2x6x6x16xf32, #tpu.memory_space<vmem>>, vector<2x1x6x16xf32>,
    %c0_85 = arith.constant 0 : index
    %c1_86 = arith.constant 1 : index
    %c0_87 = arith.constant 0 : index
    %c0_88 = arith.constant 0 : index
    %68 = vector.load %arg12[%c0_85, %c1_86, %c0_87, %c0_88] : memref<2x6x6x16xf32, #tpu.memory_space<vmem>>, vector<2x4x1x16xf32>
    tpu.vector_store %arg12[%c0_85, %c1_86, %c0_87, %c0_88], %65 {strides = array<i32>} : memref<2x6x6x16xf32, #tpu.memory_space<vmem>>, vector<2x4x1x16xf32>,
    %c0_89 = arith.constant 0 : index
    %c1_90 = arith.constant 1 : index
    %c5_91 = arith.constant 5 : index
    %c0_92 = arith.constant 0 : index
    %69 = vector.load %arg12[%c0_89, %c1_90, %c5_91, %c0_92] : memref<2x6x6x16xf32, #tpu.memory_space<vmem>>, vector<2x4x1x16xf32>
    tpu.vector_store %arg12[%c0_89, %c1_90, %c5_91, %c0_92], %65 {strides = array<i32>} : memref<2x6x6x16xf32, #tpu.memory_space<vmem>>, vector<2x4x1x16xf32>,
    %c0_93 = arith.constant 0 : index
    %c1_94 = arith.constant 1 : index
    %c1_95 = arith.constant 1 : index
    %c0_96 = arith.constant 0 : index
    %70 = vector.load %arg12[%c0_93, %c1_94, %c1_95, %c0_96] : memref<2x6x6x16xf32, #tpu.memory_space<vmem>>, vector<2x4x4x16xf32>
    tpu.vector_store %arg12[%c0_93, %c1_94, %c1_95, %c0_96], %63 {strides = array<i32>} : memref<2x6x6x16xf32, #tpu.memory_space<vmem>>, vector<2x4x4x16xf32>,
    %c0_97 = arith.constant 0 : index
    %c0_98 = arith.constant 0 : index
    %c0_99 = arith.constant 0 : index
    %c0_100 = arith.constant 0 : index
    %71 = vector.load %arg12[%c0_97, %c0_98, %c0_99, %c0_100] : memref<2x6x6x16xf32, #tpu.memory_space<vmem>>, vector<2x4x4x16xf32>
    %72 = vector.shape_cast %71 : vector<2x4x4x16xf32> to vector<32x16xf32>
    %73 = arith.truncf %72 : vector<32x16xf32> to vector<32x16xbf16>
    %c0_101 = arith.constant 0 : index
    %c0_102 = arith.constant 0 : index
    %74 = vector.load %arg13[%c0_101, %c0_102] : memref<32x144xbf16, #tpu.memory_space<vmem>>, vector<32x16xbf16>
    tpu.vector_store %arg13[%c0_101, %c0_102], %73 {strides = array<i32>} : memref<32x144xbf16, #tpu.memory_space<vmem>>, vector<32x16xbf16>,
    %c0_103 = arith.constant 0 : index
    %c0_104 = arith.constant 0 : index
    %c1_105 = arith.constant 1 : index
    %c0_106 = arith.constant 0 : index
    %75 = vector.load %arg12[%c0_103, %c0_104, %c1_105, %c0_106] : memref<2x6x6x16xf32, #tpu.memory_space<vmem>>, vector<2x4x4x16xf32>
    %76 = vector.shape_cast %75 : vector<2x4x4x16xf32> to vector<32x16xf32>
    %77 = arith.truncf %76 : vector<32x16xf32> to vector<32x16xbf16>
    %c0_107 = arith.constant 0 : index
    %c16 = arith.constant 16 : index
    %78 = vector.load %arg13[%c0_107, %c16] : memref<32x144xbf16, #tpu.memory_space<vmem>>, vector<32x16xbf16>
    tpu.vector_store %arg13[%c0_107, %c16], %77 {strides = array<i32>} : memref<32x144xbf16, #tpu.memory_space<vmem>>, vector<32x16xbf16>,
    %c0_108 = arith.constant 0 : index
    %c0_109 = arith.constant 0 : index
    %c2_110 = arith.constant 2 : index
    %c0_111 = arith.constant 0 : index
    %79 = vector.load %arg12[%c0_108, %c0_109, %c2_110, %c0_111] : memref<2x6x6x16xf32, #tpu.memory_space<vmem>>, vector<2x4x4x16xf32>
    %80 = vector.shape_cast %79 : vector<2x4x4x16xf32> to vector<32x16xf32>
    %81 = arith.truncf %80 : vector<32x16xf32> to vector<32x16xbf16>
    %c0_112 = arith.constant 0 : index
    %c32 = arith.constant 32 : index
    %82 = vector.load %arg13[%c0_112, %c32] : memref<32x144xbf16, #tpu.memory_space<vmem>>, vector<32x16xbf16>
    tpu.vector_store %arg13[%c0_112, %c32], %81 {strides = array<i32>} : memref<32x144xbf16, #tpu.memory_space<vmem>>, vector<32x16xbf16>,
    %c0_113 = arith.constant 0 : index
    %c1_114 = arith.constant 1 : index
    %c0_115 = arith.constant 0 : index
    %c0_116 = arith.constant 0 : index
    %83 = vector.load %arg12[%c0_113, %c1_114, %c0_115, %c0_116] : memref<2x6x6x16xf32, #tpu.memory_space<vmem>>, vector<2x4x4x16xf32>
    %84 = vector.shape_cast %83 : vector<2x4x4x16xf32> to vector<32x16xf32>
    %85 = arith.truncf %84 : vector<32x16xf32> to vector<32x16xbf16>
    %c0_117 = arith.constant 0 : index
    %c48 = arith.constant 48 : index
    %86 = vector.load %arg13[%c0_117, %c48] : memref<32x144xbf16, #tpu.memory_space<vmem>>, vector<32x16xbf16>
    tpu.vector_store %arg13[%c0_117, %c48], %85 {strides = array<i32>} : memref<32x144xbf16, #tpu.memory_space<vmem>>, vector<32x16xbf16>,
    %c0_118 = arith.constant 0 : index
    %c1_119 = arith.constant 1 : index
    %c1_120 = arith.constant 1 : index
    %c0_121 = arith.constant 0 : index
    %87 = vector.load %arg12[%c0_118, %c1_119, %c1_120, %c0_121] : memref<2x6x6x16xf32, #tpu.memory_space<vmem>>, vector<2x4x4x16xf32>
    %88 = vector.shape_cast %87 : vector<2x4x4x16xf32> to vector<32x16xf32>
    %89 = arith.truncf %88 : vector<32x16xf32> to vector<32x16xbf16>
    %c0_122 = arith.constant 0 : index
    %c64 = arith.constant 64 : index
    %90 = vector.load %arg13[%c0_122, %c64] : memref<32x144xbf16, #tpu.memory_space<vmem>>, vector<32x16xbf16>
    tpu.vector_store %arg13[%c0_122, %c64], %89 {strides = array<i32>} : memref<32x144xbf16, #tpu.memory_space<vmem>>, vector<32x16xbf16>,
    %c0_123 = arith.constant 0 : index
    %c1_124 = arith.constant 1 : index
    %c2_125 = arith.constant 2 : index
    %c0_126 = arith.constant 0 : index
    %91 = vector.load %arg12[%c0_123, %c1_124, %c2_125, %c0_126] : memref<2x6x6x16xf32, #tpu.memory_space<vmem>>, vector<2x4x4x16xf32>
    %92 = vector.shape_cast %91 : vector<2x4x4x16xf32> to vector<32x16xf32>
    %93 = arith.truncf %92 : vector<32x16xf32> to vector<32x16xbf16>
    %c0_127 = arith.constant 0 : index
    %c80 = arith.constant 80 : index
    %94 = vector.load %arg13[%c0_127, %c80] : memref<32x144xbf16, #tpu.memory_space<vmem>>, vector<32x16xbf16>
    tpu.vector_store %arg13[%c0_127, %c80], %93 {strides = array<i32>} : memref<32x144xbf16, #tpu.memory_space<vmem>>, vector<32x16xbf16>,
    %c0_128 = arith.constant 0 : index
    %c2_129 = arith.constant 2 : index
    %c0_130 = arith.constant 0 : index
    %c0_131 = arith.constant 0 : index
    %95 = vector.load %arg12[%c0_128, %c2_129, %c0_130, %c0_131] : memref<2x6x6x16xf32, #tpu.memory_space<vmem>>, vector<2x4x4x16xf32>
    %96 = vector.shape_cast %95 : vector<2x4x4x16xf32> to vector<32x16xf32>
    %97 = arith.truncf %96 : vector<32x16xf32> to vector<32x16xbf16>
    %c0_132 = arith.constant 0 : index
    %c96 = arith.constant 96 : index
    %98 = vector.load %arg13[%c0_132, %c96] : memref<32x144xbf16, #tpu.memory_space<vmem>>, vector<32x16xbf16>
    tpu.vector_store %arg13[%c0_132, %c96], %97 {strides = array<i32>} : memref<32x144xbf16, #tpu.memory_space<vmem>>, vector<32x16xbf16>,
    %c0_133 = arith.constant 0 : index
    %c2_134 = arith.constant 2 : index
    %c1_135 = arith.constant 1 : index
    %c0_136 = arith.constant 0 : index
    %99 = vector.load %arg12[%c0_133, %c2_134, %c1_135, %c0_136] : memref<2x6x6x16xf32, #tpu.memory_space<vmem>>, vector<2x4x4x16xf32>
    %100 = vector.shape_cast %99 : vector<2x4x4x16xf32> to vector<32x16xf32>
    %101 = arith.truncf %100 : vector<32x16xf32> to vector<32x16xbf16>
    %c0_137 = arith.constant 0 : index
    %c112 = arith.constant 112 : index
    %102 = vector.load %arg13[%c0_137, %c112] : memref<32x144xbf16, #tpu.memory_space<vmem>>, vector<32x16xbf16>
    tpu.vector_store %arg13[%c0_137, %c112], %101 {strides = array<i32>} : memref<32x144xbf16, #tpu.memory_space<vmem>>, vector<32x16xbf16>,
    %c0_138 = arith.constant 0 : index
    %c2_139 = arith.constant 2 : index
    %c2_140 = arith.constant 2 : index
    %c0_141 = arith.constant 0 : index
    %103 = vector.load %arg12[%c0_138, %c2_139, %c2_140, %c0_141] : memref<2x6x6x16xf32, #tpu.memory_space<vmem>>, vector<2x4x4x16xf32>
    %104 = vector.shape_cast %103 : vector<2x4x4x16xf32> to vector<32x16xf32>
    %105 = arith.truncf %104 : vector<32x16xf32> to vector<32x16xbf16>
    %c0_142 = arith.constant 0 : index
    %c128 = arith.constant 128 : index
    %106 = vector.load %arg13[%c0_142, %c128] : memref<32x144xbf16, #tpu.memory_space<vmem>>, vector<32x16xbf16>
    tpu.vector_store %arg13[%c0_142, %c128], %105 {strides = array<i32>} : memref<32x144xbf16, #tpu.memory_space<vmem>>, vector<32x16xbf16>,
    %c0_143 = arith.constant 0 : index
    %c0_144 = arith.constant 0 : index
    %107 = vector.load %arg13[%c0_143, %c0_144] : memref<32x144xbf16, #tpu.memory_space<vmem>>, vector<32x144xbf16>
    %c0_145 = arith.constant 0 : index
    %c0_146 = arith.constant 0 : index
    %108 = vector.load %arg3[%c0_145, %c0_146] : memref<144x32xbf16, #tpu.memory_space<vmem>>, vector<144x32xbf16>
    %cst_147 = arith.constant dense<0.000000e+00> : vector<32x32xf32>
    %109 = tpu.matmul %107, %108, %cst_147 {dimension_numbers = #tpu.dot_dimension_numbers<[1], [0], [0], [1], [0, 0, 1, 1], [], []>} : vector<32x144xbf16>, vector<144x32xbf16>, vector<32x32xf32> -> vector<32x32xf32>
    %c0_148 = arith.constant 0 : index
    %c0_149 = arith.constant 0 : index
    %110 = vector.load %arg4[%c0_148, %c0_149] : memref<1x32xf32, #tpu.memory_space<vmem>>, vector<1x32xf32>
    %111 = vector.broadcast %110 : vector<1x32xf32> to vector<32x32xf32>
    %112 = arith.addf %109, %111 : vector<32x32xf32>
    %cst_150 = arith.constant 0.000000e+00 : f32
    %113 = vector.broadcast %cst_150 : f32 to vector<32x32xf32>
    %114 = arith.maximumf %112, %113 : vector<32x32xf32>
    %115 = vector.shape_cast %114 : vector<32x32xf32> to vector<2x2x2x2x2x32xf32>
    %116 = vector.extract_strided_slice %115 {offsets = [0, 0, 0, 0, 0, 0], sizes = [2, 2, 1, 2, 1, 32], strides = [1, 1, 1, 1, 1, 1]} : vector<2x2x2x2x2x32xf32> to vector<2x2x1x2x1x32xf32>
    %117 = vector.shape_cast %116 : vector<2x2x1x2x1x32xf32> to vector<2x2x2x32xf32>
    %118 = vector.extract_strided_slice %115 {offsets = [0, 0, 1, 0, 0, 0], sizes = [2, 2, 1, 2, 1, 32], strides = [1, 1, 1, 1, 1, 1]} : vector<2x2x2x2x2x32xf32> to vector<2x2x1x2x1x32xf32>
    %119 = vector.shape_cast %118 : vector<2x2x1x2x1x32xf32> to vector<2x2x2x32xf32>
    %120 = arith.maximumf %117, %119 : vector<2x2x2x32xf32>
    %121 = vector.extract_strided_slice %115 {offsets = [0, 0, 0, 0, 1, 0], sizes = [2, 2, 1, 2, 1, 32], strides = [1, 1, 1, 1, 1, 1]} : vector<2x2x2x2x2x32xf32> to vector<2x2x1x2x1x32xf32>
    %122 = vector.shape_cast %121 : vector<2x2x1x2x1x32xf32> to vector<2x2x2x32xf32>
    %123 = vector.extract_strided_slice %115 {offsets = [0, 0, 1, 0, 1, 0], sizes = [2, 2, 1, 2, 1, 32], strides = [1, 1, 1, 1, 1, 1]} : vector<2x2x2x2x2x32xf32> to vector<2x2x1x2x1x32xf32>
    %124 = vector.shape_cast %123 : vector<2x2x1x2x1x32xf32> to vector<2x2x2x32xf32>
    %125 = arith.maximumf %122, %124 : vector<2x2x2x32xf32>
    %126 = arith.maximumf %120, %125 : vector<2x2x2x32xf32>
    %cst_151 = arith.constant 0.000000e+00 : f32
    %127 = vector.broadcast %cst_151 : f32 to vector<2x1x4x32xf32>
    %cst_152 = arith.constant 0.000000e+00 : f32
    %128 = vector.broadcast %cst_152 : f32 to vector<2x2x1x32xf32>
    %c0_153 = arith.constant 0 : index
    %c0_154 = arith.constant 0 : index
    %c0_155 = arith.constant 0 : index
    %c0_156 = arith.constant 0 : index
    %129 = vector.load %arg14[%c0_153, %c0_154, %c0_155, %c0_156] : memref<2x4x4x32xf32, #tpu.memory_space<vmem>>, vector<2x1x4x32xf32>
    tpu.vector_store %arg14[%c0_153, %c0_154, %c0_155, %c0_156], %127 {strides = array<i32>} : memref<2x4x4x32xf32, #tpu.memory_space<vmem>>, vector<2x1x4x32xf32>,
    %c0_157 = arith.constant 0 : index
    %c3_158 = arith.constant 3 : index
    %c0_159 = arith.constant 0 : index
    %c0_160 = arith.constant 0 : index
    %130 = vector.load %arg14[%c0_157, %c3_158, %c0_159, %c0_160] : memref<2x4x4x32xf32, #tpu.memory_space<vmem>>, vector<2x1x4x32xf32>
    tpu.vector_store %arg14[%c0_157, %c3_158, %c0_159, %c0_160], %127 {strides = array<i32>} : memref<2x4x4x32xf32, #tpu.memory_space<vmem>>, vector<2x1x4x32xf32>,
    %c0_161 = arith.constant 0 : index
    %c1_162 = arith.constant 1 : index
    %c0_163 = arith.constant 0 : index
    %c0_164 = arith.constant 0 : index
    %131 = vector.load %arg14[%c0_161, %c1_162, %c0_163, %c0_164] : memref<2x4x4x32xf32, #tpu.memory_space<vmem>>, vector<2x2x1x32xf32>
    tpu.vector_store %arg14[%c0_161, %c1_162, %c0_163, %c0_164], %128 {strides = array<i32>} : memref<2x4x4x32xf32, #tpu.memory_space<vmem>>, vector<2x2x1x32xf32>,
    %c0_165 = arith.constant 0 : index
    %c1_166 = arith.constant 1 : index
    %c3_167 = arith.constant 3 : index
    %c0_168 = arith.constant 0 : index
    %132 = vector.load %arg14[%c0_165, %c1_166, %c3_167, %c0_168] : memref<2x4x4x32xf32, #tpu.memory_space<vmem>>, vector<2x2x1x32xf32>
    tpu.vector_store %arg14[%c0_165, %c1_166, %c3_167, %c0_168], %128 {strides = array<i32>} : memref<2x4x4x32xf32, #tpu.memory_space<vmem>>, vector<2x2x1x32xf32>,
    %c0_169 = arith.constant 0 : index
    %c1_170 = arith.constant 1 : index
    %c1_171 = arith.constant 1 : index
    %c0_172 = arith.constant 0 : index
    %133 = vector.load %arg14[%c0_169, %c1_170, %c1_171, %c0_172] : memref<2x4x4x32xf32, #tpu.memory_space<vmem>>, vector<2x2x2x32xf32>
    tpu.vector_store %arg14[%c0_169, %c1_170, %c1_171, %c0_172], %126 {strides = array<i32>} : memref<2x4x4x32xf32, #tpu.memory_space<vmem>>, vector<2x2x2x32xf32>,
    %c0_173 = arith.constant 0 : index
    %c0_174 = arith.constant 0 : index
    %c0_175 = arith.constant 0 : index
    %c0_176 = arith.constant 0 : index
    %134 = vector.load %arg14[%c0_173, %c0_174, %c0_175, %c0_176] : memref<2x4x4x32xf32, #tpu.memory_space<vmem>>, vector<2x2x2x32xf32>
    %135 = vector.shape_cast %134 : vector<2x2x2x32xf32> to vector<8x32xf32>
    %136 = arith.truncf %135 : vector<8x32xf32> to vector<8x32xbf16>
    %c0_177 = arith.constant 0 : index
    %c0_178 = arith.constant 0 : index
    %137 = vector.load %arg15[%c0_177, %c0_178] : memref<8x288xbf16, #tpu.memory_space<vmem>>, vector<8x32xbf16>
    tpu.vector_store %arg15[%c0_177, %c0_178], %136 {strides = array<i32>} : memref<8x288xbf16, #tpu.memory_space<vmem>>, vector<8x32xbf16>,
    %c0_179 = arith.constant 0 : index
    %c0_180 = arith.constant 0 : index
    %c1_181 = arith.constant 1 : index
    %c0_182 = arith.constant 0 : index
    %138 = vector.load %arg14[%c0_179, %c0_180, %c1_181, %c0_182] : memref<2x4x4x32xf32, #tpu.memory_space<vmem>>, vector<2x2x2x32xf32>
    %139 = vector.shape_cast %138 : vector<2x2x2x32xf32> to vector<8x32xf32>
    %140 = arith.truncf %139 : vector<8x32xf32> to vector<8x32xbf16>
    %c0_183 = arith.constant 0 : index
    %c32_184 = arith.constant 32 : index
    %141 = vector.load %arg15[%c0_183, %c32_184] : memref<8x288xbf16, #tpu.memory_space<vmem>>, vector<8x32xbf16>
    tpu.vector_store %arg15[%c0_183, %c32_184], %140 {strides = array<i32>} : memref<8x288xbf16, #tpu.memory_space<vmem>>, vector<8x32xbf16>,
    %c0_185 = arith.constant 0 : index
    %c0_186 = arith.constant 0 : index
    %c2_187 = arith.constant 2 : index
    %c0_188 = arith.constant 0 : index
    %142 = vector.load %arg14[%c0_185, %c0_186, %c2_187, %c0_188] : memref<2x4x4x32xf32, #tpu.memory_space<vmem>>, vector<2x2x2x32xf32>
    %143 = vector.shape_cast %142 : vector<2x2x2x32xf32> to vector<8x32xf32>
    %144 = arith.truncf %143 : vector<8x32xf32> to vector<8x32xbf16>
    %c0_189 = arith.constant 0 : index
    %c64_190 = arith.constant 64 : index
    %145 = vector.load %arg15[%c0_189, %c64_190] : memref<8x288xbf16, #tpu.memory_space<vmem>>, vector<8x32xbf16>
    tpu.vector_store %arg15[%c0_189, %c64_190], %144 {strides = array<i32>} : memref<8x288xbf16, #tpu.memory_space<vmem>>, vector<8x32xbf16>,
    %c0_191 = arith.constant 0 : index
    %c1_192 = arith.constant 1 : index
    %c0_193 = arith.constant 0 : index
    %c0_194 = arith.constant 0 : index
    %146 = vector.load %arg14[%c0_191, %c1_192, %c0_193, %c0_194] : memref<2x4x4x32xf32, #tpu.memory_space<vmem>>, vector<2x2x2x32xf32>
    %147 = vector.shape_cast %146 : vector<2x2x2x32xf32> to vector<8x32xf32>
    %148 = arith.truncf %147 : vector<8x32xf32> to vector<8x32xbf16>
    %c0_195 = arith.constant 0 : index
    %c96_196 = arith.constant 96 : index
    %149 = vector.load %arg15[%c0_195, %c96_196] : memref<8x288xbf16, #tpu.memory_space<vmem>>, vector<8x32xbf16>
    tpu.vector_store %arg15[%c0_195, %c96_196], %148 {strides = array<i32>} : memref<8x288xbf16, #tpu.memory_space<vmem>>, vector<8x32xbf16>,
    %c0_197 = arith.constant 0 : index
    %c1_198 = arith.constant 1 : index
    %c1_199 = arith.constant 1 : index
    %c0_200 = arith.constant 0 : index
    %150 = vector.load %arg14[%c0_197, %c1_198, %c1_199, %c0_200] : memref<2x4x4x32xf32, #tpu.memory_space<vmem>>, vector<2x2x2x32xf32>
    %151 = vector.shape_cast %150 : vector<2x2x2x32xf32> to vector<8x32xf32>
    %152 = arith.truncf %151 : vector<8x32xf32> to vector<8x32xbf16>
    %c0_201 = arith.constant 0 : index
    %c128_202 = arith.constant 128 : index
    %153 = vector.load %arg15[%c0_201, %c128_202] : memref<8x288xbf16, #tpu.memory_space<vmem>>, vector<8x32xbf16>
    tpu.vector_store %arg15[%c0_201, %c128_202], %152 {strides = array<i32>} : memref<8x288xbf16, #tpu.memory_space<vmem>>, vector<8x32xbf16>,
    %c0_203 = arith.constant 0 : index
    %c1_204 = arith.constant 1 : index
    %c2_205 = arith.constant 2 : index
    %c0_206 = arith.constant 0 : index
    %154 = vector.load %arg14[%c0_203, %c1_204, %c2_205, %c0_206] : memref<2x4x4x32xf32, #tpu.memory_space<vmem>>, vector<2x2x2x32xf32>
    %155 = vector.shape_cast %154 : vector<2x2x2x32xf32> to vector<8x32xf32>
    %156 = arith.truncf %155 : vector<8x32xf32> to vector<8x32xbf16>
    %c0_207 = arith.constant 0 : index
    %c160 = arith.constant 160 : index
    %157 = vector.load %arg15[%c0_207, %c160] : memref<8x288xbf16, #tpu.memory_space<vmem>>, vector<8x32xbf16>
    tpu.vector_store %arg15[%c0_207, %c160], %156 {strides = array<i32>} : memref<8x288xbf16, #tpu.memory_space<vmem>>, vector<8x32xbf16>,
    %c0_208 = arith.constant 0 : index
    %c2_209 = arith.constant 2 : index
    %c0_210 = arith.constant 0 : index
    %c0_211 = arith.constant 0 : index
    %158 = vector.load %arg14[%c0_208, %c2_209, %c0_210, %c0_211] : memref<2x4x4x32xf32, #tpu.memory_space<vmem>>, vector<2x2x2x32xf32>
    %159 = vector.shape_cast %158 : vector<2x2x2x32xf32> to vector<8x32xf32>
    %160 = arith.truncf %159 : vector<8x32xf32> to vector<8x32xbf16>
    %c0_212 = arith.constant 0 : index
    %c192 = arith.constant 192 : index
    %161 = vector.load %arg15[%c0_212, %c192] : memref<8x288xbf16, #tpu.memory_space<vmem>>, vector<8x32xbf16>
    tpu.vector_store %arg15[%c0_212, %c192], %160 {strides = array<i32>} : memref<8x288xbf16, #tpu.memory_space<vmem>>, vector<8x32xbf16>,
    %c0_213 = arith.constant 0 : index
    %c2_214 = arith.constant 2 : index
    %c1_215 = arith.constant 1 : index
    %c0_216 = arith.constant 0 : index
    %162 = vector.load %arg14[%c0_213, %c2_214, %c1_215, %c0_216] : memref<2x4x4x32xf32, #tpu.memory_space<vmem>>, vector<2x2x2x32xf32>
    %163 = vector.shape_cast %162 : vector<2x2x2x32xf32> to vector<8x32xf32>
    %164 = arith.truncf %163 : vector<8x32xf32> to vector<8x32xbf16>
    %c0_217 = arith.constant 0 : index
    %c224 = arith.constant 224 : index
    %165 = vector.load %arg15[%c0_217, %c224] : memref<8x288xbf16, #tpu.memory_space<vmem>>, vector<8x32xbf16>
    tpu.vector_store %arg15[%c0_217, %c224], %164 {strides = array<i32>} : memref<8x288xbf16, #tpu.memory_space<vmem>>, vector<8x32xbf16>,
    %c0_218 = arith.constant 0 : index
    %c2_219 = arith.constant 2 : index
    %c2_220 = arith.constant 2 : index
    %c0_221 = arith.constant 0 : index
    %166 = vector.load %arg14[%c0_218, %c2_219, %c2_220, %c0_221] : memref<2x4x4x32xf32, #tpu.memory_space<vmem>>, vector<2x2x2x32xf32>
    %167 = vector.shape_cast %166 : vector<2x2x2x32xf32> to vector<8x32xf32>
    %168 = arith.truncf %167 : vector<8x32xf32> to vector<8x32xbf16>
    %c0_222 = arith.constant 0 : index
    %c256 = arith.constant 256 : index
    %169 = vector.load %arg15[%c0_222, %c256] : memref<8x288xbf16, #tpu.memory_space<vmem>>, vector<8x32xbf16>
    tpu.vector_store %arg15[%c0_222, %c256], %168 {strides = array<i32>} : memref<8x288xbf16, #tpu.memory_space<vmem>>, vector<8x32xbf16>,
    %c0_223 = arith.constant 0 : index
    %c0_224 = arith.constant 0 : index
    %170 = vector.load %arg15[%c0_223, %c0_224] : memref<8x288xbf16, #tpu.memory_space<vmem>>, vector<8x288xbf16>
    %c0_225 = arith.constant 0 : index
    %c0_226 = arith.constant 0 : index
    %171 = vector.load %arg5[%c0_225, %c0_226] : memref<288x512xbf16, #tpu.memory_space<vmem>>, vector<288x512xbf16>
    %cst_227 = arith.constant dense<0.000000e+00> : vector<8x512xf32>
    %172 = tpu.matmul %170, %171, %cst_227 {dimension_numbers = #tpu.dot_dimension_numbers<[1], [0], [0], [1], [0, 0, 1, 1], [], []>} : vector<8x288xbf16>, vector<288x512xbf16>, vector<8x512xf32> -> vector<8x512xf32>
    %c0_228 = arith.constant 0 : index
    %c0_229 = arith.constant 0 : index
    %173 = vector.load %arg6[%c0_228, %c0_229] : memref<1x512xf32, #tpu.memory_space<vmem>>, vector<1x512xf32>
    %174 = vector.broadcast %173 : vector<1x512xf32> to vector<8x512xf32>
    %175 = arith.addf %172, %174 : vector<8x512xf32>
    %cst_230 = arith.constant 0.000000e+00 : f32
    %176 = vector.broadcast %cst_230 : f32 to vector<8x512xf32>
    %177 = arith.maximumf %175, %176 : vector<8x512xf32>
    %178 = vector.shape_cast %177 : vector<8x512xf32> to vector<2x1x2x1x2x512xf32>
    %179 = vector.extract_strided_slice %178 {offsets = [0, 0, 0, 0, 0, 0], sizes = [2, 1, 1, 1, 1, 512], strides = [1, 1, 1, 1, 1, 1]} : vector<2x1x2x1x2x512xf32> to vector<2x1x1x1x1x512xf32>
    %180 = vector.shape_cast %179 : vector<2x1x1x1x1x512xf32> to vector<2x1x1x512xf32>
    %181 = vector.extract_strided_slice %178 {offsets = [0, 0, 1, 0, 0, 0], sizes = [2, 1, 1, 1, 1, 512], strides = [1, 1, 1, 1, 1, 1]} : vector<2x1x2x1x2x512xf32> to vector<2x1x1x1x1x512xf32>
    %182 = vector.shape_cast %181 : vector<2x1x1x1x1x512xf32> to vector<2x1x1x512xf32>
    %183 = arith.maximumf %180, %182 : vector<2x1x1x512xf32>
    %184 = vector.extract_strided_slice %178 {offsets = [0, 0, 0, 0, 1, 0], sizes = [2, 1, 1, 1, 1, 512], strides = [1, 1, 1, 1, 1, 1]} : vector<2x1x2x1x2x512xf32> to vector<2x1x1x1x1x512xf32>
    %185 = vector.shape_cast %184 : vector<2x1x1x1x1x512xf32> to vector<2x1x1x512xf32>
    %186 = vector.extract_strided_slice %178 {offsets = [0, 0, 1, 0, 1, 0], sizes = [2, 1, 1, 1, 1, 512], strides = [1, 1, 1, 1, 1, 1]} : vector<2x1x2x1x2x512xf32> to vector<2x1x1x1x1x512xf32>
    %187 = vector.shape_cast %186 : vector<2x1x1x1x1x512xf32> to vector<2x1x1x512xf32>
    %188 = arith.maximumf %185, %187 : vector<2x1x1x512xf32>
    %189 = arith.maximumf %183, %188 : vector<2x1x1x512xf32>
    %190 = vector.shape_cast %189 : vector<2x1x1x512xf32> to vector<2x512xf32>
    %191 = arith.truncf %190 : vector<2x512xf32> to vector<2x512xbf16>
    %c0_231 = arith.constant 0 : index
    %c0_232 = arith.constant 0 : index
    %192 = vector.load %arg7[%c0_231, %c0_232] : memref<512x128xbf16, #tpu.memory_space<vmem>>, vector<512x128xbf16>
    %cst_233 = arith.constant dense<0.000000e+00> : vector<2x128xf32>
    %193 = tpu.matmul %191, %192, %cst_233 {dimension_numbers = #tpu.dot_dimension_numbers<[1], [0], [0], [1], [0, 0, 1, 1], [], []>} : vector<2x512xbf16>, vector<512x128xbf16>, vector<2x128xf32> -> vector<2x128xf32>
    %c0_234 = arith.constant 0 : index
    %c0_235 = arith.constant 0 : index
    %194 = vector.load %arg8[%c0_234, %c0_235] : memref<1x128xf32, #tpu.memory_space<vmem>>, vector<1x128xf32>
    %195 = vector.broadcast %194 : vector<1x128xf32> to vector<2x128xf32>
    %196 = arith.addf %193, %195 : vector<2x128xf32>
    %c0_236 = arith.constant 0 : index
    %c0_237 = arith.constant 0 : index
    %197 = vector.load %arg9[%c0_236, %c0_237] : memref<2x128xf32, #tpu.memory_space<vmem>>, vector<2x128xf32>
    tpu.vector_store %arg9[%c0_236, %c0_237], %196 {strides = array<i32>} : memref<2x128xf32, #tpu.memory_space<vmem>>, vector<2x128xf32>,
    return
  }
}

</mosaic_0001>

<bundles_post_ra>
// kernel: convnet_forward.1
= control target key start
LH: loop header
LB: loop body
LE: loop exit
PB: predicated region body
PF: predicated region fallthrough
CT: control target
= control target key end

     0   :  { %14 = vsyncpa [#allocation9], 0  ;;  %s5457_s0 = inlined_call_operand.vmem [shape: f32[2,8,8,3], index: 0, kind: input, shape index: {}]   ;;  %s5458_s1 = inlined_call_operand.vmem [shape: bf16[27,16], index: 1, kind: input, shape index: {}]   ;;  %s5459_s2 = inlined_call_operand.vmem [shape: f32[1,16], index: 2, kind: input, shape index: {}]   ;;  %s5460_s3 = inlined_call_operand.vmem [shape: bf16[144,32], index: 3, kind: input, shape index: {}]   ;;  %s5461_s4 = inlined_call_operand.vmem [shape: f32[1,32], index: 4, kind: input, shape index: {}]   ;;  %s5462_s5 = inlined_call_operand.hbm [shape: bf16[288,512], index: 5, kind: input, shape index: {}]   ;;  %s5463_s6 = inlined_call_operand.vmem [shape: f32[1,512], index: 6, kind: input, shape index: {}]   ;;  %s5464_s7 = inlined_call_operand.hbm [shape: bf16[512,128], index: 7, kind: input, shape index: {}]   ;;  %s5465_s8 = inlined_call_operand.vmem [shape: f32[1,128], index: 8, kind: input, shape index: {}]   ;;  %s5466_s9 = inlined_call_operand.hbm [shape: f32[2,128], index: 9, kind: output, shape index: {}]  }
   0x1   :  { %15 = vsyncpa [#allocation12], 0 }
   0x2   :  { %16 = vsyncpa [#allocation10], 0  ;;  %s31_s11 = sshll.u32 %s5462_s5, 4  ;;  %s4560_s12 = smov [#allocation8]   ;;  %s32_s11 = int_to_ptr.hbm [resolvable:$true] %s31_s11 }
   0x3   :  { %s33_s13 = sshll.u32 %s4560_s12, 4  ;;  %s46_s16 = sshll.u32 %s5464_s7, 4  ;;  %s34_s13 = int_to_ptr.vmem [resolvable:$true] %s33_s13  ;;  %s47_s16 = int_to_ptr.hbm [resolvable:$true] %s46_s16 }
   0x4   :  { %s4561_s17 = smov 256   ;;  %s4562_s18 = smov 16  }
   0x5   :  { %39 = dma.hbm_to_vmem [thread:$0]  %s32_s11, 9216, %s34_s13, [#allocation9], %s4561_s17, %s4561_s17, %s4562_s18  }
   0x6   :  { %s4563_s19 = smov [#allocation11]   ;;  %s4564_s21 = smov 64  }
   0x7   :  { %s48_s20 = sshll.u32 %s4563_s19, 4  ;;  %s4565_s22 = smov 4   ;;  %s49_s20 = int_to_ptr.vmem [resolvable:$true] %s48_s20 }
   0x8   :  { %54 = dma.hbm_to_vmem [thread:$0]  %s47_s16, 4096, %s49_s20, [#allocation12], %s4564_s21, %s4564_s21, %s4565_s22  }
   0x9   :  { %4554 = dma.done.wait [#allocation9], 9216  }
   0xa   :  { %4555 = vsyncadd [#allocation9], 4294958080 }
   0xb   :  { %4556 = dma.done.wait [#allocation12], 4096  }
   0xc   :  { %4557 = vsyncadd [#allocation12], 4294963200  ;;  %vm82_vm0 = vcmask 23552   ;;  %vm84_vm1 = vcmask 17408   ;;  %v4566_v0 = vmov 0.0   ;;  %vm94_vm2 = vcmask 16384  }
   0xd   :  { %83 = vst.msk [vmem:[#allocation2] sm:$0xff] %vm82_vm0, %v4566_v0  ;;  %v66_v1 = vld [vmem:[%s5457_s0] sm:$0xff]  ;;  %s4567_s23 = smov 6   ;;  %s4568_s24 = smov 3   ;;  %v67_v12 = vld [vmem:[%s5457_s0 + $0x8] sm:$0xff]  ;;  %v68_v13 = vld [vmem:[%s5457_s0 + $0x10] sm:$0xff] }
   0xe   :  { %85 = vst.msk [vmem:[#allocation2 + $0x8] sm:$0x3] %vm84_vm1, %v4566_v0  ;;  %s4569_s25 = smov 9   ;;  %s4570_s26 = smov 12   ;;  %v69_v20 = vld [vmem:[%s5457_s0 + $0x18] sm:$0xff]  ;;  %v70_v27 = vld [vmem:[%s5457_s0 + $0x20] sm:$0xff] }
   0xf   :  { %86 = vst.msk [vmem:[#allocation2 + $0xa0] sm:$0xff] %vm82_vm0, %v4566_v0  ;;  %s4571_s12 = smov 15   ;;  %s4572_s13 = smov 18   ;;  %v71_v30 = vld [vmem:[%s5457_s0 + $0x28] sm:$0xff]  ;;  %v72_v37 = vld [vmem:[%s5457_s0 + $0x30] sm:$0xff]  ;;  %vm175_vm3 = vcmask 19456  }
  0x10   :  { %87 = vst.msk [vmem:[#allocation2 + $0xa8] sm:$0x3] %vm84_vm1, %v4566_v0  ;;  %s4573_s14 = smov 21   ;;  %s4574_s17 = smov 24   ;;  %vm288_vm4 = vcmask 44056   ;;  %vm401_vm5 = vcmask 68656  }
  0x11   :  { %89 = vst.msk [vmem:[#allocation2 + $0x90] sm:$0xff] %vm82_vm0, %v4566_v0  ;;  %vm514_vm6 = vcmask 93256   ;;  %v73_v54 = vld [vmem:[%s5457_s0 + $0x38] sm:$0xff]  ;;  %vm627_vm7 = vcmask 117856   ;;  %vm740_vm8 = vcmask 142456   ;;  %vm1197_vm9 = vcmask 1044480  }
  0x12   :  { %90 = vst.msk [vmem:[#allocation2 + $0x98] sm:$0x3] %vm84_vm1, %v4566_v0  ;;  %vm1198_vm10 = vcmask 1045504   ;;  %vm854_vm11 = vcmask 167056   ;;  %vm967_vm12 = vcmask 191656   ;;  %vm1080_vm13 = vcmask 216256  }
  0x13   :  { %91 = vst.msk [vmem:[#allocation2 + $0x130] sm:$0xff] %vm82_vm0, %v4566_v0  ;;  %vm1172_vm14 = vcmask 220160   ;;  %vm1573_vm15 = vcmask 128000  }
  0x14   :  { %92 = vst.msk [vmem:[#allocation2 + $0x138] sm:$0x3] %vm84_vm1, %v4566_v0  ;;  %v143_v42 = vld [vmem:[#allocation2] sm:$0xff]  ;;  %vm1580_vm1 = vcmask 122880  }
  0x15   :  { %v305_v2 = vld [vmem:[#allocation2 + $0x2] sm:$0xff]  ;;  %95 = vst.msk [vmem:[#allocation2 + $0x10] sm:$0x1] %vm94_vm2, %v4566_v0  ;;  %v159_v43 = vpack.c.bf16 %v143_v42, %v143_v42 }
  0x16   :  { %v192_v3 = vld [vmem:[#allocation2 + $0x1] sm:$0xff]  ;;  %v321_v4 = vpack.c.bf16 %v305_v2, %v305_v2  ;;  %127 = vst.msk [vmem:[#allocation2 + $0x11] sm:$0xff] %vm82_vm0, %v66_v1 }
  0x17   :  { %v208_v5 = vpack.c.bf16 %v192_v3, %v192_v3  ;;  %96 = vst.msk [vmem:[#allocation2 + $0x20] sm:$0x1] %vm94_vm2, %v4566_v0  ;;  %v3803_v1 = vld [vmem:[%s5458_s1 + $0x8] sm:$0xf]  ;;  %v4338_v2 = vld [vmem:[%s5458_s1 + $0x8] sm:$0x30] }
  0x18   :  { %353 = vrot.lane.b32.xlu1 %v321_v4, %s4567_s23  ;;  %97 = vst.msk [vmem:[#allocation2 + $0x30] sm:$0x1] %vm94_vm2, %v4566_v0  ;;  %v3804_v4 = vor.u32 %v4338_v2, %v3803_v1  ;;  %v76_v42 = vld [vmem:[%s5457_s0 + $0x50] sm:$0xff] }
  0x19   :  { %240 = vrot.lane.b32.xlu0 %v208_v5, %s4568_s24  ;;  %98 = vst.msk [vmem:[#allocation2 + $0x40] sm:$0x1] %vm94_vm2, %v4566_v0  ;;  %v4575_v5 = vmov 65535  }
  0x1a   :  { %99 = vst.msk [vmem:[#allocation2 + $0x50] sm:$0x1] %vm94_vm2, %v4566_v0 }
  0x1b   :  { %100 = vst.msk [vmem:[#allocation2 + $0x60] sm:$0x1] %vm94_vm2, %v4566_v0 }
  0x1c   :  { %101 = vst.msk [vmem:[#allocation2 + $0x70] sm:$0x1] %vm94_vm2, %v4566_v0 }
  0x1d   :  { %v418_v6 = vld [vmem:[#allocation2 + $0x10] sm:$0xff]  ;;  %102 = vst.msk [vmem:[#allocation2 + $0x80] sm:$0x1] %vm94_vm2, %v4566_v0 }
  0x1e   :  { %v193_v7 = vld [vmem:[#allocation2 + $0x11] sm:$0xff]  ;;  %v4675_v8 = vpack.c.bf16 %v418_v6, %v418_v6  ;;  %103 = vst.msk [vmem:[#allocation2 + $0xb0] sm:$0x1] %vm94_vm2, %v4566_v0  ;;  %v1199_v6 = vsel %vm1197_vm9, 4294967295, %v4575_v5  ;;  %vm1665_vm9 = vcmask 1043459  }
  0x1f   :  { %v209_v9 = vpack.c.bf16 %v193_v7, %v193_v7  ;;  %104 = vst.msk [vmem:[#allocation2 + $0xc0] sm:$0x1] %vm94_vm2, %v4566_v0  ;;  %v1200_v7 = vsel %vm1198_vm10, %v1199_v6, 0 }
  0x20   :  { %466 = vrot.lane.b32.xlu2 %v4675_v8, %s4569_s25  ;;  %105 = vst.msk [vmem:[#allocation2 + $0xd0] sm:$0x1] %vm94_vm2, %v4566_v0 }
  0x21   :  { %242 = vrot.lane.b32.xlu0 %v209_v9, %s4568_s24  ;;  %106 = vst.msk [vmem:[#allocation2 + $0xe0] sm:$0x1] %vm94_vm2, %v4566_v0 }
  0x22   :  { %107 = vst.msk [vmem:[#allocation2 + $0xf0] sm:$0x1] %vm94_vm2, %v4566_v0 }
  0x23   :  { %108 = vst.msk [vmem:[#allocation2 + $0x100] sm:$0x1] %vm94_vm2, %v4566_v0 }
  0x24   :  { %109 = vst.msk [vmem:[#allocation2 + $0x110] sm:$0x1] %vm94_vm2, %v4566_v0 }
  0x25   :  { %110 = vst.msk [vmem:[#allocation2 + $0x120] sm:$0x1] %vm94_vm2, %v4566_v0 }
  0x26   :  { %111 = vst.msk [vmem:[#allocation2 + $0x19] sm:$0x1] %vm94_vm2, %v4566_v0 }
  0x27   :  { %112 = vst.msk [vmem:[#allocation2 + $0x29] sm:$0x1] %vm94_vm2, %v4566_v0 }
  0x28   :  { %113 = vst.msk [vmem:[#allocation2 + $0x39] sm:$0x1] %vm94_vm2, %v4566_v0 }
  0x29   :  { %579 = vrot.lane.b32.xlu0 %v209_v9, %s4570_s26  ;;  %114 = vst.msk [vmem:[#allocation2 + $0x49] sm:$0x1] %vm94_vm2, %v4566_v0  ;;  %v1202_v9 = vand.u32 %v3804_v4, %v1200_v7 }
  0x2a   :  { %115 = vst.msk [vmem:[#allocation2 + $0x59] sm:$0x1] %vm94_vm2, %v4566_v0 }
  0x2b   :  { %116 = vst.msk [vmem:[#allocation2 + $0x69] sm:$0x1] %vm94_vm2, %v4566_v0  ;;  %1210 = vmatpush.bf16.msra.mxu0 %v1202_v9 }
  0x2c   :  { %117 = vst.msk [vmem:[#allocation2 + $0x79] sm:$0x1] %vm94_vm2, %v4566_v0 }
  0x2d   :  { %118 = vst.msk [vmem:[#allocation2 + $0x89] sm:$0x1] %vm94_vm2, %v4566_v0  ;;  %v306_v10 = vld [vmem:[#allocation2 + $0x12] sm:$0xff] }
  0x2e   :  { %119 = vst.msk [vmem:[#allocation2 + $0xb9] sm:$0x1] %vm94_vm2, %v4566_v0  ;;  %v322_v11 = vpack.c.bf16 %v306_v10, %v306_v10  ;;  %v4337_v10 = vld [vmem:[%s5458_s1] sm:$0xff] }
  0x2f   :  { %120 = vst.msk [vmem:[#allocation2 + $0xc9] sm:$0x1] %vm94_vm2, %v4566_v0  ;;  %1211 = vmatpush.bf16.msra.mxu0 %v4337_v10 }
  0x30   :  { %121 = vst.msk [vmem:[#allocation2 + $0xd9] sm:$0x1] %vm94_vm2, %v4566_v0  ;;  %355 = vrot.lane.b32.xlu1 %v322_v11, %s4567_s23 }
  0x31   :  { %122 = vst.msk [vmem:[#allocation2 + $0xe9] sm:$0x1] %vm94_vm2, %v4566_v0 }
  0x32   :  { %123 = vst.msk [vmem:[#allocation2 + $0xf9] sm:$0x1] %vm94_vm2, %v4566_v0 }
  0x33   :  { %124 = vst.msk [vmem:[#allocation2 + $0x109] sm:$0x1] %vm94_vm2, %v4566_v0 }
  0x34   :  { %125 = vst.msk [vmem:[#allocation2 + $0x119] sm:$0x1] %vm94_vm2, %v4566_v0 }
  0x35   :  { %126 = vst.msk [vmem:[#allocation2 + $0x129] sm:$0x1] %vm94_vm2, %v4566_v0  ;;  %vm1661_vm2 = vcmask 1041409  }
  0x36   :  { %128 = vst.msk [vmem:[#allocation2 + $0x21] sm:$0xff] %vm82_vm0, %v67_v12 }
  0x37   :  { %129 = vst.msk [vmem:[#allocation2 + $0x31] sm:$0xff] %vm82_vm0, %v68_v13 }
  0x38   :  { %130 = vst.msk [vmem:[#allocation2 + $0x41] sm:$0xff] %vm82_vm0, %v69_v20 }
  0x39   :  { %131 = vst.msk [vmem:[#allocation2 + $0x51] sm:$0xff] %vm82_vm0, %v70_v27 }
  0x3a   :  { %132 = vst.msk [vmem:[#allocation2 + $0x61] sm:$0xff] %vm82_vm0, %v71_v30 }
  0x3b   :  { %133 = vst.msk [vmem:[#allocation2 + $0x71] sm:$0xff] %vm82_vm0, %v72_v37 }
  0x3c   :  { %176 = vst.msk [vmem:[#allocation3] sm:$0xf] %vm175_vm3, %v159_v43  ;;  %v200_v43 = vld [vmem:[#allocation2 + $0xa1] sm:$0xff] }
  0x3d   :  { %v419_v14 = vld [vmem:[#allocation2 + $0x20] sm:$0xff]  ;;  %177 = vst.msk [vmem:[#allocation3 + $0x4] sm:$0xf] %vm175_vm3, %v4675_v8 }
  0x3e   :  { %v532_v15 = vld [vmem:[#allocation2 + $0x21] sm:$0xff]  ;;  %v4738_v17 = vpack.c.bf16 %v419_v14, %v419_v14  ;;  %v759_v21 = vld [vmem:[#allocation2 + $0x30] sm:$0xff]  ;;  %134 = vst.msk [vmem:[#allocation2 + $0x81] sm:$0xff] %vm82_vm0, %v73_v54  ;;  %v74_v14 = vld [vmem:[%s5457_s0 + $0x40] sm:$0xff] }
  0x3f   :  { %v645_v16 = vld [vmem:[#allocation2 + $0x22] sm:$0xff]  ;;  %v548_v18 = vpack.c.bf16 %v532_v15, %v532_v15  ;;  %v872_v22 = vld [vmem:[#allocation2 + $0x31] sm:$0xff]  ;;  %v775_v24 = vpack.c.bf16 %v759_v21, %v759_v21  ;;  %135 = vst.msk [vmem:[#allocation2 + $0xb1] sm:$0xff] %vm82_vm0, %v74_v14 }
  0x40   :  { %v661_v19 = vpack.c.bf16 %v645_v16, %v645_v16  ;;  %468 = vrot.lane.b32.xlu2 %v4738_v17, %s4569_s25  ;;  %v985_v23 = vld [vmem:[#allocation2 + $0x32] sm:$0xff]  ;;  %v888_v25 = vpack.c.bf16 %v872_v22, %v872_v22  ;;  %v421_v28 = vld [vmem:[#allocation2 + $0x40] sm:$0xff]  ;;  %178 = vst.msk [vmem:[#allocation3 + $0x8] sm:$0xf] %vm175_vm3, %v4738_v17 }
  0x41   :  { %581 = vrot.lane.b32.xlu1 %v548_v18, %s4570_s26  ;;  %v1001_v26 = vpack.c.bf16 %v985_v23, %v985_v23  ;;  %v437_v29 = vpack.c.bf16 %v421_v28, %v421_v28  ;;  %v534_v31 = vld [vmem:[#allocation2 + $0x41] sm:$0xff]  ;;  %v761_v33 = vld [vmem:[#allocation2 + $0x50] sm:$0xff]  ;;  %179 = vst.msk [vmem:[#allocation3 + $0xc] sm:$0xf] %vm175_vm3, %v775_v24 }
  0x42   :  { %694 = vrot.lane.b32.xlu0 %v661_v19, %s4571_s12  ;;  %v647_v32 = vld [vmem:[#allocation2 + $0x42] sm:$0xff]  ;;  %v550_v34 = vpack.c.bf16 %v534_v31, %v534_v31  ;;  %v777_v36 = vpack.c.bf16 %v761_v33, %v761_v33  ;;  %v874_v38 = vld [vmem:[#allocation2 + $0x51] sm:$0xff]  ;;  %137 = vst.msk [vmem:[#allocation2 + $0xd1] sm:$0xff] %vm82_vm0, %v76_v42 }
  0x43   :  { %v663_v35 = vpack.c.bf16 %v647_v32, %v647_v32  ;;  %v987_v39 = vld [vmem:[#allocation2 + $0x52] sm:$0xff]  ;;  %v890_v40 = vpack.c.bf16 %v874_v38, %v874_v38  ;;  %v423_v45 = vld [vmem:[#allocation2 + $0x60] sm:$0xff]  ;;  %180 = vst.msk [vmem:[#allocation3 + $0x10] sm:$0xf] %vm175_vm3, %v437_v29 }
  0x44   :  { %v1003_v41 = vpack.c.bf16 %v987_v39, %v987_v39  ;;  %v763_v44 = vld [vmem:[#allocation2 + $0x70] sm:$0xff]  ;;  %v439_v47 = vpack.c.bf16 %v423_v45, %v423_v45  ;;  %181 = vst.msk [vmem:[#allocation3 + $0x14] sm:$0xf] %vm175_vm3, %v777_v36  ;;  %v536_v48 = vld [vmem:[#allocation2 + $0x61] sm:$0xff] }
  0x45   :  { %v4791_v46 = vpack.c.bf16 %v763_v44, %v763_v44  ;;  %v552_v52 = vpack.c.bf16 %v536_v48, %v536_v48  ;;  %v649_v55 = vld [vmem:[#allocation2 + $0x62] sm:$0xff]  ;;  %v876_v57 = vld [vmem:[#allocation2 + $0x71] sm:$0xff]  ;;  %v216_v48 = vpack.c.bf16 %v200_v43, %v200_v43  ;;  %1574 = vst.msk [vmem:[#allocation4] sm:$0x3f] %vm1573_vm15, %v4566_v0 }
  0x46   :  { %182 = vst.msk [vmem:[#allocation3 + $0x18] sm:$0xf] %vm175_vm3, %v439_v47  ;;  %v665_v59 = vpack.c.bf16 %v649_v55, %v649_v55  ;;  %v892_v60 = vpack.c.bf16 %v876_v57, %v876_v57  ;;  %v989_v63 = vld [vmem:[#allocation2 + $0x72] sm:$0xff]  ;;  %v425_v15 = vld [vmem:[#allocation2 + $0x80] sm:$0xff] }
  0x47   :  { %183 = vst.msk [vmem:[#allocation3 + $0x1c] sm:$0xf] %vm175_vm3, %v4791_v46  ;;  %v1005_v8 = vpack.c.bf16 %v989_v63, %v989_v63  ;;  %v538_v16 = vld [vmem:[#allocation2 + $0x81] sm:$0xff]  ;;  %v441_v21 = vpack.c.bf16 %v425_v15, %v425_v15  ;;  %v426_v28 = vld [vmem:[#allocation2 + $0xb0] sm:$0xff] }
  0x48   :  { %692 = vrot.lane.b32.xlu2 %v322_v11, %s4571_s12  ;;  %v554_v22 = vpack.c.bf16 %v538_v16, %v538_v16  ;;  %v765_v32 = vld [vmem:[#allocation2 + $0x90] sm:$0xff]  ;;  %1575 = vst.msk [vmem:[#allocation4 + $0x30] sm:$0x3f] %vm1573_vm15, %v4566_v0 }
  0x49   :  { %806 = vrot.lane.b32.xlu1 %v4738_v17, %s4572_s13  ;;  %v878_v33 = vld [vmem:[#allocation2 + $0x91] sm:$0xff]  ;;  %v781_v39 = vpack.c.bf16 %v765_v32, %v765_v32  ;;  %1577 = vst.msk [vmem:[#allocation4 + $0x28] sm:$0x3f] %vm1573_vm15, %v4566_v0 }
  0x4a   :  { %919 = vrot.lane.b32.xlu0 %v548_v18, %s4573_s14  ;;  %v993_v14 = vld [vmem:[#allocation2 + $0xd2] sm:$0xff]  ;;  %1581 = vst.msk [vmem:[#allocation4 + $0x8] sm:$0x1] %vm1580_vm1, %v4566_v0 }
  0x4b   :  { %1589 = vst.msk [vmem:[#allocation4 + $0xd] sm:$0x1] %vm1580_vm1, %v4566_v0 }
  0x4c   :  { %1578 = vst.msk [vmem:[#allocation4 + $0x58] sm:$0x3f] %vm1573_vm15, %v4566_v0  ;;  %vm1696_vm15 = vcmask 125952  }
  0x4d   :  { %1582 = vst.msk [vmem:[#allocation4 + $0x10] sm:$0x1] %vm1580_vm1, %v4566_v0 }
  0x4e   :  { %1583 = vst.msk [vmem:[#allocation4 + $0x18] sm:$0x1] %vm1580_vm1, %v4566_v0 }
  0x4f   :  { %1584 = vst.msk [vmem:[#allocation4 + $0x20] sm:$0x1] %vm1580_vm1, %v4566_v0 }
  0x50   :  { %808 = vrot.lane.b32.xlu2 %v775_v24, %s4572_s13  ;;  %1585 = vst.msk [vmem:[#allocation4 + $0x38] sm:$0x1] %vm1580_vm1, %v4566_v0 }
  0x51   :  { %921 = vrot.lane.b32.xlu1 %v888_v25, %s4573_s14  ;;  %1586 = vst.msk [vmem:[#allocation4 + $0x40] sm:$0x1] %vm1580_vm1, %v4566_v0 }
  0x52   :  { %1034 = vrot.lane.b32.xlu0 %v1001_v26, %s4574_s17  ;;  %1587 = vst.msk [vmem:[#allocation4 + $0x48] sm:$0x1] %vm1580_vm1, %v4566_v0 }
  0x53   :  { %1588 = vst.msk [vmem:[#allocation4 + $0x50] sm:$0x1] %vm1580_vm1, %v4566_v0 }
  0x54   :  { %1590 = vst.msk [vmem:[#allocation4 + $0x15] sm:$0x1] %vm1580_vm1, %v4566_v0 }
  0x55   :  { %1591 = vst.msk [vmem:[#allocation4 + $0x1d] sm:$0x1] %vm1580_vm1, %v4566_v0 }
  0x56   :  { %1592 = vst.msk [vmem:[#allocation4 + $0x25] sm:$0x1] %vm1580_vm1, %v4566_v0 }
  0x57   :  { %1593 = vst.msk [vmem:[#allocation4 + $0x3d] sm:$0x1] %vm1580_vm1, %v4566_v0 }
  0x58   :  { %1032 = vrot.lane.b32.xlu2 %v661_v19, %s4574_s17  ;;  %1594 = vst.msk [vmem:[#allocation4 + $0x45] sm:$0x1] %vm1580_vm1, %v4566_v0 }
  0x59   :  { %244 = vrot.lane.b32.xlu1 %v548_v18, %s4568_s24  ;;  %1595 = vst.msk [vmem:[#allocation4 + $0x4d] sm:$0x1] %vm1580_vm1, %v4566_v0 }
  0x5a   :  { %357 = vrot.lane.b32.xlu0 %v661_v19, %s4567_s23  ;;  %v651_v19 = vld [vmem:[#allocation2 + $0x82] sm:$0xff]  ;;  %1596 = vst.msk [vmem:[#allocation4 + $0x55] sm:$0x1] %vm1580_vm1, %v4566_v0  ;;  %vm2511_vm1 = vcmask 254976  }
  0x5b   :  { %v667_v23 = vpack.c.bf16 %v651_v19, %v651_v19 }
  0x60   :  { %246 = vrot.lane.b32.xlu2 %v888_v25, %s4568_s24 }
  0x61   :  { %359 = vrot.lane.b32.xlu1 %v1001_v26, %s4567_s23 }
  0x62   :  { %472 = vrot.lane.b32.xlu0 %v437_v29, %s4569_s25 }
  0x68   :  { %470 = vrot.lane.b32.xlu2 %v775_v24, %s4569_s25  ;;  %v75_v24 = vld [vmem:[%s5457_s0 + $0x48] sm:$0xff] }
  0x69   :  { %583 = vrot.lane.b32.xlu1 %v888_v25, %s4570_s26  ;;  %136 = vst.msk [vmem:[#allocation2 + $0xc1] sm:$0xff] %vm82_vm0, %v75_v24 }
  0x6a   :  { %696 = vrot.lane.b32.xlu0 %v1001_v26, %s4571_s12 }
  0x70   :  { %585 = vrot.lane.b32.xlu2 %v550_v34, %s4570_s26  ;;  %v427_v30 = vld [vmem:[#allocation2 + $0xc0] sm:$0xff] }
  0x71   :  { %698 = vrot.lane.b32.xlu1 %v663_v35, %s4571_s12  ;;  %v4865_v31 = vpack.c.bf16 %v427_v30, %v427_v30  ;;  %v540_v63 = vld [vmem:[#allocation2 + $0xc1] sm:$0xff] }
  0x72   :  { %812 = vrot.lane.b32.xlu0 %v777_v36, %s4572_s13  ;;  %v653_v1 = vld [vmem:[#allocation2 + $0xc2] sm:$0xff]  ;;  %v556_v5 = vpack.c.bf16 %v540_v63, %v540_v63 }
  0x73   :  { %186 = vst.msk [vmem:[#allocation3 + $0x28] sm:$0xf] %vm175_vm3, %v4865_v31  ;;  %v669_v6 = vpack.c.bf16 %v653_v1, %v653_v1 }
  0x78   :  { %810 = vrot.lane.b32.xlu2 %v437_v29, %s4572_s13  ;;  %v4863_v29 = vpack.c.bf16 %v426_v28, %v426_v28 }
  0x79   :  { %923 = vrot.lane.b32.xlu1 %v550_v34, %s4573_s14 }
  0x7a   :  { %1036 = vrot.lane.b32.xlu0 %v663_v35, %s4574_s17  ;;  %v467_v51 = vpop.permute.xlu2 %466  ;;  %185 = vst.msk [vmem:[#allocation3 + $0x24] sm:$0xf] %vm175_vm3, %v4863_v29 }
  0x80   :  { %925 = vrot.lane.b32.xlu2 %v890_v40, %s4573_s14 }
  0x81   :  { %1038 = vrot.lane.b32.xlu1 %v1003_v41, %s4574_s17 }
  0x82   :  { %250 = vrot.lane.b32.xlu0 %v890_v40, %s4568_s24 }
  0x88   :  { %248 = vrot.lane.b32.xlu2 %v550_v34, %s4568_s24 }
  0x89   :  { %361 = vrot.lane.b32.xlu1 %v663_v35, %s4567_s23 }
  0x8a   :  { %474 = vrot.lane.b32.xlu0 %v777_v36, %s4569_s25  ;;  %v354_v49 = vpop.permute.xlu1 %353  ;;  %v991_v36 = vld [vmem:[#allocation2 + $0x92] sm:$0xff] }
  0x8b   :  { %v241_v50 = vpop.permute.xlu0 %240 }
  0x8c   :  { %289 = vst.msk [vmem:[#allocation3] sm:$0xf] %vm288_vm4, %v241_v50  ;;  %v767_v50 = vld [vmem:[#allocation2 + $0xd0] sm:$0xff] }
  0x8d   :  { %402 = vst.msk [vmem:[#allocation3] sm:$0xf] %vm401_vm5, %v354_v49 }
  0x8e   :  { %515 = vst.msk [vmem:[#allocation3] sm:$0xf] %vm514_vm6, %v467_v51  ;;  %v4888_v51 = vpack.c.bf16 %v767_v50, %v767_v50 }
  0x90   :  { %363 = vrot.lane.b32.xlu2 %v1003_v41, %s4567_s23  ;;  %187 = vst.msk [vmem:[#allocation3 + $0x2c] sm:$0xf] %vm175_vm3, %v4888_v51 }
  0x91   :  { %476 = vrot.lane.b32.xlu1 %v439_v47, %s4569_s25 }
  0x92   :  { %589 = vrot.lane.b32.xlu0 %v552_v52, %s4570_s26 }
  0x93   :  { %v243_v53 = vpop.permute.xlu0 %242 }
  0x94   :  { %290 = vst.msk [vmem:[#allocation3 + $0x4] sm:$0xf] %vm288_vm4, %v243_v53  ;;  %v314_v53 = vld [vmem:[#allocation2 + $0xb2] sm:$0xff] }
  0x98   :  { %587 = vrot.lane.b32.xlu2 %v890_v40, %s4570_s26  ;;  %v894_v40 = vpack.c.bf16 %v878_v33, %v878_v33 }
  0x99   :  { %700 = vrot.lane.b32.xlu1 %v1003_v41, %s4571_s12  ;;  %v1007_v41 = vpack.c.bf16 %v991_v36, %v991_v36 }
  0x9a   :  { %814 = vrot.lane.b32.xlu0 %v439_v47, %s4572_s13  ;;  %v469_v56 = vpop.permute.xlu2 %468 }
  0x9b   :  { %v580_v58 = vpop.permute.xlu0 %579 }
  0x9c   :  { %628 = vst.msk [vmem:[#allocation3] sm:$0xf] %vm627_vm7, %v580_v58  ;;  %v330_v58 = vpack.c.bf16 %v314_v53, %v314_v53 }
  0xa0   :  { %702 = vrot.lane.b32.xlu2 %v665_v59, %s4571_s12 }
  0xa1   :  { %816 = vrot.lane.b32.xlu1 %v4791_v46, %s4572_s13 }
  0xa2   :  { %929 = vrot.lane.b32.xlu0 %v892_v60, %s4573_s14  ;;  %v693_v61 = vpop.permute.xlu2 %692  ;;  %v356_v62 = vpop.permute.xlu1 %355 }
  0xa3   :  { %403 = vst.msk [vmem:[#allocation3 + $0x4] sm:$0xf] %vm401_vm5, %v356_v62  ;;  %v77_v62 = vld [vmem:[%s5457_s0 + $0x58] sm:$0xff] }
  0xa4   :  { %516 = vst.msk [vmem:[#allocation3 + $0x4] sm:$0xf] %vm514_vm6, %v469_v56 }
  0xa5   :  { %741 = vst.msk [vmem:[#allocation3] sm:$0xf] %vm740_vm8, %v693_v61 }
  0xa6   :  { %138 = vst.msk [vmem:[#allocation2 + $0xe1] sm:$0xff] %vm82_vm0, %v77_v62 }
  0xa8   :  { %927 = vrot.lane.b32.xlu2 %v552_v52, %s4573_s14 }
  0xa9   :  { %1040 = vrot.lane.b32.xlu1 %v665_v59, %s4574_s17 }
  0xaa   :  { %252 = vrot.lane.b32.xlu0 %v552_v52, %s4568_s24  ;;  %v809_v3 = vpop.permute.xlu2 %808  ;;  %v201_v52 = vld [vmem:[#allocation2 + $0xb1] sm:$0xff] }
  0xab   :  { %v217_v57 = vpack.c.bf16 %v201_v52, %v201_v52 }
  0xad   :  { %v429_v7 = vld [vmem:[#allocation2 + $0xe0] sm:$0xff] }
  0xae   :  { %v542_v28 = vld [vmem:[#allocation2 + $0xe1] sm:$0xff] }
  0xaf   :  { %v558_v30 = vpack.c.bf16 %v542_v28, %v542_v28 }
  0xb0   :  { %1042 = vrot.lane.b32.xlu2 %v1005_v8, %s4574_s17 }
  0xb1   :  { %254 = vrot.lane.b32.xlu1 %v892_v60, %s4568_s24 }
  0xb2   :  { %367 = vrot.lane.b32.xlu0 %v1005_v8, %s4567_s23  ;;  %v1033_v11 = vpop.permute.xlu2 %1032 }
  0xb3   :  { %v582_v12 = vpop.permute.xlu1 %581 }
  0xb4   :  { %629 = vst.msk [vmem:[#allocation3 + $0x4] sm:$0xf] %vm627_vm7, %v582_v12  ;;  %v695_v13 = vpop.permute.xlu0 %694  ;;  %v78_v12 = vld [vmem:[%s5457_s0 + $0x60] sm:$0xff] }
  0xb5   :  { %742 = vst.msk [vmem:[#allocation3 + $0x4] sm:$0xf] %vm740_vm8, %v695_v13  ;;  %v880_v13 = vld [vmem:[#allocation2 + $0xd1] sm:$0xff] }
  0xb6   :  { %856 = vst.msk [vmem:[#allocation3 + $0x4] sm:$0xf] %vm854_vm11, %v809_v3  ;;  %v896_v19 = vpack.c.bf16 %v880_v13, %v880_v13 }
  0xb7   :  { %139 = vst.msk [vmem:[#allocation2 + $0xf1] sm:$0xff] %vm82_vm0, %v78_v12 }
  0xb8   :  { %365 = vrot.lane.b32.xlu2 %v665_v59, %s4567_s23 }
  0xb9   :  { %478 = vrot.lane.b32.xlu1 %v4791_v46, %s4569_s25  ;;  %v313_v46 = vld [vmem:[#allocation2 + $0xa2] sm:$0xff] }
  0xba   :  { %591 = vrot.lane.b32.xlu0 %v892_v60, %s4570_s26  ;;  %v247_v17 = vpop.permute.xlu2 %246  ;;  %v329_v49 = vpack.c.bf16 %v313_v46, %v313_v46 }
  0xbb   :  { %v807_v18 = vpop.permute.xlu1 %806  ;;  %292 = vst.msk [vmem:[#allocation3 + $0xc] sm:$0xf] %vm288_vm4, %v247_v17 }
  0xbc   :  { %v920_v20 = vpop.permute.xlu0 %919  ;;  %855 = vst.msk [vmem:[#allocation3] sm:$0xf] %vm854_vm11, %v807_v18 }
  0xbd   :  { %968 = vst.msk [vmem:[#allocation3] sm:$0xf] %vm967_vm12, %v920_v20  ;;  %v1009_v20 = vpack.c.bf16 %v993_v14, %v993_v14  ;;  %v5054_v14 = vld [vmem:[%s5459_s2] ss:$0 sm:$0xff] }
  0xbe   :  { %1081 = vst.msk [vmem:[#allocation3] sm:$0xf] %vm1080_vm13, %v1033_v11  ;;  %v995_v50 = vld [vmem:[#allocation2 + $0xf2] sm:$0xff] }
  0xc0   :  { %480 = vrot.lane.b32.xlu2 %v441_v21, %s4569_s25 }
  0xc1   :  { %593 = vrot.lane.b32.xlu1 %v554_v22, %s4570_s26 }
  0xc2   :  { %706 = vrot.lane.b32.xlu0 %v667_v23, %s4571_s12  ;;  %v471_v25 = vpop.permute.xlu2 %470 }
  0xc3   :  { %v922_v26 = vpop.permute.xlu1 %921 }
  0xc4   :  { %969 = vst.msk [vmem:[#allocation3 + $0x4] sm:$0xf] %vm967_vm12, %v922_v26  ;;  %v1035_v27 = vpop.permute.xlu0 %1034 }
  0xc5   :  { %1082 = vst.msk [vmem:[#allocation3 + $0x4] sm:$0xf] %vm1080_vm13, %v1035_v27 }
  0xc8   :  { %704 = vrot.lane.b32.xlu2 %v1005_v8, %s4571_s12  ;;  %v4916_v8 = vpack.c.bf16 %v429_v7, %v429_v7 }
  0xc9   :  { %818 = vrot.lane.b32.xlu1 %v441_v21, %s4572_s13  ;;  %v769_v21 = vld [vmem:[#allocation2 + $0xf0] sm:$0xff] }
  0xca   :  { %931 = vrot.lane.b32.xlu0 %v554_v22, %s4573_s14  ;;  %v586_v34 = vpop.permute.xlu2 %585  ;;  %188 = vst.msk [vmem:[#allocation3 + $0x30] sm:$0xf] %vm175_vm3, %v4916_v8  ;;  %v4939_v22 = vpack.c.bf16 %v769_v21, %v769_v21 }
  0xcb   :  { %v245_v35 = vpop.permute.xlu1 %244 }
  0xcc   :  { %291 = vst.msk [vmem:[#allocation3 + $0x8] sm:$0xf] %vm288_vm4, %v245_v35  ;;  %v358_v37 = vpop.permute.xlu0 %357  ;;  %v4329_v38 = vld [vmem:[#allocation3] sm:$0xff] }
  0xcd   :  { %404 = vst.msk [vmem:[#allocation3 + $0x8] sm:$0xf] %vm401_vm5, %v358_v37  ;;  %3805 = vmatmul.msk.bf16.vlgmr.msra.gmra.mxu0 %vm1172_vm14, %v4329_v38  ;;  %v655_v35 = vld [vmem:[#allocation2 + $0xe2] sm:$0xff]  ;;  %v882_v38 = vld [vmem:[#allocation2 + $0xf1] sm:$0xff] }
  0xce   :  { %517 = vst.msk [vmem:[#allocation3 + $0x8] sm:$0xf] %vm514_vm6, %v471_v25 }
  0xcf   :  { %189 = vst.msk [vmem:[#allocation3 + $0x34] sm:$0xf] %vm175_vm3, %v4939_v22 }
  0xd0   :  { %820 = vrot.lane.b32.xlu2 %v781_v39, %s4572_s13 }
  0xd1   :  { %933 = vrot.lane.b32.xlu1 %v894_v40, %s4573_s14  ;;  %v671_v40 = vpack.c.bf16 %v655_v35, %v655_v35 }
  0xd2   :  { %1046 = vrot.lane.b32.xlu0 %v1007_v41, %s4574_s17  ;;  %v811_v44 = vpop.permute.xlu2 %810  ;;  %v898_v41 = vpack.c.bf16 %v882_v38, %v882_v38 }
  0xd3   :  { %v360_v45 = vpop.permute.xlu1 %359 }
  0xd4   :  { %405 = vst.msk [vmem:[#allocation3 + $0xc] sm:$0xf] %vm401_vm5, %v360_v45  ;;  %v473_v47 = vpop.permute.xlu0 %472 }
  0xd5   :  { %518 = vst.msk [vmem:[#allocation3 + $0xc] sm:$0xf] %vm514_vm6, %v473_v47 }
  0xd6   :  { %631 = vst.msk [vmem:[#allocation3 + $0xc] sm:$0xf] %vm627_vm7, %v586_v34  ;;  %v79_v34 = vld [vmem:[%s5457_s0 + $0x68] sm:$0xff] }
  0xd7   :  { %140 = vst.msk [vmem:[#allocation2 + $0x101] sm:$0xff] %vm82_vm0, %v79_v34 }
  0xd8   :  { %1044 = vrot.lane.b32.xlu2 %v667_v23, %s4574_s17 }
  0xd9   :  { %256 = vrot.lane.b32.xlu1 %v216_v48, %s4568_s24  ;;  %v80_v48 = vld [vmem:[%s5457_s0 + $0x70] sm:$0xff] }
  0xda   :  { %369 = vrot.lane.b32.xlu0 %v329_v49, %s4567_s23  ;;  %v926_v54 = vpop.permute.xlu2 %925  ;;  %141 = vst.msk [vmem:[#allocation2 + $0x111] sm:$0xff] %vm82_vm0, %v80_v48  ;;  %v151_v49 = vld [vmem:[#allocation2 + $0xa0] sm:$0xff] }
  0xdb   :  { %v584_v55 = vpop.permute.xlu1 %583  ;;  %v167_v53 = vpack.c.bf16 %v151_v49, %v151_v49 }
  0xdc   :  { %630 = vst.msk [vmem:[#allocation3 + $0x8] sm:$0xf] %vm627_vm7, %v584_v55  ;;  %v697_v56 = vpop.permute.xlu0 %696  ;;  %v1011_v55 = vpack.c.bf16 %v995_v50, %v995_v50 }
  0xdd   :  { %743 = vst.msk [vmem:[#allocation3 + $0x8] sm:$0xf] %vm740_vm8, %v697_v56 }
  0xde   :  { %857 = vst.msk [vmem:[#allocation3 + $0x8] sm:$0xf] %vm854_vm11, %v811_v44  ;;  %v431_v42 = vld [vmem:[#allocation2 + $0x100] sm:$0xff] }
  0xdf   :  { %v4974_v43 = vpack.c.bf16 %v431_v42, %v431_v42  ;;  %184 = vst.msk [vmem:[#allocation3 + $0x20] sm:$0xf] %vm175_vm3, %v167_v53  ;;  %v657_v1 = vld [vmem:[#allocation2 + $0x102] sm:$0xff] }
  0xe0   :  { %258 = vrot.lane.b32.xlu2 %v217_v57, %s4568_s24 }
  0xe1   :  { %371 = vrot.lane.b32.xlu1 %v330_v58, %s4567_s23  ;;  %190 = vst.msk [vmem:[#allocation3 + $0x38] sm:$0xf] %vm175_vm3, %v4974_v43  ;;  %v771_v56 = vld [vmem:[#allocation2 + $0x110] sm:$0xff] }
  0xe2   :  { %484 = vrot.lane.b32.xlu0 %v4865_v31, %s4569_s25  ;;  %v249_v59 = vpop.permute.xlu2 %248  ;;  %v997_v12 = vld [vmem:[#allocation2 + $0x112] sm:$0xff] }
  0xe3   :  { %v699_v60 = vpop.permute.xlu1 %698  ;;  %293 = vst.msk [vmem:[#allocation3 + $0x10] sm:$0xf] %vm288_vm4, %v249_v59 }
  0xe4   :  { %v813_v61 = vpop.permute.xlu0 %812  ;;  %744 = vst.msk [vmem:[#allocation3 + $0xc] sm:$0xf] %vm740_vm8, %v699_v60 }
  0xe5   :  { %858 = vst.msk [vmem:[#allocation3 + $0xc] sm:$0xf] %vm854_vm11, %v813_v61  ;;  %v544_v61 = vld [vmem:[#allocation2 + $0x101] sm:$0xff] }
  0xe6   :  { %971 = vst.msk [vmem:[#allocation3 + $0xc] sm:$0xf] %vm967_vm12, %v926_v54 }
  0xe8   :  { %482 = vrot.lane.b32.xlu2 %v4863_v29, %s4569_s25 }
  0xe9   :  { %595 = vrot.lane.b32.xlu1 %v217_v57, %s4570_s26  ;;  %v4997_v57 = vpack.c.bf16 %v771_v56, %v771_v56 }
  0xea   :  { %708 = vrot.lane.b32.xlu0 %v330_v58, %s4571_s12  ;;  %v364_v2 = vpop.permute.xlu2 %363 }
  0xeb   :  { %v924_v3 = vpop.permute.xlu1 %923  ;;  %191 = vst.msk [vmem:[#allocation3 + $0x3c] sm:$0xf] %vm175_vm3, %v4997_v57  ;;  %vm1663_vm3 = vcmask 1042434  }
  0xec   :  { %970 = vst.msk [vmem:[#allocation3 + $0x8] sm:$0xf] %vm967_vm12, %v924_v3  ;;  %v1037_v4 = vpop.permute.xlu0 %1036  ;;  %v5013_v3 = vpack.c.bf16 %v544_v61, %v544_v61 }
  0xed   :  { %1083 = vst.msk [vmem:[#allocation3 + $0x8] sm:$0xf] %vm1080_vm13, %v1037_v4  ;;  %v5016_v4 = vpack.c.bf16 %v657_v1, %v657_v1 }
  0xf0   :  { %597 = vrot.lane.b32.xlu2 %v556_v5, %s4570_s26 }
  0xf1   :  { %710 = vrot.lane.b32.xlu1 %v669_v6, %s4571_s12 }
  0xf2   :  { %824 = vrot.lane.b32.xlu0 %v4888_v51, %s4572_s13  ;;  %v588_v9 = vpop.permute.xlu2 %587 }
  0xf3   :  { %v1039_v10 = vpop.permute.xlu1 %1038 }
  0xf4   :  { %1084 = vst.msk [vmem:[#allocation3 + $0xc] sm:$0xf] %vm1080_vm13, %v1039_v10  ;;  %v251_v11 = vpop.permute.xlu0 %250 }
  0xf5   :  { %294 = vst.msk [vmem:[#allocation3 + $0x14] sm:$0xf] %vm288_vm4, %v251_v11 }
  0xf6   :  { %407 = vst.msk [vmem:[#allocation3 + $0x14] sm:$0xf] %vm401_vm5, %v364_v2 }
  0xf8   :  { %822 = vrot.lane.b32.xlu2 %v4865_v31, %s4572_s13 }
  0xf9   :  { %935 = vrot.lane.b32.xlu1 %v556_v5, %s4573_s14 }
  0xfa   :  { %1048 = vrot.lane.b32.xlu0 %v669_v6, %s4574_s17  ;;  %v703_v15 = vpop.permute.xlu2 %702 }
  0xfb   :  { %v362_v16 = vpop.permute.xlu1 %361  ;;  %v4330_v17 = vld [vmem:[#allocation3 + $0x8] sm:$0xff] }
  0xfc   :  { %406 = vst.msk [vmem:[#allocation3 + $0x10] sm:$0xf] %vm401_vm5, %v362_v16  ;;  %v475_v18 = vpop.permute.xlu0 %474  ;;  %3806 = vmatmul.msk.bf16.gmra.mxu0 %vm1172_vm14, %v4330_v17 }
  0xfd   :  { %519 = vst.msk [vmem:[#allocation3 + $0x10] sm:$0xf] %vm514_vm6, %v475_v18  ;;  %v5061_v18 = vpack.c.bf16 %v997_v12, %v997_v12 }
  0xfe   :  { %632 = vst.msk [vmem:[#allocation3 + $0x10] sm:$0xf] %vm627_vm7, %v588_v9  ;;  %v884_v9 = vld [vmem:[#allocation2 + $0x111] sm:$0xff] }
  0xff   :  { %v5056_v17 = vpack.c.bf16 %v884_v9, %v884_v9  ;;  %v773_v9 = vld [vmem:[#allocation2 + $0x130] sm:$0xff] }
 0x100   :  { %937 = vrot.lane.b32.xlu2 %v896_v19, %s4573_s14 }
 0x101   :  { %1050 = vrot.lane.b32.xlu1 %v1009_v20, %s4574_s17 }
 0x102   :  { %262 = vrot.lane.b32.xlu0 %v896_v19, %s4568_s24  ;;  %v928_v23 = vpop.permute.xlu2 %927 }
 0x103   :  { %v477_v24 = vpop.permute.xlu1 %476 }
 0x104   :  { %520 = vst.msk [vmem:[#allocation3 + $0x14] sm:$0xf] %vm514_vm6, %v477_v24  ;;  %v590_v25 = vpop.permute.xlu0 %589 }
 0x105   :  { %633 = vst.msk [vmem:[#allocation3 + $0x14] sm:$0xf] %vm627_vm7, %v590_v25 }
 0x106   :  { %746 = vst.msk [vmem:[#allocation3 + $0x14] sm:$0xf] %vm740_vm8, %v703_v15 }
 0x108   :  { %260 = vrot.lane.b32.xlu2 %v556_v5, %s4568_s24 }
 0x109   :  { %373 = vrot.lane.b32.xlu1 %v669_v6, %s4567_s23 }
 0x10a   :  { %486 = vrot.lane.b32.xlu0 %v4888_v51, %s4569_s25  ;;  %v1043_v26 = vpop.permute.xlu2 %1042 }
 0x10b   :  { %v701_v27 = vpop.permute.xlu1 %700 }
 0x10c   :  { %745 = vst.msk [vmem:[#allocation3 + $0x10] sm:$0xf] %vm740_vm8, %v701_v27  ;;  %v815_v29 = vpop.permute.xlu0 %814 }
 0x10d   :  { %859 = vst.msk [vmem:[#allocation3 + $0x10] sm:$0xf] %vm854_vm11, %v815_v29 }
 0x10e   :  { %972 = vst.msk [vmem:[#allocation3 + $0x10] sm:$0xf] %vm967_vm12, %v928_v23 }
 0x110   :  { %375 = vrot.lane.b32.xlu2 %v1009_v20, %s4567_s23 }
 0x111   :  { %488 = vrot.lane.b32.xlu1 %v4916_v8, %s4569_s25 }
 0x112   :  { %601 = vrot.lane.b32.xlu0 %v558_v30, %s4570_s26  ;;  %v366_v31 = vpop.permute.xlu2 %365 }
 0x113   :  { %v817_v32 = vpop.permute.xlu1 %816 }
 0x114   :  { %860 = vst.msk [vmem:[#allocation3 + $0x14] sm:$0xf] %vm854_vm11, %v817_v32  ;;  %v930_v33 = vpop.permute.xlu0 %929 }
 0x115   :  { %973 = vst.msk [vmem:[#allocation3 + $0x14] sm:$0xf] %vm967_vm12, %v930_v33 }
 0x116   :  { %1086 = vst.msk [vmem:[#allocation3 + $0x14] sm:$0xf] %vm1080_vm13, %v1043_v26 }
 0x118   :  { %599 = vrot.lane.b32.xlu2 %v896_v19, %s4570_s26 }
 0x119   :  { %712 = vrot.lane.b32.xlu1 %v1009_v20, %s4571_s12 }
 0x11a   :  { %826 = vrot.lane.b32.xlu0 %v4916_v8, %s4572_s13  ;;  %v481_v36 = vpop.permute.xlu2 %480  ;;  %v1705_v8 = vld [vmem:[#allocation4] sm:$0xf] }
 0x11b   :  { %v1041_v37 = vpop.permute.xlu1 %1040  ;;  %1721 = vst [vmem:[#allocation1] ss:$2 sm:$0xff] %v1705_v8 }
 0x11c   :  { %1085 = vst.msk [vmem:[#allocation3 + $0x10] sm:$0xf] %vm1080_vm13, %v1041_v37  ;;  %v253_v39 = vpop.permute.xlu0 %252 }
 0x11d   :  { %295 = vst.msk [vmem:[#allocation3 + $0x18] sm:$0xf] %vm288_vm4, %v253_v39 }
 0x11e   :  { %408 = vst.msk [vmem:[#allocation3 + $0x18] sm:$0xf] %vm401_vm5, %v366_v31 }
 0x120   :  { %714 = vrot.lane.b32.xlu2 %v671_v40, %s4571_s12 }
 0x121   :  { %828 = vrot.lane.b32.xlu1 %v4939_v22, %s4572_s13 }
 0x122   :  { %941 = vrot.lane.b32.xlu0 %v898_v41, %s4573_s14  ;;  %v705_v44 = vpop.permute.xlu2 %704 }
 0x123   :  { %v255_v45 = vpop.permute.xlu1 %254  ;;  %v4331_v46 = vld [vmem:[#allocation3 + $0x10] sm:$0xff] }
 0x124   :  { %296 = vst.msk [vmem:[#allocation3 + $0x1c] sm:$0xf] %vm288_vm4, %v255_v45  ;;  %v368_v47 = vpop.permute.xlu0 %367  ;;  %3807 = vmatmul.msk.bf16.gmra.mxu0 %vm1172_vm14, %v4331_v46  ;;  %v81_v45 = vld [vmem:[%s5457_s0 + $0x78] sm:$0xff]  ;;  %s4576_s0 = smov 32  }
 0x125   :  { %409 = vst.msk [vmem:[#allocation3 + $0x1c] sm:$0xf] %vm401_vm5, %v368_v47 }
 0x126   :  { %522 = vst.msk [vmem:[#allocation3 + $0x1c] sm:$0xf] %vm514_vm6, %v481_v36 }
 0x127   :  { %142 = vst.msk [vmem:[#allocation2 + $0x121] sm:$0xff] %vm82_vm0, %v81_v45  ;;  %vm1811_vm0 = vcmask 257152  }
 0x128   :  { %939 = vrot.lane.b32.xlu2 %v558_v30, %s4573_s14 }
 0x129   :  { %1052 = vrot.lane.b32.xlu1 %v671_v40, %s4574_s17 }
 0x12a   :  { %264 = vrot.lane.b32.xlu0 %v558_v30, %s4568_s24  ;;  %v821_v51 = vpop.permute.xlu2 %820 }
 0x12b   :  { %v479_v52 = vpop.permute.xlu1 %478 }
 0x12c   :  { %521 = vst.msk [vmem:[#allocation3 + $0x18] sm:$0xf] %vm514_vm6, %v479_v52  ;;  %v592_v54 = vpop.permute.xlu0 %591 }
 0x12d   :  { %634 = vst.msk [vmem:[#allocation3 + $0x18] sm:$0xf] %vm627_vm7, %v592_v54 }
 0x12e   :  { %747 = vst.msk [vmem:[#allocation3 + $0x18] sm:$0xf] %vm740_vm8, %v705_v44 }
 0x130   :  { %1054 = vrot.lane.b32.xlu2 %v1011_v55, %s4574_s17 }
 0x131   :  { %266 = vrot.lane.b32.xlu1 %v898_v41, %s4568_s24 }
 0x132   :  { %379 = vrot.lane.b32.xlu0 %v1011_v55, %s4567_s23  ;;  %v1045_v58 = vpop.permute.xlu2 %1044 }
 0x133   :  { %v594_v59 = vpop.permute.xlu1 %593 }
 0x134   :  { %635 = vst.msk [vmem:[#allocation3 + $0x1c] sm:$0xf] %vm627_vm7, %v594_v59  ;;  %v707_v60 = vpop.permute.xlu0 %706 }
 0x135   :  { %748 = vst.msk [vmem:[#allocation3 + $0x1c] sm:$0xf] %vm740_vm8, %v707_v60  ;;  %v433_v60 = vld [vmem:[#allocation2 + $0x120] sm:$0xff] }
 0x136   :  { %862 = vst.msk [vmem:[#allocation3 + $0x1c] sm:$0xf] %vm854_vm11, %v821_v51  ;;  %v449_v61 = vpack.c.bf16 %v433_v60, %v433_v60 }
 0x138   :  { %377 = vrot.lane.b32.xlu2 %v671_v40, %s4567_s23 }
 0x139   :  { %490 = vrot.lane.b32.xlu1 %v4939_v22, %s4569_s25 }
 0x13a   :  { %603 = vrot.lane.b32.xlu0 %v898_v41, %s4570_s26  ;;  %v259_v62 = vpop.permute.xlu2 %258 }
 0x13b   :  { %v819_v63 = vpop.permute.xlu1 %818  ;;  %298 = vst.msk [vmem:[#allocation3 + $0x24] sm:$0xf] %vm288_vm4, %v259_v62  ;;  %v546_v62 = vld [vmem:[#allocation2 + $0x121] sm:$0xff] }
 0x13c   :  { %v932_v2 = vpop.permute.xlu0 %931  ;;  %861 = vst.msk [vmem:[#allocation3 + $0x18] sm:$0xf] %vm854_vm11, %v819_v63  ;;  %v659_v63 = vld [vmem:[#allocation2 + $0x122] sm:$0xff] }
 0x13d   :  { %974 = vst.msk [vmem:[#allocation3 + $0x18] sm:$0xf] %vm967_vm12, %v932_v2 }
 0x13e   :  { %1087 = vst.msk [vmem:[#allocation3 + $0x18] sm:$0xf] %vm1080_vm13, %v1045_v58 }
 0x140   :  { %492 = vrot.lane.b32.xlu2 %v4974_v43, %s4569_s25 }
 0x141   :  { %605 = vrot.lane.b32.xlu1 %v5013_v3, %s4570_s26 }
 0x142   :  { %718 = vrot.lane.b32.xlu0 %v5016_v4, %s4571_s12  ;;  %v483_v5 = vpop.permute.xlu2 %482 }
 0x143   :  { %v934_v6 = vpop.permute.xlu1 %933 }
 0x144   :  { %975 = vst.msk [vmem:[#allocation3 + $0x1c] sm:$0xf] %vm967_vm12, %v934_v6  ;;  %v1047_v7 = vpop.permute.xlu0 %1046  ;;  %v675_v6 = vpack.c.bf16 %v659_v63, %v659_v63 }
 0x145   :  { %1088 = vst.msk [vmem:[#allocation3 + $0x1c] sm:$0xf] %vm1080_vm13, %v1047_v7 }
 0x148   :  { %716 = vrot.lane.b32.xlu2 %v1011_v55, %s4571_s12 }
 0x149   :  { %830 = vrot.lane.b32.xlu1 %v4974_v43, %s4572_s13 }
 0x14a   :  { %943 = vrot.lane.b32.xlu0 %v5013_v3, %s4573_s14  ;;  %v598_v10 = vpop.permute.xlu2 %597  ;;  %v1213_v15 = vpop.f32.mrf.mxu0 }
 0x14b   :  { %v257_v11 = vpop.permute.xlu1 %256  ;;  %v1214_v19 = vadd.f32 %v5054_v14, %v1213_v15 }
 0x14c   :  { %297 = vst.msk [vmem:[#allocation3 + $0x20] sm:$0xf] %vm288_vm4, %v257_v11  ;;  %v370_v13 = vpop.permute.xlu0 %369  ;;  %v4332_v16 = vld [vmem:[#allocation3 + $0x18] sm:$0xff] }
 0x14d   :  { %410 = vst.msk [vmem:[#allocation3 + $0x20] sm:$0xf] %vm401_vm5, %v370_v13  ;;  %3808 = vmatmul.msk.bf16.gmra.mxu0 %vm1172_vm14, %v4332_v16  ;;  %v1253_v22 = vmax.f32 %v1214_v19, 0.0  ;;  %v789_v13 = vpack.c.bf16 %v773_v9, %v773_v9 }
 0x14e   :  { %523 = vst.msk [vmem:[#allocation3 + $0x20] sm:$0xf] %vm514_vm6, %v483_v5  ;;  %v562_v5 = vpack.c.bf16 %v546_v62, %v546_v62 }
 0x14f   :  { %v1285_v27 = vrot.slane %v1253_v22, 2  ;;  %v1286_v28 = vrot.slane %v1253_v22, 4  ;;  %v1287_v29 = vrot.slane %v1253_v22, 6 }
 0x150   :  { %832 = vrot.lane.b32.xlu2 %v4997_v57, %s4572_s13 }
 0x151   :  { %945 = vrot.lane.b32.xlu1 %v5056_v17, %s4573_s14 }
 0x152   :  { %1058 = vrot.lane.b32.xlu0 %v5061_v18, %s4574_s17  ;;  %v823_v20 = vpop.permute.xlu2 %822  ;;  %v1215_v24 = vpop.f32.mrf.mxu0 }
 0x153   :  { %v372_v21 = vpop.permute.xlu1 %371  ;;  %v1216_v25 = vadd.f32 %v5054_v14, %v1215_v24 }
 0x154   :  { %411 = vst.msk [vmem:[#allocation3 + $0x24] sm:$0xf] %vm401_vm5, %v372_v21  ;;  %v485_v23 = vpop.permute.xlu0 %484 }
 0x155   :  { %524 = vst.msk [vmem:[#allocation3 + $0x24] sm:$0xf] %vm514_vm6, %v485_v23  ;;  %v1254_v26 = vmax.f32 %v1216_v25, 0.0 }
 0x156   :  { %637 = vst.msk [vmem:[#allocation3 + $0x24] sm:$0xf] %vm627_vm7, %v598_v10 }
 0x157   :  { %v1288_v30 = vrot.slane %v1254_v26, 2  ;;  %v1289_v31 = vrot.slane %v1254_v26, 4  ;;  %v1290_v32 = vrot.slane %v1254_v26, 6  ;;  %v1381_v33 = vmax.f32 %v1253_v22, %v1254_v26  ;;  %v1816_v22 = vld [vmem:[#allocation4 + $0x2] sm:$0xf] }
 0x158   :  { %1056 = vrot.lane.b32.xlu2 %v5016_v4, %s4574_s17 }
 0x159   :  { %268 = vrot.lane.b32.xlu1 %v5013_v3, %s4568_s24  ;;  %v1382_v36 = vmax.f32 %v1285_v27, %v1288_v30  ;;  %v1383_v37 = vmax.f32 %v1286_v28, %v1289_v31  ;;  %v1384_v38 = vmax.f32 %v1287_v29, %v1290_v32  ;;  %v3813_v39 = vrot.slane %v1381_v33, 9 }
 0x15a   :  { %381 = vrot.lane.b32.xlu0 %v5016_v4, %s4567_s23  ;;  %v938_v34 = vpop.permute.xlu2 %937 }
 0x15b   :  { %v596_v35 = vpop.permute.xlu1 %595  ;;  %v3814_v41 = vrot.slane %v1382_v36, 9  ;;  %v3815_v42 = vrot.slane %v1383_v37, 9  ;;  %v3816_v43 = vrot.slane %v1384_v38, 9  ;;  %v1541_v44 = vmax.f32 %v1381_v33, %v3813_v39 }
 0x15c   :  { %636 = vst.msk [vmem:[#allocation3 + $0x20] sm:$0xf] %vm627_vm7, %v596_v35  ;;  %v709_v40 = vpop.permute.xlu0 %708 }
 0x15d   :  { %749 = vst.msk [vmem:[#allocation3 + $0x20] sm:$0xf] %vm740_vm8, %v709_v40  ;;  %v1542_v46 = vmax.f32 %v1382_v36, %v3814_v41  ;;  %v1543_v47 = vmax.f32 %v1383_v37, %v3815_v42  ;;  %v1544_v48 = vmax.f32 %v1384_v38, %v3816_v43  ;;  %v1629_v49 = vperm.slane %v1541_v44, 0 }
 0x15e   :  { %863 = vst.msk [vmem:[#allocation3 + $0x20] sm:$0xf] %vm854_vm11, %v823_v20 }
 0x15f   :  { %v1630_v50 = vperm.slane %v1542_v46, 0  ;;  %v1631_v51 = vperm.slane %v1543_v47, 0  ;;  %v1632_v52 = vperm.slane %v1544_v48, 0 }
 0x160   :  { %270 = vrot.lane.b32.xlu2 %v5056_v17, %s4568_s24  ;;  %s4578_s24 = smov 80  }
 0x161   :  { %383 = vrot.lane.b32.xlu1 %v5061_v18, %s4567_s23  ;;  %v1662_v53 = vsel %vm1661_vm2, %v1630_v50, %v1629_v49  ;;  %s4577_s23 = smov 48  }
 0x162   :  { %v261_v54 = vpop.permute.xlu2 %260  ;;  %v1664_v56 = vsel %vm1663_vm3, %v1631_v51, %v1662_v53  ;;  %496 = vrot.lane.b32.xlu0 %v449_v61, %s4569_s25 }
 0x163   :  { %v711_v55 = vpop.permute.xlu1 %710  ;;  %299 = vst.msk [vmem:[#allocation3 + $0x28] sm:$0xf] %vm288_vm4, %v261_v54  ;;  %v1666_v59 = vsel %vm1665_vm9, %v1632_v52, %v1664_v56 }
 0x164   :  { %v825_v58 = vpop.permute.xlu0 %824  ;;  %750 = vst.msk [vmem:[#allocation3 + $0x24] sm:$0xf] %vm740_vm8, %v711_v55 }
 0x165   :  { %1697 = vst.msk [vmem:[#allocation4 + $0x9] sm:$0xf] %vm1696_vm15, %v1666_v59 }
 0x166   :  { %864 = vst.msk [vmem:[#allocation3 + $0x24] sm:$0xf] %vm854_vm11, %v825_v58 }
 0x167   :  { %977 = vst.msk [vmem:[#allocation3 + $0x24] sm:$0xf] %vm967_vm12, %v938_v34 }
 0x168   :  { %494 = vrot.lane.b32.xlu2 %v4997_v57, %s4569_s25  ;;  %v1752_v57 = vld [vmem:[#allocation4 + $0x1] sm:$0xf]  ;;  %s4579_s25 = smov 96  }
 0x169   :  { %607 = vrot.lane.b32.xlu1 %v5056_v17, %s4570_s26  ;;  %v886_v17 = vld [vmem:[#allocation2 + $0x131] sm:$0xff] }
 0x16a   :  { %v376_v1 = vpop.permute.xlu2 %375  ;;  %720 = vrot.lane.b32.xlu0 %v5061_v18, %s4571_s12  ;;  %v999_v18 = vld [vmem:[#allocation2 + $0x132] sm:$0xff]  ;;  %v902_v24 = vpack.c.bf16 %v886_v17, %v886_v17 }
 0x16b   :  { %v936_v2 = vpop.permute.xlu1 %935  ;;  %v1015_v25 = vpack.c.bf16 %v999_v18, %v999_v18 }
 0x16c   :  { %976 = vst.msk [vmem:[#allocation3 + $0x20] sm:$0xf] %vm967_vm12, %v936_v2  ;;  %v1049_v3 = vpop.permute.xlu0 %1048  ;;  %v1706_v4 = vld [vmem:[#allocation4 + $0x8] sm:$0xf] }
 0x16d   :  { %1723 = vst [vmem:[#allocation1 + $0x1] ss:$2 sm:$0xff] %v1706_v4  ;;  %v1753_v12 = vld [vmem:[#allocation4 + $0x9] sm:$0xf] }
 0x16e   :  { %1089 = vst.msk [vmem:[#allocation3 + $0x20] sm:$0xf] %vm1080_vm13, %v1049_v3  ;;  %v1817_v28 = vld [vmem:[#allocation4 + $0xa] sm:$0xf] }
 0x16f   :  { %v1880_v35 = vld [vmem:[#allocation4 + $0x8] sm:$0xf] }
 0x170   :  { %609 = vrot.lane.b32.xlu2 %v562_v5, %s4570_s26  ;;  %s4580_s26 = smov 112  }
 0x171   :  { %722 = vrot.lane.b32.xlu1 %v675_v6, %s4571_s12 }
 0x172   :  { %v600_v7 = vpop.permute.xlu2 %599  ;;  %836 = vrot.lane.b32.xlu0 %v789_v13, %s4572_s13 }
 0x173   :  { %v1051_v8 = vpop.permute.xlu1 %1050 }
 0x174   :  { %1090 = vst.msk [vmem:[#allocation3 + $0x24] sm:$0xf] %vm1080_vm13, %v1051_v8  ;;  %v263_v10 = vpop.permute.xlu0 %262  ;;  %v1736_v11 = vld.sshfl [vmem:[#allocation1] sm:$0xff pattern:$0x75316420] }
 0x175   :  { %300 = vst.msk [vmem:[#allocation3 + $0x2c] sm:$0xf] %vm288_vm4, %v263_v10  ;;  %v1744_v15 = vpack.c.bf16 %v1736_v11, %v1736_v11 }
 0x176   :  { %1768 = vst [vmem:[#allocation1] ss:$2 sm:$0xff] %v1752_v57 }
 0x177   :  { %1770 = vst [vmem:[#allocation1 + $0x1] ss:$2 sm:$0xff] %v1753_v12 }
 0x178   :  { %413 = vst.msk [vmem:[#allocation3 + $0x2c] sm:$0xf] %vm401_vm5, %v376_v1  ;;  %834 = vrot.lane.b32.xlu2 %v449_v61, %s4572_s13  ;;  %s3754_s13 = sshll.u32 %s5466_s9, 4  ;;  %s3755_s13 = int_to_ptr.hbm [resolvable:$true] %s3754_s13 }
 0x179   :  { %947 = vrot.lane.b32.xlu1 %v562_v5, %s4573_s14  ;;  %1748 = vst.msk [vmem:[#allocation5] sm:$0xf] %vm1696_vm15, %v1744_v15  ;;  %v1218_v16 = vpop.f32.mrf.mxu0  ;;  %v1944_v15 = vld [vmem:[#allocation4 + $0x9] sm:$0xf] }
 0x17a   :  { %v715_v19 = vpop.permute.xlu2 %714  ;;  %v1219_v27 = vadd.f32 %v5054_v14, %v1218_v16  ;;  %1060 = vrot.lane.b32.xlu0 %v675_v6, %s4574_s17 }
 0x17b   :  { %v374_v20 = vpop.permute.xlu1 %373  ;;  %v4333_v21 = vld [vmem:[#allocation3 + $0x20] sm:$0xff] }
 0x17c   :  { %412 = vst.msk [vmem:[#allocation3 + $0x28] sm:$0xf] %vm401_vm5, %v374_v20  ;;  %v487_v23 = vpop.permute.xlu0 %486  ;;  %3809 = vmatmul.msk.bf16.gmra.mxu0 %vm1172_vm14, %v4333_v21  ;;  %v1255_v29 = vmax.f32 %v1219_v27, 0.0 }
 0x17d   :  { %525 = vst.msk [vmem:[#allocation3 + $0x28] sm:$0xf] %vm514_vm6, %v487_v23 }
 0x17e   :  { %v1783_v26 = vld.sshfl [vmem:[#allocation1] sm:$0xff pattern:$0x75316420]  ;;  %638 = vst.msk [vmem:[#allocation3 + $0x28] sm:$0xf] %vm627_vm7, %v600_v7  ;;  %v1291_v37 = vrot.slane %v1255_v29, 2 }
 0x17f   :  { %1832 = vst [vmem:[#allocation1] ss:$2 sm:$0xff] %v1816_v22  ;;  %v1292_v38 = vrot.slane %v1255_v29, 4  ;;  %v1293_v39 = vrot.slane %v1255_v29, 6  ;;  %v1791_v40 = vpack.c.bf16 %v1783_v26, %v1783_v26 }
 0x180   :  { %1834 = vst [vmem:[#allocation1 + $0x1] ss:$2 sm:$0xff] %v1817_v28  ;;  %949 = vrot.lane.b32.xlu2 %v902_v24, %s4573_s14 }
 0x181   :  { %1062 = vrot.lane.b32.xlu1 %v1015_v25, %s4574_s17  ;;  %v1220_v30 = vpop.f32.mrf.mxu0 }
 0x182   :  { %v940_v31 = vpop.permute.xlu2 %939  ;;  %v1221_v33 = vadd.f32 %v5054_v14, %v1220_v30 }
 0x183   :  { %v489_v32 = vpop.permute.xlu1 %488 }
 0x184   :  { %526 = vst.msk [vmem:[#allocation3 + $0x2c] sm:$0xf] %vm514_vm6, %v489_v32  ;;  %v602_v34 = vpop.permute.xlu0 %601  ;;  %v1256_v36 = vmax.f32 %v1221_v33, 0.0 }
 0x185   :  { %639 = vst.msk [vmem:[#allocation3 + $0x2c] sm:$0xf] %vm627_vm7, %v602_v34 }
 0x186   :  { %752 = vst.msk [vmem:[#allocation3 + $0x2c] sm:$0xf] %vm740_vm8, %v715_v19  ;;  %v1294_v42 = vrot.slane %v1256_v36, 2  ;;  %v1295_v43 = vrot.slane %v1256_v36, 4  ;;  %v1296_v44 = vrot.slane %v1256_v36, 6  ;;  %v1385_v45 = vmax.f32 %v1255_v29, %v1256_v36 }
 0x187   :  { %v1847_v41 = vld.sshfl [vmem:[#allocation1] sm:$0xff pattern:$0x75316420]  ;;  %v2008_v29 = vld [vmem:[#allocation4 + $0xa] sm:$0xf] }
 0x188   :  { %1896 = vst [vmem:[#allocation1] ss:$2 sm:$0xff] %v1880_v35  ;;  %v1855_v46 = vpack.c.bf16 %v1847_v41, %v1847_v41  ;;  %v1386_v47 = vmax.f32 %v1291_v37, %v1294_v42  ;;  %v1387_v48 = vmax.f32 %v1292_v38, %v1295_v43  ;;  %v1388_v49 = vmax.f32 %v1293_v39, %v1296_v44 }
 0x189   :  { %v3817_v50 = vrot.slane %v1385_v45, 9  ;;  %1799 = vrot.lane.b32.xlu2 %v1791_v40, %s4562_s18 }
 0x18a   :  { %1863 = vrot.lane.b32.xlu1 %v1855_v46, %s4576_s0  ;;  %v3818_v51 = vrot.slane %v1386_v47, 9  ;;  %v3819_v52 = vrot.slane %v1387_v48, 9  ;;  %v3820_v53 = vrot.slane %v1388_v49, 9  ;;  %v1055_v55 = vpop.permute.xlu2 %1054 }
 0x18b   :  { %v1545_v54 = vmax.f32 %v1385_v45, %v3817_v50  ;;  %v713_v56 = vpop.permute.xlu1 %712 }
 0x18c   :  { %751 = vst.msk [vmem:[#allocation3 + $0x28] sm:$0xf] %vm740_vm8, %v713_v56  ;;  %v827_v58 = vpop.permute.xlu0 %826  ;;  %v1546_v59 = vmax.f32 %v1386_v47, %v3818_v51  ;;  %v1547_v60 = vmax.f32 %v1387_v48, %v3819_v52  ;;  %v1548_v61 = vmax.f32 %v1388_v49, %v3820_v53 }
 0x18d   :  { %865 = vst.msk [vmem:[#allocation3 + $0x28] sm:$0xf] %vm854_vm11, %v827_v58  ;;  %v1633_v62 = vperm.slane %v1545_v54, 0 }
 0x18e   :  { %978 = vst.msk [vmem:[#allocation3 + $0x28] sm:$0xf] %vm967_vm12, %v940_v31  ;;  %v1634_v63 = vperm.slane %v1546_v59, 0  ;;  %v1635_v1 = vperm.slane %v1547_v60, 0  ;;  %v1636_v2 = vperm.slane %v1548_v61, 0 }
 0x190   :  { %v1667_v3 = vsel %vm1661_vm2, %v1634_v63, %v1633_v62 }
 0x191   :  { %v1668_v4 = vsel %vm1663_vm3, %v1635_v1, %v1667_v3 }
 0x192   :  { %v1669_v5 = vsel %vm1665_vm9, %v1636_v2, %v1668_v4  ;;  %v378_v6 = vpop.permute.xlu2 %377 }
 0x193   :  { %v829_v57 = vpop.permute.xlu1 %828  ;;  %1698 = vst.msk [vmem:[#allocation4 + $0x11] sm:$0xf] %vm1696_vm15, %v1669_v5 }
 0x194   :  { %v942_v7 = vpop.permute.xlu0 %941  ;;  %866 = vst.msk [vmem:[#allocation3 + $0x2c] sm:$0xf] %vm854_vm11, %v829_v57 }
 0x195   :  { %979 = vst.msk [vmem:[#allocation3 + $0x2c] sm:$0xf] %vm967_vm12, %v942_v7 }
 0x196   :  { %1092 = vst.msk [vmem:[#allocation3 + $0x2c] sm:$0xf] %vm1080_vm13, %v1055_v55 }
 0x19a   :  { %v1707_v8 = vld [vmem:[#allocation4 + $0x10] sm:$0xf]  ;;  %v493_v9 = vpop.permute.xlu2 %492 }
 0x19b   :  { %v1053_v10 = vpop.permute.xlu1 %1052  ;;  %1725 = vst [vmem:[#allocation1 + $0x10] ss:$2 sm:$0xff] %v1707_v8  ;;  %v1881_v11 = vld [vmem:[#allocation4 + $0x10] sm:$0xf] }
 0x19c   :  { %v265_v12 = vpop.permute.xlu0 %264  ;;  %1898 = vst [vmem:[#allocation1 + $0x1] ss:$2 sm:$0xff] %v1881_v11  ;;  %v1945_v20 = vld [vmem:[#allocation4 + $0x11] sm:$0xf] }
 0x19d   :  { %1091 = vst.msk [vmem:[#allocation3 + $0x28] sm:$0xf] %vm1080_vm13, %v1053_v10  ;;  %v2009_v30 = vld [vmem:[#allocation4 + $0x12] sm:$0xf] }
 0x19e   :  { %301 = vst.msk [vmem:[#allocation3 + $0x30] sm:$0xf] %vm288_vm4, %v265_v12  ;;  %v2073_v53 = vld [vmem:[#allocation4 + $0x10] sm:$0xf] }
 0x19f   :  { %414 = vst.msk [vmem:[#allocation3 + $0x30] sm:$0xf] %vm401_vm5, %v378_v6  ;;  %v1754_v11 = vld [vmem:[#allocation4 + $0x11] sm:$0xf] }
 0x1a1   :  { %v1223_v13 = vpop.f32.mrf.mxu0 }
 0x1a2   :  { %v717_v16 = vpop.permute.xlu2 %716  ;;  %v1224_v23 = vadd.f32 %v5054_v14, %v1223_v13 }
 0x1a3   :  { %v267_v17 = vpop.permute.xlu1 %266  ;;  %v1911_v18 = vld.sshfl [vmem:[#allocation1] sm:$0xff pattern:$0x75316420] }
 0x1a4   :  { %302 = vst.msk [vmem:[#allocation3 + $0x34] sm:$0xf] %vm288_vm4, %v267_v17  ;;  %v380_v19 = vpop.permute.xlu0 %379  ;;  %v4334_v21 = vld [vmem:[#allocation3 + $0x28] sm:$0xff]  ;;  %v1919_v22 = vpack.c.bf16 %v1911_v18, %v1911_v18  ;;  %v1257_v24 = vmax.f32 %v1224_v23, 0.0 }
 0x1a5   :  { %1960 = vst [vmem:[#allocation1] ss:$2 sm:$0xff] %v1944_v15  ;;  %3810 = vmatmul.msk.bf16.gmra.mxu0 %vm1172_vm14, %v4334_v21 }
 0x1a6   :  { %1962 = vst [vmem:[#allocation1 + $0x1] ss:$2 sm:$0xff] %v1945_v20  ;;  %1927 = vrot.lane.b32.xlu0 %v1919_v22, %s4577_s23  ;;  %v1297_v34 = vrot.slane %v1257_v24, 2  ;;  %v1298_v35 = vrot.slane %v1257_v24, 4  ;;  %v1299_v36 = vrot.slane %v1257_v24, 6 }
 0x1a7   :  { %415 = vst.msk [vmem:[#allocation3 + $0x34] sm:$0xf] %vm401_vm5, %v380_v19 }
 0x1a8   :  { %528 = vst.msk [vmem:[#allocation3 + $0x34] sm:$0xf] %vm514_vm6, %v493_v9 }
 0x1a9   :  { %v1225_v25 = vpop.f32.mrf.mxu0 }
 0x1aa   :  { %v833_v26 = vpop.permute.xlu2 %832  ;;  %v1226_v28 = vadd.f32 %v5054_v14, %v1225_v25  ;;  %v1818_v25 = vld [vmem:[#allocation4 + $0x12] sm:$0xf] }
 0x1ab   :  { %v491_v27 = vpop.permute.xlu1 %490 }
 0x1ac   :  { %527 = vst.msk [vmem:[#allocation3 + $0x30] sm:$0xf] %vm514_vm6, %v491_v27  ;;  %v604_v31 = vpop.permute.xlu0 %603  ;;  %v1258_v33 = vmax.f32 %v1226_v28, 0.0 }
 0x1ad   :  { %v1975_v32 = vld.sshfl [vmem:[#allocation1] sm:$0xff pattern:$0x75316420]  ;;  %640 = vst.msk [vmem:[#allocation3 + $0x30] sm:$0xf] %vm627_vm7, %v604_v31 }
 0x1ae   :  { %2024 = vst [vmem:[#allocation1] ss:$2 sm:$0xff] %v2008_v29  ;;  %v1983_v37 = vpack.c.bf16 %v1975_v32, %v1975_v32  ;;  %v1300_v38 = vrot.slane %v1258_v33, 2  ;;  %v1301_v39 = vrot.slane %v1258_v33, 4  ;;  %v1302_v40 = vrot.slane %v1258_v33, 6 }
 0x1af   :  { %2026 = vst [vmem:[#allocation1 + $0x1] ss:$2 sm:$0xff] %v2009_v30  ;;  %v1389_v41 = vmax.f32 %v1257_v24, %v1258_v33  ;;  %v2201_v31 = vld [vmem:[#allocation4 + $0x12] sm:$0xf] }
 0x1b0   :  { %1991 = vrot.lane.b32.xlu2 %v1983_v37, %s4564_s21  ;;  %753 = vst.msk [vmem:[#allocation3 + $0x30] sm:$0xf] %vm740_vm8, %v717_v16  ;;  %v1390_v42 = vmax.f32 %v1297_v34, %v1300_v38  ;;  %v1391_v43 = vmax.f32 %v1298_v35, %v1301_v39  ;;  %v1392_v44 = vmax.f32 %v1299_v36, %v1302_v40  ;;  %v2137_v16 = vld [vmem:[#allocation4 + $0x11] sm:$0xf] }
 0x1b1   :  { %v3821_v45 = vrot.slane %v1389_v41, 9 }
 0x1b2   :  { %v3822_v46 = vrot.slane %v1390_v42, 9  ;;  %v3823_v47 = vrot.slane %v1391_v43, 9  ;;  %v3824_v48 = vrot.slane %v1392_v44, 9  ;;  %v1057_v50 = vpop.permute.xlu2 %1056 }
 0x1b3   :  { %v1549_v49 = vmax.f32 %v1389_v41, %v3821_v45  ;;  %v606_v51 = vpop.permute.xlu1 %605 }
 0x1b4   :  { %641 = vst.msk [vmem:[#allocation3 + $0x34] sm:$0xf] %vm627_vm7, %v606_v51  ;;  %v719_v52 = vpop.permute.xlu0 %718  ;;  %v1550_v54 = vmax.f32 %v1390_v42, %v3822_v46  ;;  %v1551_v55 = vmax.f32 %v1391_v43, %v3823_v47  ;;  %v1552_v56 = vmax.f32 %v1392_v44, %v3824_v48 }
 0x1b5   :  { %754 = vst.msk [vmem:[#allocation3 + $0x34] sm:$0xf] %vm740_vm8, %v719_v52  ;;  %v1637_v59 = vperm.slane %v1549_v49, 0 }
 0x1b6   :  { %v2039_v58 = vld.sshfl [vmem:[#allocation1] sm:$0xff pattern:$0x75316420]  ;;  %868 = vst.msk [vmem:[#allocation3 + $0x34] sm:$0xf] %vm854_vm11, %v833_v26  ;;  %v1638_v60 = vperm.slane %v1550_v54, 0 }
 0x1b7   :  { %2089 = vst [vmem:[#allocation1] ss:$2 sm:$0xff] %v2073_v53  ;;  %v1639_v61 = vperm.slane %v1551_v55, 0  ;;  %v2047_v62 = vpack.c.bf16 %v2039_v58, %v2039_v58  ;;  %v1640_v63 = vperm.slane %v1552_v56, 0 }
 0x1b8   :  { %v1670_v1 = vsel %vm1661_vm2, %v1638_v60, %v1637_v59 }
 0x1b9   :  { %2055 = vrot.lane.b32.xlu1 %v2047_v62, %s4578_s24  ;;  %v1671_v2 = vsel %vm1663_vm3, %v1639_v61, %v1670_v1 }
 0x1ba   :  { %v1672_v3 = vsel %vm1665_vm9, %v1640_v63, %v1671_v2  ;;  %v271_v4 = vpop.permute.xlu2 %270 }
 0x1bb   :  { %v831_v5 = vpop.permute.xlu1 %830  ;;  %1699 = vst.msk [vmem:[#allocation4 + $0x19] sm:$0xf] %vm1696_vm15, %v1672_v3 }
 0x1bc   :  { %v944_v6 = vpop.permute.xlu0 %943  ;;  %304 = vst.msk [vmem:[#allocation3 + $0x3c] sm:$0xf] %vm288_vm4, %v271_v4 }
 0x1bd   :  { %867 = vst.msk [vmem:[#allocation3 + $0x30] sm:$0xf] %vm854_vm11, %v831_v5 }
 0x1be   :  { %980 = vst.msk [vmem:[#allocation3 + $0x30] sm:$0xf] %vm967_vm12, %v944_v6 }
 0x1bf   :  { %1093 = vst.msk [vmem:[#allocation3 + $0x30] sm:$0xf] %vm1080_vm13, %v1057_v50 }
 0x1c2   :  { %v1708_v57 = vld [vmem:[#allocation4 + $0x18] sm:$0xf]  ;;  %v495_v7 = vpop.permute.xlu2 %494 }
 0x1c3   :  { %v946_v8 = vpop.permute.xlu1 %945  ;;  %1727 = vst [vmem:[#allocation1 + $0x11] ss:$2 sm:$0xff] %v1708_v57  ;;  %v2074_v10 = vld [vmem:[#allocation4 + $0x18] sm:$0xf] }
 0x1c4   :  { %v1059_v9 = vpop.permute.xlu0 %1058  ;;  %2091 = vst [vmem:[#allocation1 + $0x1] ss:$2 sm:$0xff] %v2074_v10  ;;  %v1755_v17 = vld [vmem:[#allocation4 + $0x19] sm:$0xf] }
 0x1c5   :  { %981 = vst.msk [vmem:[#allocation3 + $0x34] sm:$0xf] %vm967_vm12, %v946_v8  ;;  %v2138_v20 = vld [vmem:[#allocation4 + $0x19] sm:$0xf] }
 0x1c6   :  { %1094 = vst.msk [vmem:[#allocation3 + $0x34] sm:$0xf] %vm1080_vm13, %v1059_v9  ;;  %v1819_v32 = vld [vmem:[#allocation4 + $0x1a] sm:$0xf] }
 0x1c7   :  { %v2202_v36 = vld [vmem:[#allocation4 + $0x1a] sm:$0xf] }
 0x1c8   :  { %v1882_v51 = vld [vmem:[#allocation4 + $0x18] sm:$0xf] }
 0x1ca   :  { %v1737_v12 = vld.sshfl [vmem:[#allocation1 + $0x10] sm:$0xff pattern:$0x75316420]  ;;  %v5191_v13 = vpop.permute.xlu2 %609  ;;  %v1228_v18 = vpop.f32.mrf.mxu0 }
 0x1cb   :  { %v269_v15 = vpop.permute.xlu1 %268  ;;  %1772 = vst [vmem:[#allocation1 + $0x10] ss:$2 sm:$0xff] %v1754_v11  ;;  %v2104_v19 = vld.sshfl [vmem:[#allocation1] sm:$0xff pattern:$0x75316420]  ;;  %v1745_v23 = vpack.c.bf16 %v1737_v12, %v1737_v12  ;;  %v1229_v24 = vadd.f32 %v5054_v14, %v1228_v18 }
 0x1cc   :  { %1774 = vst [vmem:[#allocation1 + $0x11] ss:$2 sm:$0xff] %v1755_v17  ;;  %v382_v21 = vpop.permute.xlu0 %381  ;;  %v2112_v56 = vpack.c.bf16 %v2104_v19, %v2104_v19  ;;  %v1946_v18 = vld [vmem:[#allocation4 + $0x19] sm:$0xf] }
 0x1cd   :  { %2153 = vst [vmem:[#allocation1] ss:$2 sm:$0xff] %v2137_v16  ;;  %v4335_v22 = vld [vmem:[#allocation3 + $0x30] sm:$0xff]  ;;  %v1259_v29 = vmax.f32 %v1229_v24, 0.0 }
 0x1ce   :  { %2155 = vst [vmem:[#allocation1 + $0x1] ss:$2 sm:$0xff] %v2138_v20  ;;  %3811 = vmatmul.msk.bf16.gmra.mxu0 %vm1172_vm14, %v4335_v22 }
 0x1cf   :  { %303 = vst.msk [vmem:[#allocation3 + $0x38] sm:$0xf] %vm288_vm4, %v269_v15  ;;  %v1303_v38 = vrot.slane %v1259_v29, 2  ;;  %v1304_v39 = vrot.slane %v1259_v29, 4  ;;  %v1305_v40 = vrot.slane %v1259_v29, 6  ;;  %vm1875_vm4 = vcmask 388352  }
 0x1d0   :  { %416 = vst.msk [vmem:[#allocation3 + $0x38] sm:$0xf] %vm401_vm5, %v382_v21 }
 0x1d1   :  { %529 = vst.msk [vmem:[#allocation3 + $0x38] sm:$0xf] %vm514_vm6, %v495_v7 }
 0x1d2   :  { %v5198_v26 = vpop.permute.xlu2 %834  ;;  %1749 = vst.msk [vmem:[#allocation5 + $0x8] sm:$0xf] %vm1696_vm15, %v1745_v23  ;;  %v1230_v30 = vpop.f32.mrf.mxu0 }
 0x1d3   :  { %v384_v27 = vpop.permute.xlu1 %383  ;;  %v1784_v28 = vld.sshfl [vmem:[#allocation1 + $0x10] sm:$0xff pattern:$0x75316420]  ;;  %v1231_v34 = vadd.f32 %v5054_v14, %v1230_v30 }
 0x1d4   :  { %417 = vst.msk [vmem:[#allocation3 + $0x3c] sm:$0xf] %vm401_vm5, %v384_v27  ;;  %v1792_v33 = vpack.c.bf16 %v1784_v28, %v1784_v28  ;;  %v497_v52 = vpop.permute.xlu0 %496  ;;  %vm2471_vm5 = vcmask 257024  }
 0x1d5   :  { %1836 = vst [vmem:[#allocation1 + $0x10] ss:$2 sm:$0xff] %v1818_v25  ;;  %v2168_v35 = vld.sshfl [vmem:[#allocation1] sm:$0xff pattern:$0x75316420]  ;;  %v1260_v37 = vmax.f32 %v1231_v34, 0.0 }
 0x1d6   :  { %1838 = vst [vmem:[#allocation1 + $0x11] ss:$2 sm:$0xff] %v1819_v32  ;;  %1801 = vrot.lane.b32.xlu0 %v1792_v33, %s4562_s18  ;;  %v2176_v12 = vpack.c.bf16 %v2168_v35, %v2168_v35  ;;  %v2076_v35 = vld [vmem:[#allocation4 + $0x28] sm:$0xf] }
 0x1d7   :  { %2217 = vst [vmem:[#allocation1] ss:$2 sm:$0xff] %v2201_v31  ;;  %v1306_v41 = vrot.slane %v1260_v37, 2  ;;  %v1307_v42 = vrot.slane %v1260_v37, 4  ;;  %v1308_v43 = vrot.slane %v1260_v37, 6  ;;  %v1393_v44 = vmax.f32 %v1259_v29, %v1260_v37 }
 0x1d8   :  { %2219 = vst [vmem:[#allocation1 + $0x1] ss:$2 sm:$0xff] %v2202_v36  ;;  %v1709_v31 = vld [vmem:[#allocation4 + $0x30] sm:$0xf] }
 0x1d9   :  { %v1394_v47 = vmax.f32 %v1303_v38, %v1306_v41  ;;  %v1395_v48 = vmax.f32 %v1304_v39, %v1307_v42  ;;  %v1396_v49 = vmax.f32 %v1305_v40, %v1308_v43  ;;  %v3825_v50 = vrot.slane %v1393_v44, 9  ;;  %530 = vst.msk [vmem:[#allocation3 + $0x3c] sm:$0xf] %vm514_vm6, %v497_v52 }
 0x1da   :  { %v950_v45 = vpop.permute.xlu2 %949  ;;  %643 = vst.msk [vmem:[#allocation3 + $0x3c] sm:$0xf] %vm627_vm7, %v5191_v13  ;;  %vm1939_vm6 = vcmask 519552  }
 0x1db   :  { %v608_v46 = vpop.permute.xlu1 %607  ;;  %v3826_v54 = vrot.slane %v1394_v47, 9  ;;  %v1553_v55 = vmax.f32 %v1393_v44, %v3825_v50  ;;  %v3827_v58 = vrot.slane %v1395_v48, 9  ;;  %v3828_v59 = vrot.slane %v1396_v49, 9  ;;  %1729 = vst [vmem:[#allocation1 + $0x20] ss:$2 sm:$0xff] %v1709_v31 }
 0x1dc   :  { %642 = vst.msk [vmem:[#allocation3 + $0x38] sm:$0xf] %vm627_vm7, %v608_v46  ;;  %v721_v10 = vpop.permute.xlu0 %720  ;;  %vm2003_vm7 = vcmask 650752  }
 0x1dd   :  { %v1848_v53 = vld.sshfl [vmem:[#allocation1 + $0x10] sm:$0xff pattern:$0x75316420]  ;;  %v1554_v62 = vmax.f32 %v1394_v47, %v3826_v54  ;;  %v1555_v63 = vmax.f32 %v1395_v48, %v3827_v58  ;;  %v1556_v1 = vmax.f32 %v1396_v49, %v3828_v59  ;;  %v1641_v3 = vperm.slane %v1553_v55, 0  ;;  %755 = vst.msk [vmem:[#allocation3 + $0x38] sm:$0xf] %vm740_vm8, %v721_v10 }
 0x1de   :  { %1900 = vst [vmem:[#allocation1 + $0x10] ss:$2 sm:$0xff] %v1882_v51  ;;  %v1856_v60 = vpack.c.bf16 %v1848_v53, %v1848_v53  ;;  %2120 = vrot.lane.b32.xlu0 %v2112_v56, %s4579_s25  ;;  %v2140_v59 = vld [vmem:[#allocation4 + $0x29] sm:$0xf] }
 0x1df   :  { %v2232_v61 = vld.sshfl [vmem:[#allocation1] sm:$0xff pattern:$0x75316420]  ;;  %v1642_v4 = vperm.slane %v1554_v62, 0  ;;  %v1643_v5 = vperm.slane %v1555_v63, 0  ;;  %v1644_v6 = vperm.slane %v1556_v1, 0 }
 0x1e0   :  { %1865 = vrot.lane.b32.xlu2 %v1856_v60, %s4576_s0  ;;  %v2240_v2 = vpack.c.bf16 %v2232_v61, %v2232_v61  ;;  %869 = vst.msk [vmem:[#allocation3 + $0x38] sm:$0xf] %vm854_vm11, %v5198_v26  ;;  %v2010_v26 = vld [vmem:[#allocation4 + $0x1a] sm:$0xf] }
 0x1e1   :  { %v1673_v57 = vsel %vm1661_vm2, %v1642_v4, %v1641_v3  ;;  %2472 = vst.msk [vmem:[#allocation6] sm:$0xf] %vm2471_vm5, %v4566_v0  ;;  %v4351_v63 = vld [vmem:[%s5460_s3 + $0x40] sm:$0xff] }
 0x1e2   :  { %2244 = vst.msk [vmem:[#allocation5 + $0x4] sm:$0xf] %vm1696_vm15, %v2240_v2  ;;  %v1674_v9 = vsel %vm1663_vm3, %v1643_v5, %v1673_v57  ;;  %2379 = vmatpush.bf16.msra.mxu2 %v4351_v63  ;;  %v2204_v57 = vld [vmem:[#allocation4 + $0x2a] sm:$0xf] }
 0x1e3   :  { %v1800_v7 = vpop.permute.xlu2 %1799  ;;  %v723_v8 = vpop.permute.xlu1 %722  ;;  %v1675_v11 = vsel %vm1665_vm9, %v1644_v6, %v1674_v9  ;;  %2473 = vst.msk [vmem:[#allocation6 + $0x10] sm:$0xf] %vm2471_vm5, %v4566_v0 }
 0x1e4   :  { %1812 = vst.msk [vmem:[#allocation5] sm:$0xf] %vm1811_vm0, %v1800_v7  ;;  %v837_v15 = vpop.permute.xlu0 %836 }
 0x1e5   :  { %756 = vst.msk [vmem:[#allocation3 + $0x3c] sm:$0xf] %vm740_vm8, %v723_v8  ;;  %vm2067_vm8 = vcmask 781952  }
 0x1e6   :  { %1700 = vst.msk [vmem:[#allocation4 + $0x21] sm:$0xf] %vm1696_vm15, %v1675_v11 }
 0x1e7   :  { %870 = vst.msk [vmem:[#allocation3 + $0x3c] sm:$0xf] %vm854_vm11, %v837_v15  ;;  %vm2346_vm11 = vcmask 130048  }
 0x1e8   :  { %2184 = vrot.lane.b32.xlu2 %v2176_v12, %s4580_s26  ;;  %983 = vst.msk [vmem:[#allocation3 + $0x3c] sm:$0xf] %vm967_vm12, %v950_v45  ;;  %v2516_v12 = vld [vmem:[#allocation6] sm:$0x3] }
 0x1e9   :  { %2475 = vst.msk [vmem:[#allocation6 + $0xc] sm:$0xf] %vm2471_vm5, %v4566_v0 }
 0x1ea   :  { %2476 = vst.msk [vmem:[#allocation6 + $0x1c] sm:$0xf] %vm2471_vm5, %v4566_v0 }
 0x1eb   :  { %v948_v13 = vpop.permute.xlu1 %947 }
 0x1ec   :  { %982 = vst.msk [vmem:[#allocation3 + $0x38] sm:$0xf] %vm967_vm12, %v948_v13  ;;  %v1061_v19 = vpop.permute.xlu0 %1060  ;;  %v2518_v13 = vld [vmem:[#allocation6 + $0x10] sm:$0x3]  ;;  %vm2132_vm12 = vcmask 913152  }
 0x1ed   :  { %v1883_v16 = vld [vmem:[#allocation4 + $0x20] sm:$0xf]  ;;  %1095 = vst.msk [vmem:[#allocation3 + $0x38] sm:$0xf] %vm1080_vm13, %v1061_v19 }
 0x1ee   :  { %1902 = vst [vmem:[#allocation1 + $0x11] ss:$2 sm:$0xff] %v1883_v16  ;;  %v1947_v21 = vld [vmem:[#allocation4 + $0x21] sm:$0xf]  ;;  %v1756_v16 = vld [vmem:[#allocation4 + $0x31] sm:$0xf] }
 0x1ef   :  { %v2011_v29 = vld [vmem:[#allocation4 + $0x22] sm:$0xf] }
 0x1f0   :  { %v2075_v36 = vld [vmem:[#allocation4 + $0x20] sm:$0xf] }
 0x1f1   :  { %v2139_v2 = vld [vmem:[#allocation4 + $0x21] sm:$0xf] }
 0x1f2   :  { %v2203_v8 = vld [vmem:[#allocation4 + $0x22] sm:$0xf] }
 0x1f3   :  { %v1063_v17 = vpop.permute.xlu1 %1062 }
 0x1f4   :  { %1096 = vst.msk [vmem:[#allocation3 + $0x3c] sm:$0xf] %vm1080_vm13, %v1063_v17  ;;  %vm2196_vm13 = vcmask 1044352  }
 0x1f5   :  { %v1912_v20 = vld.sshfl [vmem:[#allocation1 + $0x10] sm:$0xff pattern:$0x75316420] }
 0x1f6   :  { %1964 = vst [vmem:[#allocation1 + $0x10] ss:$2 sm:$0xff] %v1946_v18  ;;  %v1920_v22 = vpack.c.bf16 %v1912_v20, %v1912_v20 }
 0x1f7   :  { %1966 = vst [vmem:[#allocation1 + $0x11] ss:$2 sm:$0xff] %v1947_v21 }
 0x1f8   :  { %1929 = vrot.lane.b32.xlu1 %v1920_v22, %s4577_s23 }
 0x1f9   :  { %v1233_v23 = vpop.f32.mrf.mxu0 }
 0x1fa   :  { %v1234_v28 = vadd.f32 %v5054_v14, %v1233_v23 }
 0x1fb   :  { %v4336_v24 = vld [vmem:[#allocation3 + $0x38] sm:$0xff] }
 0x1fc   :  { %v1864_v25 = vpop.permute.xlu1 %1863  ;;  %3812 = vmatmul.msk.bf16.gmra.mxu0 %vm1172_vm14, %v4336_v24  ;;  %v1261_v32 = vmax.f32 %v1234_v28, 0.0  ;;  %vm2478_vm14 = vcmask 253952  }
 0x1fd   :  { %1876 = vst.msk [vmem:[#allocation5] sm:$0xf] %vm1875_vm4, %v1864_v25 }
 0x1fe   :  { %v1976_v27 = vld.sshfl [vmem:[#allocation1 + $0x10] sm:$0xff pattern:$0x75316420]  ;;  %v1309_v38 = vrot.slane %v1261_v32, 2  ;;  %v1310_v39 = vrot.slane %v1261_v32, 4  ;;  %v1311_v40 = vrot.slane %v1261_v32, 6 }
 0x1ff   :  { %2028 = vst [vmem:[#allocation1 + $0x10] ss:$2 sm:$0xff] %v2010_v26  ;;  %v1984_v30 = vpack.c.bf16 %v1976_v27, %v1976_v27  ;;  %v4339_v26 = vld [vmem:[#allocation5 + $0x4] sm:$0xf]  ;;  %v1820_v27 = vld [vmem:[#allocation4 + $0x32] sm:$0xf] }
 0x200   :  { %2030 = vst [vmem:[#allocation1 + $0x11] ss:$2 sm:$0xff] %v2011_v29  ;;  %v5261_v29 = vld [vmem:[%s5459_s2] ss:$0 sm:$0xff] }
 0x201   :  { %1993 = vrot.lane.b32.xlu0 %v1984_v30, %s4564_s21  ;;  %v1235_v33 = vpop.f32.mrf.mxu0  ;;  %2479 = vst.msk [vmem:[#allocation6 + $0x4] sm:$0x1] %vm2478_vm14, %v4566_v0 }
 0x202   :  { %v1236_v34 = vadd.f32 %v5054_v14, %v1235_v33  ;;  %2483 = vst.msk [vmem:[#allocation6 + $0x7] sm:$0x1] %vm2478_vm14, %v4566_v0 }
 0x203   :  { %2480 = vst.msk [vmem:[#allocation6 + $0x8] sm:$0x1] %vm2478_vm14, %v4566_v0 }
 0x204   :  { %v1262_v37 = vmax.f32 %v1236_v34, 0.0  ;;  %2481 = vst.msk [vmem:[#allocation6 + $0x14] sm:$0x1] %vm2478_vm14, %v4566_v0 }
 0x205   :  { %2482 = vst.msk [vmem:[#allocation6 + $0x18] sm:$0x1] %vm2478_vm14, %v4566_v0 }
 0x206   :  { %v1312_v42 = vrot.slane %v1262_v37, 2  ;;  %v1313_v43 = vrot.slane %v1262_v37, 4  ;;  %v1314_v44 = vrot.slane %v1262_v37, 6  ;;  %v1397_v45 = vmax.f32 %v1261_v32, %v1262_v37  ;;  %2484 = vst.msk [vmem:[#allocation6 + $0xb] sm:$0x1] %vm2478_vm14, %v4566_v0 }
 0x207   :  { %v2040_v41 = vld.sshfl [vmem:[#allocation1 + $0x10] sm:$0xff pattern:$0x75316420]  ;;  %2485 = vst.msk [vmem:[#allocation6 + $0x17] sm:$0x1] %vm2478_vm14, %v4566_v0 }
 0x208   :  { %2093 = vst [vmem:[#allocation1 + $0x10] ss:$2 sm:$0xff] %v2075_v36  ;;  %v2048_v46 = vpack.c.bf16 %v2040_v41, %v2040_v41  ;;  %v1398_v47 = vmax.f32 %v1309_v38, %v1312_v42  ;;  %v1399_v48 = vmax.f32 %v1310_v39, %v1313_v43  ;;  %v1400_v49 = vmax.f32 %v1311_v40, %v1314_v44 }
 0x209   :  { %2095 = vst [vmem:[#allocation1 + $0x11] ss:$2 sm:$0xff] %v2076_v35  ;;  %v3829_v50 = vrot.slane %v1397_v45, 9 }
 0x20a   :  { %2057 = vrot.lane.b32.xlu2 %v2048_v46, %s4578_s24  ;;  %v3830_v51 = vrot.slane %v1398_v47, 9  ;;  %v3831_v52 = vrot.slane %v1399_v48, 9  ;;  %v3832_v53 = vrot.slane %v1400_v49, 9  ;;  %v1992_v11 = vpop.permute.xlu2 %1991  ;;  %2486 = vst.msk [vmem:[#allocation6 + $0x1b] sm:$0x1] %vm2478_vm14, %v4566_v0 }
 0x20b   :  { %v1557_v54 = vmax.f32 %v1397_v45, %v3829_v50 }
 0x20c   :  { %v1558_v55 = vmax.f32 %v1398_v47, %v3830_v51  ;;  %v1559_v56 = vmax.f32 %v1399_v48, %v3831_v52  ;;  %v1560_v58 = vmax.f32 %v1400_v49, %v3832_v53 }
 0x20d   :  { %v1645_v60 = vperm.slane %v1557_v54, 0 }
 0x20e   :  { %v1646_v61 = vperm.slane %v1558_v55, 0  ;;  %v1647_v62 = vperm.slane %v1559_v56, 0  ;;  %v1648_v3 = vperm.slane %v1560_v58, 0 }
 0x210   :  { %v5244_v1 = vld.sshfl [vmem:[#allocation1 + $0x10] sm:$0xff pattern:$0x75316420]  ;;  %v1676_v4 = vsel %vm1661_vm2, %v1646_v61, %v1645_v60 }
 0x211   :  { %2157 = vst [vmem:[#allocation1 + $0x10] ss:$2 sm:$0xff] %v2139_v2  ;;  %v1677_v5 = vsel %vm1663_vm3, %v1647_v62, %v1676_v4  ;;  %v2113_v52 = vpack.c.bf16 %v5244_v1, %v5244_v1 }
 0x212   :  { %2159 = vst [vmem:[#allocation1 + $0x11] ss:$2 sm:$0xff] %v2140_v59  ;;  %v1678_v6 = vsel %vm1665_vm9, %v1648_v3, %v1677_v5 }
 0x213   :  { %1701 = vst.msk [vmem:[#allocation4 + $0x39] sm:$0xf] %vm1696_vm15, %v1678_v6 }
 0x218   :  { %v1928_v9 = vpop.permute.xlu0 %1927 }
 0x219   :  { %v5250_v7 = vld.sshfl [vmem:[#allocation1 + $0x10] sm:$0xff pattern:$0x75316420]  ;;  %1940 = vst.msk [vmem:[#allocation5] sm:$0xf] %vm1939_vm6, %v1928_v9 }
 0x21a   :  { %2221 = vst [vmem:[#allocation1 + $0x10] ss:$2 sm:$0xff] %v2203_v8  ;;  %v1710_v10 = vld [vmem:[#allocation4 + $0x38] sm:$0xf]  ;;  %v2177_v1 = vpack.c.bf16 %v5250_v7, %v5250_v7 }
 0x21b   :  { %2223 = vst [vmem:[#allocation1 + $0x11] ss:$2 sm:$0xff] %v2204_v57  ;;  %v1757_v19 = vld [vmem:[#allocation4 + $0x39] sm:$0xf] }
 0x21c   :  { %1731 = vst [vmem:[#allocation1 + $0x21] ss:$2 sm:$0xff] %v1710_v10  ;;  %v1821_v28 = vld [vmem:[#allocation4 + $0x3a] sm:$0xf] }
 0x21d   :  { %2004 = vst.msk [vmem:[#allocation5] sm:$0xf] %vm2003_vm7, %v1992_v11  ;;  %v1884_v50 = vld [vmem:[#allocation4 + $0x38] sm:$0xf] }
 0x21e   :  { %v1948_v8 = vld [vmem:[#allocation4 + $0x39] sm:$0xf] }
 0x222   :  { %v2233_v15 = vld.sshfl [vmem:[#allocation1 + $0x10] sm:$0xff pattern:$0x75316420]  ;;  %v1238_v20 = vpop.f32.mrf.mxu0 }
 0x223   :  { %2524 = vst [vmem:[#allocation1] ss:$4 sm:$0xff] %v2516_v12  ;;  %v1738_v17 = vld.sshfl [vmem:[#allocation1 + $0x20] sm:$0xff pattern:$0x75316420]  ;;  %v2241_v18 = vpack.c.bf16 %v2233_v15, %v2233_v15  ;;  %v1239_v22 = vadd.f32 %v5054_v14, %v1238_v20 }
 0x224   :  { %2528 = vst [vmem:[#allocation1 + $0x2] ss:$4 sm:$0xff] %v2518_v13  ;;  %v1746_v21 = vpack.c.bf16 %v1738_v17, %v1738_v17 }
 0x225   :  { %1778 = vst [vmem:[#allocation1 + $0x21] ss:$2 sm:$0xff] %v1757_v19  ;;  %v1263_v24 = vmax.f32 %v1239_v22, 0.0 }
 0x226   :  { %1776 = vst [vmem:[#allocation1 + $0x20] ss:$2 sm:$0xff] %v1756_v16 }
 0x227   :  { %2245 = vst.msk [vmem:[#allocation5 + $0xc] sm:$0xf] %vm1696_vm15, %v2241_v18  ;;  %v1315_v35 = vrot.slane %v1263_v24, 2  ;;  %v1316_v36 = vrot.slane %v1263_v24, 4  ;;  %v1317_v37 = vrot.slane %v1263_v24, 6 }
 0x228   :  { %1750 = vst.msk [vmem:[#allocation5 + $0x10] sm:$0xf] %vm1696_vm15, %v1746_v21  ;;  %v2012_v18 = vld [vmem:[#allocation4 + $0x3a] sm:$0xf] }
 0x22a   :  { %v1240_v25 = vpop.f32.mrf.mxu0 }
 0x22b   :  { %v2056_v23 = vpop.permute.xlu1 %2055  ;;  %v1241_v30 = vadd.f32 %v5261_v29, %v1240_v25 }
 0x22c   :  { %2068 = vst.msk [vmem:[#allocation5] sm:$0xf] %vm2067_vm8, %v2056_v23 }
 0x22d   :  { %v1785_v31 = vld.sshfl [vmem:[#allocation1 + $0x20] sm:$0xff pattern:$0x75316420]  ;;  %v1264_v33 = vmax.f32 %v1241_v30, 0.0 }
 0x22e   :  { %v1793_v14 = vpack.c.bf16 %v1785_v31, %v1785_v31  ;;  %1842 = vst [vmem:[#allocation1 + $0x21] ss:$2 sm:$0xff] %v1821_v28  ;;  %v3849_v32 = vld [vmem:[#allocation5 + $0x8] sm:$0xf0] }
 0x22f   :  { %v3852_v34 = vor.u32 %v4339_v26, %v3849_v32  ;;  %1840 = vst [vmem:[#allocation1 + $0x20] ss:$2 sm:$0xff] %v1820_v27  ;;  %v1318_v38 = vrot.slane %v1264_v33, 2  ;;  %v1319_v39 = vrot.slane %v1264_v33, 4  ;;  %v1320_v40 = vrot.slane %v1264_v33, 6 }
 0x230   :  { %1803 = vrot.lane.b32.xlu1 %v1793_v14, %s4562_s18  ;;  %v1401_v41 = vmax.f32 %v1263_v24, %v1264_v33 }
 0x231   :  { %3897 = vmatmul.msk.bf16.vlgmr.msra.gmra.mxu2 %vm2346_vm11, %v3852_v34  ;;  %v1402_v42 = vmax.f32 %v1315_v35, %v1318_v38  ;;  %v1403_v43 = vmax.f32 %v1316_v36, %v1319_v39  ;;  %v1404_v44 = vmax.f32 %v1317_v37, %v1320_v40 }
 0x232   :  { %v3833_v45 = vrot.slane %v1401_v41, 9 }
 0x233   :  { %v3834_v46 = vrot.slane %v1402_v42, 9  ;;  %v3835_v47 = vrot.slane %v1403_v43, 9  ;;  %v3836_v48 = vrot.slane %v1404_v44, 9 }
 0x234   :  { %v1561_v49 = vmax.f32 %v1401_v41, %v3833_v45 }
 0x235   :  { %v1562_v53 = vmax.f32 %v1402_v42, %v3834_v46  ;;  %v1563_v54 = vmax.f32 %v1403_v43, %v3835_v47  ;;  %v1564_v55 = vmax.f32 %v1404_v44, %v3836_v48 }
 0x236   :  { %v1849_v51 = vld.sshfl [vmem:[#allocation1 + $0x20] sm:$0xff pattern:$0x75316420]  ;;  %v1649_v58 = vperm.slane %v1561_v49, 0 }
 0x237   :  { %1904 = vst [vmem:[#allocation1 + $0x20] ss:$2 sm:$0xff] %v1884_v50  ;;  %v1857_v56 = vpack.c.bf16 %v1849_v51, %v1849_v51  ;;  %v1650_v59 = vperm.slane %v1562_v53, 0  ;;  %v1651_v60 = vperm.slane %v1563_v54, 0  ;;  %v1652_v61 = vperm.slane %v1564_v55, 0 }
 0x238   :  { %2122 = vrot.lane.b32.xlu1 %v2113_v52, %s4579_s25 }
 0x239   :  { %1867 = vrot.lane.b32.xlu0 %v1857_v56, %s4576_s0  ;;  %v1679_v62 = vsel %vm1661_vm2, %v1650_v59, %v1649_v58 }
 0x23a   :  { %v1680_v63 = vsel %vm1663_vm3, %v1651_v60, %v1679_v62  ;;  %v1866_v5 = vpop.permute.xlu2 %1865 }
 0x23b   :  { %v1681_v2 = vsel %vm1665_vm9, %v1652_v61, %v1680_v63 }
 0x23c   :  { %1702 = vst.msk [vmem:[#allocation4 + $0x41] sm:$0xf] %vm1696_vm15, %v1681_v2 }
 0x241   :  { %2186 = vrot.lane.b32.xlu0 %v2177_v1, %s4580_s26  ;;  %v4350_v1 = vld [vmem:[%s5460_s3 + $0x38] sm:$0xff] }
 0x242   :  { %v2185_v12 = vpop.permute.xlu2 %2184  ;;  %2353 = vmatpush.bf16.msra.mxu1 %v4350_v1 }
 0x243   :  { %v1711_v3 = vld [vmem:[#allocation4 + $0x40] sm:$0xf] }
 0x244   :  { %1733 = vst [vmem:[#allocation1 + $0x30] ss:$2 sm:$0xff] %v1711_v3  ;;  %v1885_v4 = vld [vmem:[#allocation4 + $0x40] sm:$0xf] }
 0x245   :  { %1906 = vst [vmem:[#allocation1 + $0x21] ss:$2 sm:$0xff] %v1885_v4  ;;  %v1949_v10 = vld [vmem:[#allocation4 + $0x41] sm:$0xf] }
 0x246   :  { %v2013_v20 = vld [vmem:[#allocation4 + $0x42] sm:$0xf] }
 0x247   :  { %v2077_v38 = vld [vmem:[#allocation4 + $0x40] sm:$0xf] }
 0x248   :  { %v1802_v6 = vpop.permute.xlu0 %1801  ;;  %v1758_v59 = vld [vmem:[#allocation4 + $0x41] sm:$0xf] }
 0x249   :  { %1813 = vst.msk [vmem:[#allocation5 + $0x8] sm:$0xf] %vm1811_vm0, %v1802_v6  ;;  %v2141_v60 = vld [vmem:[#allocation4 + $0x41] sm:$0xf]  ;;  %v4349_v6 = vld [vmem:[%s5460_s3 + $0x30] sm:$0xff] }
 0x24a   :  { %1877 = vst.msk [vmem:[#allocation5 + $0x8] sm:$0xf] %vm1875_vm4, %v1866_v5  ;;  %v1822_v4 = vld [vmem:[#allocation4 + $0x42] sm:$0xf]  ;;  %2354 = vmatpush.bf16.msra.mxu1 %v4349_v6 }
 0x24b   :  { %v1243_v57 = vpop.f32.mrf.mxu0 }
 0x24c   :  { %v1913_v9 = vld.sshfl [vmem:[#allocation1 + $0x20] sm:$0xff pattern:$0x75316420]  ;;  %v1244_v13 = vadd.f32 %v5261_v29, %v1243_v57  ;;  %v2205_v57 = vld [vmem:[#allocation4 + $0x42] sm:$0xf] }
 0x24d   :  { %v1921_v11 = vpack.c.bf16 %v1913_v9, %v1913_v9  ;;  %1968 = vst [vmem:[#allocation1 + $0x20] ss:$2 sm:$0xff] %v1948_v8 }
 0x24e   :  { %1970 = vst [vmem:[#allocation1 + $0x21] ss:$2 sm:$0xff] %v1949_v10  ;;  %v1265_v15 = vmax.f32 %v1244_v13, 0.0 }
 0x24f   :  { %1931 = vrot.lane.b32.xlu2 %v1921_v11, %s4577_s23 }
 0x250   :  { %v2121_v7 = vpop.permute.xlu0 %2120  ;;  %v1321_v23 = vrot.slane %v1265_v15, 2  ;;  %v1322_v24 = vrot.slane %v1265_v15, 4  ;;  %v1323_v25 = vrot.slane %v1265_v15, 6 }
 0x251   :  { %2133 = vst.msk [vmem:[#allocation5] sm:$0xf] %vm2132_vm12, %v2121_v7 }
 0x252   :  { %2197 = vst.msk [vmem:[#allocation5] sm:$0xf] %vm2196_vm13, %v2185_v12 }
 0x253   :  { %v1245_v16 = vpop.f32.mrf.mxu0 }
 0x254   :  { %v1246_v17 = vadd.f32 %v5261_v29, %v1245_v16 }
 0x255   :  { %v1977_v19 = vld.sshfl [vmem:[#allocation1 + $0x20] sm:$0xff pattern:$0x75316420] }
 0x256   :  { %v1985_v21 = vpack.c.bf16 %v1977_v19, %v1977_v19  ;;  %2032 = vst [vmem:[#allocation1 + $0x20] ss:$2 sm:$0xff] %v2012_v18  ;;  %v1266_v22 = vmax.f32 %v1246_v17, 0.0 }
 0x257   :  { %2034 = vst [vmem:[#allocation1 + $0x21] ss:$2 sm:$0xff] %v2013_v20 }
 0x258   :  { %1995 = vrot.lane.b32.xlu1 %v1985_v21, %s4564_s21  ;;  %v1324_v26 = vrot.slane %v1266_v22, 2  ;;  %v1325_v27 = vrot.slane %v1266_v22, 4  ;;  %v1326_v28 = vrot.slane %v1266_v22, 6  ;;  %v1405_v30 = vmax.f32 %v1265_v15, %v1266_v22  ;;  %v4348_v15 = vld [vmem:[%s5460_s3 + $0x28] sm:$0xff] }
 0x259   :  { %2355 = vmatpush.bf16.msra.mxu1 %v4348_v15 }
 0x25a   :  { %v1406_v31 = vmax.f32 %v1321_v23, %v1324_v26  ;;  %v1407_v14 = vmax.f32 %v1322_v24, %v1325_v27  ;;  %v1408_v32 = vmax.f32 %v1323_v25, %v1326_v28  ;;  %v3837_v33 = vrot.slane %v1405_v30, 9  ;;  %v4347_v24 = vld [vmem:[%s5460_s3 + $0x20] sm:$0xff] }
 0x25c   :  { %v3838_v34 = vrot.slane %v1406_v31, 9  ;;  %v3839_v35 = vrot.slane %v1407_v14, 9  ;;  %v3840_v36 = vrot.slane %v1408_v32, 9  ;;  %v1565_v37 = vmax.f32 %v1405_v30, %v3837_v33 }
 0x25d   :  { %2356 = vmatpush.bf16.msra.mxu1 %v4347_v24 }
 0x25e   :  { %v1566_v39 = vmax.f32 %v1406_v31, %v3838_v34  ;;  %v1567_v40 = vmax.f32 %v1407_v14, %v3839_v35  ;;  %v1568_v41 = vmax.f32 %v1408_v32, %v3840_v36  ;;  %v2041_v42 = vld.sshfl [vmem:[#allocation1 + $0x20] sm:$0xff pattern:$0x75316420]  ;;  %v1653_v44 = vperm.slane %v1565_v37, 0 }
 0x25f   :  { %v2049_v43 = vpack.c.bf16 %v2041_v42, %v2041_v42  ;;  %2097 = vst [vmem:[#allocation1 + $0x20] ss:$2 sm:$0xff] %v2077_v38 }
 0x260   :  { %v1654_v45 = vperm.slane %v1566_v39, 0  ;;  %v1655_v46 = vperm.slane %v1567_v40, 0  ;;  %v1656_v47 = vperm.slane %v1568_v41, 0  ;;  %v4346_v41 = vld [vmem:[%s5460_s3 + $0x18] sm:$0xff] }
 0x261   :  { %2059 = vrot.lane.b32.xlu0 %v2049_v43, %s4578_s24  ;;  %2357 = vmatpush.bf16.msra.mxu1 %v4346_v41 }
 0x262   :  { %v1682_v48 = vsel %vm1661_vm2, %v1654_v45, %v1653_v44  ;;  %v4345_v45 = vld [vmem:[%s5460_s3 + $0x10] sm:$0xff] }
 0x263   :  { %v1683_v49 = vsel %vm1663_vm3, %v1655_v46, %v1682_v48 }
 0x264   :  { %v1684_v50 = vsel %vm1665_vm9, %v1656_v47, %v1683_v49  ;;  %v2058_v55 = vpop.permute.xlu2 %2057 }
 0x265   :  { %1703 = vst.msk [vmem:[#allocation4 + $0x49] sm:$0xf] %vm1696_vm15, %v1684_v50  ;;  %2358 = vmatpush.bf16.msra.mxu1 %v4345_v45  ;;  %v4344_v50 = vld [vmem:[%s5460_s3 + $0x8] sm:$0xff] }
 0x269   :  { %2359 = vmatpush.bf16.msra.mxu1 %v4344_v50 }
 0x26a   :  { %v1930_v51 = vpop.permute.xlu1 %1929 }
 0x26b   :  { %1941 = vst.msk [vmem:[#allocation5 + $0x8] sm:$0xf] %vm1939_vm6, %v1930_v51  ;;  %v4343_v51 = vld [vmem:[%s5460_s3] sm:$0xff] }
 0x26c   :  { %v1712_v52 = vld [vmem:[#allocation4 + $0x48] sm:$0xf] }
 0x26d   :  { %1735 = vst [vmem:[#allocation1 + $0x31] ss:$2 sm:$0xff] %v1712_v52  ;;  %v2078_v53 = vld [vmem:[#allocation4 + $0x48] sm:$0xf]  ;;  %2360 = vmatpush.bf16.msra.mxu1 %v4343_v51 }
 0x26e   :  { %2099 = vst [vmem:[#allocation1 + $0x21] ss:$2 sm:$0xff] %v2078_v53  ;;  %v1759_v58 = vld [vmem:[#allocation4 + $0x49] sm:$0xf] }
 0x26f   :  { %v2142_v63 = vld [vmem:[#allocation4 + $0x49] sm:$0xf] }
 0x270   :  { %v1823_v8 = vld [vmem:[#allocation4 + $0x4a] sm:$0xf] }
 0x271   :  { %v2206_v11 = vld [vmem:[#allocation4 + $0x4a] sm:$0xf] }
 0x273   :  { %v1994_v54 = vpop.permute.xlu0 %1993 }
 0x274   :  { %2005 = vst.msk [vmem:[#allocation5 + $0x8] sm:$0xf] %vm2003_vm7, %v1994_v54  ;;  %v1739_v56 = vld.sshfl [vmem:[#allocation1 + $0x30] sm:$0xff pattern:$0x75316420] }
 0x275   :  { %2069 = vst.msk [vmem:[#allocation5 + $0x8] sm:$0xf] %vm2067_vm8, %v2058_v55  ;;  %v1747_v61 = vpack.c.bf16 %v1739_v56, %v1739_v56  ;;  %v2106_v62 = vld.sshfl [vmem:[#allocation1 + $0x20] sm:$0xff pattern:$0x75316420] }
 0x276   :  { %1782 = vst [vmem:[#allocation1 + $0x31] ss:$2 sm:$0xff] %v1759_v58  ;;  %v2114_v26 = vpack.c.bf16 %v2106_v62, %v2106_v62  ;;  %v1950_v54 = vld [vmem:[#allocation4 + $0x49] sm:$0xf] }
 0x277   :  { %1780 = vst [vmem:[#allocation1 + $0x30] ss:$2 sm:$0xff] %v1758_v59  ;;  %v2014_v62 = vld [vmem:[#allocation4 + $0x4a] sm:$0xf] }
 0x278   :  { %2161 = vst [vmem:[#allocation1 + $0x20] ss:$2 sm:$0xff] %v2141_v60 }
 0x279   :  { %v1248_v2 = vpop.f32.mrf.mxu0  ;;  %2163 = vst [vmem:[#allocation1 + $0x21] ss:$2 sm:$0xff] %v2142_v63 }
 0x27a   :  { %1751 = vst.msk [vmem:[#allocation5 + $0x18] sm:$0xf] %vm1696_vm15, %v1747_v61  ;;  %v1249_v3 = vadd.f32 %v5261_v29, %v1248_v2 }
 0x27c   :  { %v1267_v7 = vmax.f32 %v1249_v3, 0.0 }
 0x27e   :  { %v1786_v5 = vld.sshfl [vmem:[#allocation1 + $0x30] sm:$0xff pattern:$0x75316420]  ;;  %v1327_v17 = vrot.slane %v1267_v7, 2  ;;  %v1328_v18 = vrot.slane %v1267_v7, 4  ;;  %v1329_v19 = vrot.slane %v1267_v7, 6 }
 0x27f   :  { %v1794_v9 = vpack.c.bf16 %v1786_v5, %v1786_v5  ;;  %1844 = vst [vmem:[#allocation1 + $0x30] ss:$2 sm:$0xff] %v1822_v4  ;;  %v2080_v4 = vld [vmem:[#allocation4 + $0x58] sm:$0xf] }
 0x280   :  { %1846 = vst [vmem:[#allocation1 + $0x31] ss:$2 sm:$0xff] %v1823_v8  ;;  %v5301_v10 = vld.sshfl [vmem:[#allocation1 + $0x20] sm:$0xff pattern:$0x75316420] }
 0x281   :  { %v1250_v12 = vpop.f32.mrf.mxu0  ;;  %1805 = vrot.lane.b32.xlu2 %v1794_v9, %s4562_s18  ;;  %2225 = vst [vmem:[#allocation1 + $0x20] ss:$2 sm:$0xff] %v2205_v57  ;;  %v3847_v8 = vld [vmem:[#allocation5] sm:$0xf]  ;;  %v2178_v15 = vpack.c.bf16 %v5301_v10, %v5301_v10 }
 0x282   :  { %v1251_v13 = vadd.f32 %v5261_v29, %v1250_v12  ;;  %2227 = vst [vmem:[#allocation1 + $0x21] ss:$2 sm:$0xff] %v2206_v11  ;;  %v1886_v29 = vld [vmem:[#allocation4 + $0x48] sm:$0xf] }
 0x284   :  { %v1268_v16 = vmax.f32 %v1251_v13, 0.0 }
 0x286   :  { %v1330_v20 = vrot.slane %v1268_v16, 2  ;;  %v1331_v21 = vrot.slane %v1268_v16, 4  ;;  %v1332_v22 = vrot.slane %v1268_v16, 6  ;;  %v1409_v23 = vmax.f32 %v1267_v7, %v1268_v16  ;;  %v2144_v7 = vld [vmem:[#allocation4 + $0x59] sm:$0xf] }
 0x287   :  { %v1850_v25 = vld.sshfl [vmem:[#allocation1 + $0x30] sm:$0xff pattern:$0x75316420] }
 0x288   :  { %v1410_v27 = vmax.f32 %v1327_v17, %v1330_v20  ;;  %v1411_v28 = vmax.f32 %v1328_v18, %v1331_v21  ;;  %v1412_v30 = vmax.f32 %v1329_v19, %v1332_v22  ;;  %v3841_v31 = vrot.slane %v1409_v23, 9  ;;  %1908 = vst [vmem:[#allocation1 + $0x30] ss:$2 sm:$0xff] %v1886_v29  ;;  %v2208_v17 = vld [vmem:[#allocation4 + $0x5a] sm:$0xf] }
 0x289   :  { %v1858_v14 = vpack.c.bf16 %v1850_v25, %v1850_v25  ;;  %2124 = vrot.lane.b32.xlu2 %v2114_v26, %s4579_s25  ;;  %v2234_v32 = vld.sshfl [vmem:[#allocation1 + $0x20] sm:$0xff pattern:$0x75316420] }
 0x28a   :  { %v3842_v33 = vrot.slane %v1410_v27, 9  ;;  %v3843_v34 = vrot.slane %v1411_v28, 9  ;;  %v3844_v35 = vrot.slane %v1412_v30, 9  ;;  %v1569_v36 = vmax.f32 %v1409_v23, %v3841_v31 }
 0x28b   :  { %1869 = vrot.lane.b32.xlu1 %v1858_v14, %s4576_s0  ;;  %v2242_v37 = vpack.c.bf16 %v2234_v32, %v2234_v32 }
 0x28c   :  { %v1570_v38 = vmax.f32 %v1410_v27, %v3842_v33  ;;  %v1571_v39 = vmax.f32 %v1411_v28, %v3843_v34  ;;  %v1572_v40 = vmax.f32 %v1412_v30, %v3844_v35  ;;  %v1657_v42 = vperm.slane %v1569_v36, 0  ;;  %v4479_v35 = vld [vmem:[%s5461_s4] ss:$0 sm:$0xff] }
 0x28d   :  { %2246 = vst.msk [vmem:[#allocation5 + $0x14] sm:$0xf] %vm1696_vm15, %v2242_v37 }
 0x28e   :  { %v1658_v43 = vperm.slane %v1570_v38, 0  ;;  %v1659_v44 = vperm.slane %v1571_v39, 0  ;;  %v1660_v46 = vperm.slane %v1572_v40, 0 }
 0x290   :  { %v1685_v47 = vsel %vm1661_vm2, %v1658_v43, %v1657_v42 }
 0x291   :  { %v1686_v48 = vsel %vm1663_vm3, %v1659_v44, %v1685_v47  ;;  %vm2557_vm3 = vcmask 519424  }
 0x292   :  { %v1687_v49 = vsel %vm1665_vm9, %v1660_v46, %v1686_v48  ;;  %vm2581_vm9 = vcmask 781824  }
 0x293   :  { %1704 = vst.msk [vmem:[#allocation4 + $0x51] sm:$0xf] %vm1696_vm15, %v1687_v49 }
 0x294   :  { %v4341_v24 = vld [vmem:[#allocation5 + $0x14] sm:$0xf] }
 0x29a   :  { %v1887_v52 = vld [vmem:[#allocation4 + $0x50] sm:$0xf] }
 0x29b   :  { %1910 = vst [vmem:[#allocation1 + $0x31] ss:$2 sm:$0xff] %v1887_v52  ;;  %v1951_v56 = vld [vmem:[#allocation4 + $0x51] sm:$0xf] }
 0x29c   :  { %v2015_v2 = vld [vmem:[#allocation4 + $0x52] sm:$0xf] }
 0x29d   :  { %v2079_v5 = vld [vmem:[#allocation4 + $0x50] sm:$0xf] }
 0x29e   :  { %v2143_v12 = vld [vmem:[#allocation4 + $0x51] sm:$0xf] }
 0x29f   :  { %v2207_v18 = vld [vmem:[#allocation4 + $0x52] sm:$0xf] }
 0x2a2   :  { %v1804_v53 = vpop.permute.xlu1 %1803  ;;  %v1914_v55 = vld.sshfl [vmem:[#allocation1 + $0x30] sm:$0xff pattern:$0x75316420] }
 0x2a3   :  { %1814 = vst.msk [vmem:[#allocation5 + $0x10] sm:$0xf] %vm1811_vm0, %v1804_v53  ;;  %v1922_v58 = vpack.c.bf16 %v1914_v55, %v1914_v55 }
 0x2a4   :  { %1972 = vst [vmem:[#allocation1 + $0x30] ss:$2 sm:$0xff] %v1950_v54 }
 0x2a5   :  { %1974 = vst [vmem:[#allocation1 + $0x31] ss:$2 sm:$0xff] %v1951_v56  ;;  %1933 = vrot.lane.b32.xlu0 %v1922_v58, %s4577_s23 }
 0x2a9   :  { %v1932_v61 = vpop.permute.xlu2 %1931 }
 0x2aa   :  { %v2123_v59 = vpop.permute.xlu1 %2122 }
 0x2ab   :  { %2134 = vst.msk [vmem:[#allocation5 + $0x8] sm:$0xf] %vm2132_vm12, %v2123_v59  ;;  %v1868_v60 = vpop.permute.xlu0 %1867 }
 0x2ac   :  { %1878 = vst.msk [vmem:[#allocation5 + $0x10] sm:$0xf] %vm1875_vm4, %v1868_v60  ;;  %v1978_v63 = vld.sshfl [vmem:[#allocation1 + $0x30] sm:$0xff pattern:$0x75316420] }
 0x2ad   :  { %1942 = vst.msk [vmem:[#allocation5 + $0x10] sm:$0xf] %vm1939_vm6, %v1932_v61  ;;  %v1986_v1 = vpack.c.bf16 %v1978_v63, %v1978_v63 }
 0x2ae   :  { %2036 = vst [vmem:[#allocation1 + $0x30] ss:$2 sm:$0xff] %v2014_v62 }
 0x2af   :  { %2038 = vst [vmem:[#allocation1 + $0x31] ss:$2 sm:$0xff] %v2015_v2  ;;  %1997 = vrot.lane.b32.xlu2 %v1986_v1, %s4564_s21 }
 0x2b3   :  { %v2187_v3 = vpop.permute.xlu0 %2186 }
 0x2b4   :  { %2198 = vst.msk [vmem:[#allocation5 + $0x8] sm:$0xf] %vm2196_vm13, %v2187_v3  ;;  %v2381_v36 = vpop.f32.mrf.mxu2 }
 0x2b6   :  { %v2042_v6 = vld.sshfl [vmem:[#allocation1 + $0x30] sm:$0xff pattern:$0x75316420] }
 0x2b7   :  { %v2050_v57 = vpack.c.bf16 %v2042_v6, %v2042_v6  ;;  %2101 = vst [vmem:[#allocation1 + $0x30] ss:$2 sm:$0xff] %v2079_v5 }
 0x2b8   :  { %2103 = vst [vmem:[#allocation1 + $0x31] ss:$2 sm:$0xff] %v2080_v4 }
 0x2b9   :  { %2061 = vrot.lane.b32.xlu1 %v2050_v57, %s4578_s24  ;;  %s4581_s24 = smov [#allocation13]  }
 0x2bb   :  { %v4340_v9 = vld [vmem:[#allocation5 + $0x4] sm:$0xf0] }
 0x2bc   :  { %v3848_v11 = vor.u32 %v4340_v9, %v3847_v8  ;;  %v2383_v50 = vpop.f32.mrf.mxu2 }
 0x2be   :  { %2361 = vmatmul.bf16.vlgmr.msra.gmra.mxu1 %v3848_v11 }
 0x2bf   :  { %v2107_v13 = vld.sshfl [vmem:[#allocation1 + $0x30] sm:$0xff pattern:$0x75316420] }
 0x2c0   :  { %v2115_v16 = vpack.c.bf16 %v2107_v13, %v2107_v13  ;;  %2165 = vst [vmem:[#allocation1 + $0x30] ss:$2 sm:$0xff] %v2143_v12 }
 0x2c1   :  { %2167 = vst [vmem:[#allocation1 + $0x31] ss:$2 sm:$0xff] %v2144_v7  ;;  %2188 = vrot.lane.b32.xlu1 %v2178_v15, %s4580_s26 }
 0x2c2   :  { %2126 = vrot.lane.b32.xlu0 %v2115_v16, %s4579_s25 }
 0x2c8   :  { %v2171_v19 = vld.sshfl [vmem:[#allocation1 + $0x30] sm:$0xff pattern:$0x75316420] }
 0x2c9   :  { %v2179_v20 = vpack.c.bf16 %v2171_v19, %v2171_v19  ;;  %2229 = vst [vmem:[#allocation1 + $0x30] ss:$2 sm:$0xff] %v2207_v18 }
 0x2ca   :  { %2231 = vst [vmem:[#allocation1 + $0x31] ss:$2 sm:$0xff] %v2208_v17  ;;  %v1996_v21 = vpop.permute.xlu1 %1995 }
 0x2cb   :  { %2190 = vrot.lane.b32.xlu2 %v2179_v20, %s4580_s26  ;;  %2006 = vst.msk [vmem:[#allocation5 + $0x10] sm:$0xf] %vm2003_vm7, %v1996_v21 }
 0x2d1   :  { %v2235_v22 = vld.sshfl [vmem:[#allocation1 + $0x30] sm:$0xff pattern:$0x75316420] }
 0x2d2   :  { %v2243_v10 = vpack.c.bf16 %v2235_v22, %v2235_v22 }
 0x2d3   :  { %v2060_v23 = vpop.permute.xlu0 %2059 }
 0x2d4   :  { %2247 = vst.msk [vmem:[#allocation5 + $0x1c] sm:$0xf] %vm1696_vm15, %v2243_v10  ;;  %vm2605_vm15 = vcmask 1044224  }
 0x2d5   :  { %2070 = vst.msk [vmem:[#allocation5 + $0x10] sm:$0xf] %vm2067_vm8, %v2060_v23 }
 0x2db   :  { %v3857_v29 = vld [vmem:[#allocation5 + $0x18] sm:$0xf0]  ;;  %v1806_v26 = vpop.permute.xlu2 %1805 }
 0x2dc   :  { %v3860_v25 = vor.u32 %v4341_v24, %v3857_v29  ;;  %1815 = vst.msk [vmem:[#allocation5 + $0x18] sm:$0xf] %vm1811_vm0, %v1806_v26  ;;  %vm3169_vm0 = vcmask 261120  }
 0x2de   :  { %3898 = vmatmul.msk.bf16.gmra.mxu2 %vm2346_vm11, %v3860_v25 }
 0x2e3   :  { %v2125_v27 = vpop.permute.xlu2 %2124 }
 0x2e4   :  { %2135 = vst.msk [vmem:[#allocation5 + $0x10] sm:$0xf] %vm2132_vm12, %v2125_v27 }
 0x2fd   :  { %v1870_v28 = vpop.permute.xlu1 %1869 }
 0x2fe   :  { %1879 = vst.msk [vmem:[#allocation5 + $0x18] sm:$0xf] %vm1875_vm4, %v1870_v28  ;;  %vm3340_vm4 = vcmask 1041408  }
 0x309   :  { %v1998_v31 = vpop.permute.xlu2 %1997 }
 0x317   :  { %v1934_v30 = vpop.permute.xlu0 %1933 }
 0x318   :  { %1943 = vst.msk [vmem:[#allocation5 + $0x18] sm:$0xf] %vm1939_vm6, %v1934_v30  ;;  %vm3346_vm6 = vcmask 1043458  }
 0x319   :  { %2007 = vst.msk [vmem:[#allocation5 + $0x18] sm:$0xf] %vm2003_vm7, %v1998_v31  ;;  %vm3344_vm7 = vcmask 1043456  }
 0x325   :  { %v2191_v34 = vpop.permute.xlu2 %2190 }
 0x32b   :  { %v2062_v14 = vpop.permute.xlu1 %2061 }
 0x32c   :  { %2071 = vst.msk [vmem:[#allocation5 + $0x18] sm:$0xf] %vm2067_vm8, %v2062_v14  ;;  %vm3349_vm8 = vcmask 1045506  }
 0x333   :  { %v2189_v32 = vpop.permute.xlu1 %2188 }
 0x334   :  { %v2127_v33 = vpop.permute.xlu0 %2126  ;;  %2199 = vst.msk [vmem:[#allocation5 + $0x10] sm:$0xf] %vm2196_vm13, %v2189_v32 }
 0x335   :  { %2136 = vst.msk [vmem:[#allocation5 + $0x18] sm:$0xf] %vm2132_vm12, %v2127_v33 }
 0x336   :  { %2200 = vst.msk [vmem:[#allocation5 + $0x18] sm:$0xf] %vm2196_vm13, %v2191_v34 }
 0x33b   :  { %v2362_v37 = vpop.f32.mrf.mxu1  ;;  %v3855_v38 = vld [vmem:[#allocation5 + $0x10] sm:$0xf] }
 0x33c   :  { %v2363_v39 = vadd.f32 %v4479_v35, %v2362_v37 }
 0x33d   :  { %v4342_v40 = vld [vmem:[#allocation5 + $0x14] sm:$0xf0] }
 0x33e   :  { %v2382_v41 = vadd.f32 %v2381_v36, %v2363_v39  ;;  %v3856_v0 = vor.u32 %v4342_v40, %v3855_v38 }
 0x340   :  { %v2391_v42 = vmax.f32 %v2382_v41, 0.0  ;;  %2366 = vmatmul.bf16.gmra.mxu1 %v3856_v0 }
 0x342   :  { %v2399_v43 = vrot.slane %v2391_v42, 2  ;;  %v2400_v44 = vrot.slane %v2391_v42, 4  ;;  %v2401_v45 = vrot.slane %v2391_v42, 6 }
 0x343   :  { %v2364_v46 = vpop.f32.mrf.mxu1 }
 0x344   :  { %v2423_v47 = vmax.f32 %v2391_v42, %v2400_v44  ;;  %v2424_v48 = vmax.f32 %v2399_v43, %v2401_v45  ;;  %v2365_v49 = vadd.f32 %v4479_v35, %v2364_v46  ;;  %v2535_v44 = vld [vmem:[#allocation6 + $0x1] sm:$0x3]  ;;  %v2537_v46 = vld [vmem:[#allocation6 + $0x11] sm:$0x3] }
 0x346   :  { %v3899_v51 = vrot.slane %v2423_v47, 9  ;;  %v3900_v52 = vrot.slane %v2424_v48, 9  ;;  %v2384_v53 = vadd.f32 %v2383_v50, %v2365_v49  ;;  %v2559_v50 = vld [vmem:[#allocation6 + $0x2] sm:$0x3] }
 0x348   :  { %v2463_v54 = vmax.f32 %v2423_v47, %v3899_v51  ;;  %v2464_v55 = vmax.f32 %v2424_v48, %v3900_v52  ;;  %v2392_v56 = vmax.f32 %v2384_v53, 0.0 }
 0x34a   :  { %v2495_v58 = vperm.slane %v2463_v54, 0  ;;  %v2496_v59 = vperm.slane %v2464_v55, 0  ;;  %v2402_v60 = vrot.slane %v2392_v56, 2  ;;  %v2403_v61 = vrot.slane %v2392_v56, 4  ;;  %v2561_v55 = vld [vmem:[#allocation6 + $0x12] sm:$0x3] }
 0x34b   :  { %v2404_v62 = vrot.slane %v2392_v56, 6 }
 0x34c   :  { %v2503_v63 = vsel %vm1661_vm2, %v2496_v59, %v2495_v58  ;;  %v2425_v2 = vmax.f32 %v2392_v56, %v2403_v61 }
 0x34d   :  { %2512 = vst.msk [vmem:[#allocation6 + $0x5] sm:$0x3] %vm2511_vm1, %v2503_v63  ;;  %v2426_v1 = vmax.f32 %v2402_v60, %v2404_v62 }
 0x34e   :  { %v3901_v3 = vrot.slane %v2425_v2, 9 }
 0x34f   :  { %v3902_v4 = vrot.slane %v2426_v1, 9 }
 0x350   :  { %v2465_v5 = vmax.f32 %v2425_v2, %v3901_v3 }
 0x351   :  { %v2466_v6 = vmax.f32 %v2426_v1, %v3902_v4 }
 0x352   :  { %v2497_v57 = vperm.slane %v2465_v5, 0 }
 0x353   :  { %v2498_v8 = vperm.slane %v2466_v6, 0 }
 0x354   :  { %v2517_v9 = vld [vmem:[#allocation6 + $0x4] sm:$0x3]  ;;  %v2560_v53 = vld [vmem:[#allocation6 + $0x6] sm:$0x3] }
 0x355   :  { %2526 = vst [vmem:[#allocation1 + $0x1] ss:$4 sm:$0xff] %v2517_v9  ;;  %v2504_v11 = vsel %vm1661_vm2, %v2498_v8, %v2497_v57  ;;  %v2536_v47 = vld [vmem:[#allocation6 + $0x5] sm:$0x3] }
 0x356   :  { %2513 = vst.msk [vmem:[#allocation6 + $0x9] sm:$0x3] %vm2511_vm1, %v2504_v11  ;;  %v2583_v56 = vld [vmem:[#allocation6 + $0x4] sm:$0x3]  ;;  %v2626_v5 = vld [vmem:[#allocation6 + $0x6] sm:$0x3] }
 0x357   :  { %v2607_v63 = vld [vmem:[#allocation6 + $0x5] sm:$0x3] }
 0x35d   :  { %v2584_v59 = vld [vmem:[#allocation6 + $0x8] sm:$0x3]  ;;  %v2627_v57 = vld [vmem:[#allocation6 + $0xa] sm:$0x3] }
 0x35e   :  { %v2608_v1 = vld [vmem:[#allocation6 + $0x9] sm:$0x3] }
 0x361   :  { %v2386_v7 = vpop.f32.mrf.mxu2 }
 0x369   :  { %v2388_v23 = vpop.f32.mrf.mxu2 }
 0x3bd   :  { %v2367_v12 = vpop.f32.mrf.mxu1 }
 0x3be   :  { %v2368_v13 = vadd.f32 %v4479_v35, %v2367_v12 }
 0x3c0   :  { %v2387_v15 = vadd.f32 %v2386_v7, %v2368_v13  ;;  %v2650_v7 = vld [vmem:[#allocation6 + $0x8] sm:$0x3]  ;;  %v2651_v13 = vld [vmem:[#allocation6 + $0xc] sm:$0x3] }
 0x3c2   :  { %v2393_v16 = vmax.f32 %v2387_v15, 0.0 }
 0x3c4   :  { %v2405_v17 = vrot.slane %v2393_v16, 2  ;;  %v2406_v18 = vrot.slane %v2393_v16, 4  ;;  %v2407_v19 = vrot.slane %v2393_v16, 6 }
 0x3c5   :  { %v2369_v20 = vpop.f32.mrf.mxu1 }
 0x3c6   :  { %v2427_v21 = vmax.f32 %v2393_v16, %v2406_v18  ;;  %v2428_v22 = vmax.f32 %v2405_v17, %v2407_v19  ;;  %v2370_v10 = vadd.f32 %v4479_v35, %v2369_v20  ;;  %v2653_v17 = vld [vmem:[#allocation6 + $0x1c] sm:$0x3]  ;;  %v2673_v19 = vld [vmem:[#allocation6 + $0x9] sm:$0x3] }
 0x3c8   :  { %v3903_v24 = vrot.slane %v2427_v21, 9  ;;  %v3904_v29 = vrot.slane %v2428_v22, 9  ;;  %v2389_v25 = vadd.f32 %v2388_v23, %v2370_v10  ;;  %v2676_v23 = vld [vmem:[#allocation6 + $0x1d] sm:$0x3] }
 0x3ca   :  { %v2467_v26 = vmax.f32 %v2427_v21, %v3903_v24  ;;  %v2468_v27 = vmax.f32 %v2428_v22, %v3904_v29  ;;  %v2394_v28 = vmax.f32 %v2389_v25, 0.0  ;;  %v2674_v21 = vld [vmem:[#allocation6 + $0xd] sm:$0x3]  ;;  %v2696_v24 = vld [vmem:[#allocation6 + $0xa] sm:$0x3] }
 0x3cb   :  { %v2697_v25 = vld [vmem:[#allocation6 + $0xe] sm:$0x3] }
 0x3cc   :  { %v2499_v30 = vperm.slane %v2467_v26, 0  ;;  %v2500_v31 = vperm.slane %v2468_v27, 0  ;;  %v2408_v14 = vrot.slane %v2394_v28, 2  ;;  %v2409_v32 = vrot.slane %v2394_v28, 4 }
 0x3cd   :  { %v2410_v33 = vrot.slane %v2394_v28, 6 }
 0x3ce   :  { %v2505_v34 = vsel %vm1661_vm2, %v2500_v31, %v2499_v30  ;;  %v2429_v36 = vmax.f32 %v2394_v28, %v2409_v32  ;;  %v2699_v28 = vld [vmem:[#allocation6 + $0x1e] sm:$0x3]  ;;  %v4380_v30 = vld [vmem:[#allocation8 + $0xe4] sm:$0xf]  ;;  %v4023_v31 = vld [vmem:[#allocation8 + $0xf0] sm:$0xf0] }
 0x3cf   :  { %2514 = vst.msk [vmem:[#allocation6 + $0x15] sm:$0x3] %vm2511_vm1, %v2505_v34  ;;  %v2430_v37 = vmax.f32 %v2408_v14, %v2410_v33  ;;  %v4026_v14 = vor.u32 %v4380_v30, %v4023_v31  ;;  %v4376_v34 = vld [vmem:[#allocation8 + $0xc4] sm:$0xf]  ;;  %v3997_v30 = vld [vmem:[#allocation8 + $0xa8] sm:$0xf] }
 0x3d0   :  { %v3905_v38 = vrot.slane %v2429_v36, 9  ;;  %v4375_v31 = vld [vmem:[#allocation8 + $0xb4] sm:$0xf0] }
 0x3d1   :  { %v3906_v35 = vrot.slane %v2430_v37, 9  ;;  %3212 = vmatpush.bf16.msrb.mxu1 %v4026_v14  ;;  %v3973_v14 = vld [vmem:[#allocation8 + $0x80] sm:$0xf] }
 0x3d2   :  { %v2469_v39 = vmax.f32 %v2429_v36, %v3905_v38  ;;  %v4007_v36 = vld [vmem:[#allocation8 + $0xd0] sm:$0xf0] }
 0x3d3   :  { %v2470_v40 = vmax.f32 %v2430_v37, %v3906_v35  ;;  %v4372_v37 = vld [vmem:[#allocation8 + $0xa4] sm:$0xf]  ;;  %v4010_v38 = vor.u32 %v4376_v34, %v4007_v36  ;;  %v3991_v35 = vld [vmem:[#allocation8 + $0xb0] sm:$0xf0]  ;;  %v4386_v34 = vld [vmem:[#allocation8 + $0x10c] sm:$0xf0] }
 0x3d4   :  { %v2501_v41 = vperm.slane %v2469_v39, 0  ;;  %v4149_v39 = vld [vmem:[#allocation8 + $0x1e0] sm:$0xf]  ;;  %v4412_v36 = vld [vmem:[#allocation8 + $0x1e4] sm:$0xf] }
 0x3d5   :  { %v2502_v0 = vperm.slane %v2470_v40, 0  ;;  %v4414_v40 = vld [vmem:[#allocation8 + $0x1ec] sm:$0xf0]  ;;  %3213 = vmatpush.bf16.msrb.mxu1 %v4010_v38  ;;  %v3998_v38 = vor.u32 %v4375_v31, %v3997_v30  ;;  %v4384_v30 = vld [vmem:[#allocation8 + $0x104] sm:$0xf] }
 0x3d6   :  { %v2519_v42 = vld [vmem:[#allocation6 + $0x14] sm:$0x3]  ;;  %v2562_v52 = vld [vmem:[#allocation6 + $0x16] sm:$0x3]  ;;  %v4039_v31 = vld [vmem:[#allocation8 + $0x110] sm:$0xf0] }
 0x3d7   :  { %2530 = vst [vmem:[#allocation1 + $0x3] ss:$4 sm:$0xff] %v2519_v42  ;;  %v2506_v43 = vsel %vm1661_vm2, %v2502_v0, %v2501_v41  ;;  %v2538_v49 = vld [vmem:[#allocation6 + $0x15] sm:$0x3]  ;;  %v4150_v41 = vor.u32 %v4414_v40, %v4149_v39  ;;  %v4133_v0 = vld [vmem:[#allocation8 + $0x1c0] sm:$0xf]  ;;  %v3994_v42 = vor.u32 %v4372_v37, %v3991_v35 }
 0x3d8   :  { %2515 = vst.msk [vmem:[#allocation6 + $0x19] sm:$0x3] %vm2511_vm1, %v2506_v43  ;;  %v2585_v61 = vld [vmem:[#allocation6 + $0x14] sm:$0x3]  ;;  %v2628_v9 = vld [vmem:[#allocation6 + $0x16] sm:$0x3] }
 0x3d9   :  { %v2609_v3 = vld [vmem:[#allocation6 + $0x15] sm:$0x3]  ;;  %v4410_v43 = vld [vmem:[#allocation8 + $0x1cc] sm:$0xf0]  ;;  %3186 = vmatpush.bf16.msrb.mxu2 %v4150_v41  ;;  %3214 = vmatpush.bf16.msrb.mxu1 %v3994_v42  ;;  %v4151_v37 = vld [vmem:[#allocation8 + $0x1f0] sm:$0xf0] }
 0x3da   :  { %v3981_v40 = vld [vmem:[#allocation8 + $0x88] sm:$0xf]  ;;  %v4371_v41 = vld [vmem:[#allocation8 + $0x94] sm:$0xf0]  ;;  %v3957_v42 = vld [vmem:[#allocation8 + $0x60] sm:$0xf] }
 0x3de   :  { %v2531_v45 = vld.sshfl [vmem:[#allocation1] sm:$0xff pattern:$0x73625140] }
 0x3df   :  { %2543 = vst [vmem:[#allocation1] ss:$4 sm:$0xff] %v2535_v44  ;;  %v2533_v48 = vpack.c.bf16 %v2531_v45, %v2531_v45  ;;  %v2586_v62 = vld [vmem:[#allocation6 + $0x18] sm:$0x3]  ;;  %v2629_v11 = vld [vmem:[#allocation6 + $0x1a] sm:$0x3] }
 0x3e0   :  { %2545 = vst [vmem:[#allocation1 + $0x1] ss:$4 sm:$0xff] %v2536_v47  ;;  %v2610_v4 = vld [vmem:[#allocation6 + $0x19] sm:$0x3]  ;;  %v4368_v44 = vld [vmem:[#allocation8 + $0x84] sm:$0xf] }
 0x3e1   :  { %2547 = vst [vmem:[#allocation1 + $0x2] ss:$4 sm:$0xff] %v2537_v46  ;;  %v2652_v15 = vld [vmem:[#allocation6 + $0x18] sm:$0x3]  ;;  %v2698_v26 = vld [vmem:[#allocation6 + $0x1a] sm:$0x3]  ;;  %v4134_v46 = vor.u32 %v4410_v43, %v4133_v0  ;;  %v4154_v0 = vor.u32 %v4412_v36, %v4151_v37 }
 0x3e2   :  { %2549 = vst [vmem:[#allocation1 + $0x3] ss:$4 sm:$0xff] %v2538_v49  ;;  %v2675_v22 = vld [vmem:[#allocation6 + $0x19] sm:$0x3]  ;;  %v3975_v45 = vld [vmem:[#allocation8 + $0x90] sm:$0xf0] }
 0x3e3   :  { %2534 = vst.msk [vmem:[#allocation7] sm:$0xf] %vm2471_vm5, %v2533_v48  ;;  %v4117_v47 = vld [vmem:[#allocation8 + $0x1a0] sm:$0xf]  ;;  %v4406_v48 = vld [vmem:[#allocation8 + $0x1ac] sm:$0xf0]  ;;  %3187 = vmatpush.bf16.msrb.mxu2 %v4134_v46 }
 0x3e4   :  { %v4021_v49 = vld [vmem:[#allocation8 + $0xe0] sm:$0xf]  ;;  %v4366_v43 = vld [vmem:[#allocation8 + $0x6c] sm:$0xf0]  ;;  %v4408_v46 = vld [vmem:[#allocation8 + $0x1c4] sm:$0xf] }
 0x3e5   :  { %v4413_v36 = vld [vmem:[#allocation8 + $0x1ec] sm:$0xf]  ;;  %v4159_v37 = vld [vmem:[#allocation8 + $0x1f8] sm:$0xf0] }
 0x3e9   :  { %v2550_v51 = vld.sshfl [vmem:[#allocation1] sm:$0xff pattern:$0x73625140] }
 0x3ea   :  { %2573 = vst [vmem:[#allocation1 + $0x3] ss:$4 sm:$0xff] %v2562_v52  ;;  %v2552_v54 = vpack.c.bf16 %v2550_v51, %v2550_v51  ;;  %v4382_v51 = vld [vmem:[#allocation8 + $0xec] sm:$0xf0]  ;;  %v4364_v52 = vld [vmem:[#allocation8 + $0x64] sm:$0xf] }
 0x3eb   :  { %2569 = vst [vmem:[#allocation1 + $0x1] ss:$4 sm:$0xff] %v2560_v53  ;;  %v3959_v53 = vld [vmem:[#allocation8 + $0x70] sm:$0xf0] }
 0x3ec   :  { %2554 = vrot.lane.b32.xlu0 %v2552_v54, %s4576_s0  ;;  %2567 = vst [vmem:[#allocation1] ss:$4 sm:$0xff] %v2559_v50  ;;  %v3978_v50 = vor.u32 %v4368_v44, %v3975_v45  ;;  %v4118_v54 = vor.u32 %v4406_v48, %v4117_v47  ;;  %v3982_v44 = vor.u32 %v4371_v41, %v3981_v40  ;;  %v4135_v47 = vld [vmem:[#allocation8 + $0x1d0] sm:$0xf0]  ;;  %v3965_v48 = vld [vmem:[#allocation8 + $0x68] sm:$0xf] }
 0x3ed   :  { %2571 = vst [vmem:[#allocation1 + $0x2] ss:$4 sm:$0xff] %v2561_v55  ;;  %v4022_v55 = vor.u32 %v4382_v51, %v4021_v49  ;;  %v3958_v45 = vor.u32 %v4366_v43, %v3957_v42  ;;  %v4138_v49 = vor.u32 %v4408_v46, %v4135_v47  ;;  %v3941_v51 = vld [vmem:[#allocation8 + $0x40] sm:$0xf]  ;;  %v4189_v40 = vld [vmem:[#allocation8 + $0x228] sm:$0xf]  ;;  %v4162_v46 = vor.u32 %v4413_v36, %v4159_v37 }
 0x3ee   :  { %3215 = vmatpush.bf16.msrb.mxu1 %v3978_v50  ;;  %3188 = vmatpush.bf16.msrb.mxu2 %v4118_v54  ;;  %v4367_v50 = vld [vmem:[#allocation8 + $0x74] sm:$0xf0]  ;;  %v4409_v47 = vld [vmem:[#allocation8 + $0x1cc] sm:$0xf]  ;;  %v4047_v36 = vld [vmem:[#allocation8 + $0x118] sm:$0xf0] }
 0x3ef   :  { %3173 = vmatpush.bf16.msra.mxu3 %v4022_v55  ;;  %v4404_v55 = vld [vmem:[#allocation8 + $0x1a4] sm:$0xf]  ;;  %v4423_v41 = vld [vmem:[#allocation8 + $0x234] sm:$0xf0] }
 0x3f4   :  { %v2574_v58 = vld.sshfl [vmem:[#allocation1] sm:$0xff pattern:$0x73625140] }
 0x3f5   :  { %v2576_v60 = vpack.c.bf16 %v2574_v58, %v2574_v58  ;;  %2591 = vst [vmem:[#allocation1] ss:$4 sm:$0xff] %v2583_v56  ;;  %v4101_v56 = vld [vmem:[#allocation8 + $0x180] sm:$0xf]  ;;  %v4402_v58 = vld [vmem:[#allocation8 + $0x18c] sm:$0xf0] }
 0x3f6   :  { %2593 = vst [vmem:[#allocation1 + $0x1] ss:$4 sm:$0xff] %v2584_v59  ;;  %v3962_v59 = vor.u32 %v4364_v52, %v3959_v53  ;;  %v4362_v52 = vld [vmem:[#allocation8 + $0x4c] sm:$0xf0]  ;;  %v3966_v53 = vor.u32 %v4367_v50, %v3965_v48  ;;  %v4190_v48 = vor.u32 %v4423_v41, %v4189_v40  ;;  %v4167_v50 = vld [vmem:[#allocation8 + $0x210] sm:$0xf0] }
 0x3f7   :  { %2578 = vrot.lane.b32.xlu2 %v2576_v60, %s4564_s21  ;;  %2595 = vst [vmem:[#allocation1 + $0x2] ss:$4 sm:$0xff] %v2585_v61  ;;  %v4360_v60 = vld [vmem:[#allocation8 + $0x44] sm:$0xf]  ;;  %v3943_v61 = vld [vmem:[#allocation8 + $0x50] sm:$0xf0]  ;;  %v3942_v54 = vor.u32 %v4362_v52, %v3941_v51 }
 0x3f8   :  { %2597 = vst [vmem:[#allocation1 + $0x3] ss:$4 sm:$0xff] %v2586_v62  ;;  %v4102_v62 = vor.u32 %v4402_v58, %v4101_v56  ;;  %3216 = vmatpush.bf16.msrb.mxu1 %v3962_v59  ;;  %v4119_v56 = vld [vmem:[#allocation8 + $0x1b0] sm:$0xf0]  ;;  %v3949_v58 = vld [vmem:[#allocation8 + $0x48] sm:$0xf] }
 0x3f9   :  { %v4122_v59 = vor.u32 %v4404_v55, %v4119_v56  ;;  %v4143_v51 = vld [vmem:[#allocation8 + $0x1d8] sm:$0xf0]  ;;  %v4173_v52 = vld [vmem:[#allocation8 + $0x208] sm:$0xf]  ;;  %v4399_v40 = vld [vmem:[#allocation8 + $0x174] sm:$0xf0] }
 0x3fa   :  { %3189 = vmatpush.bf16.msrb.mxu2 %v4102_v62  ;;  %v4358_v62 = vld [vmem:[#allocation8 + $0x2c] sm:$0xf0]  ;;  %v4146_v55 = vor.u32 %v4409_v47, %v4143_v51  ;;  %v4365_v41 = vld [vmem:[#allocation8 + $0x6c] sm:$0xf]  ;;  %v4395_v47 = vld [vmem:[#allocation8 + $0x154] sm:$0xf0] }
 0x3ff   :  { %v2598_v2 = vld.sshfl [vmem:[#allocation1] sm:$0xff pattern:$0x73625140] }
 0x400   :  { %2615 = vst [vmem:[#allocation1] ss:$4 sm:$0xff] %v2607_v63  ;;  %v2600_v18 = vpack.c.bf16 %v2598_v2, %v2598_v2  ;;  %v4085_v63 = vld [vmem:[#allocation8 + $0x160] sm:$0xf]  ;;  %v4398_v2 = vld [vmem:[#allocation8 + $0x16c] sm:$0xf0] }
 0x401   :  { %2617 = vst [vmem:[#allocation1 + $0x1] ss:$4 sm:$0xff] %v2608_v1  ;;  %v3946_v1 = vor.u32 %v4360_v60, %v3943_v61  ;;  %v4363_v60 = vld [vmem:[#allocation8 + $0x54] sm:$0xf0]  ;;  %v3925_v61 = vld [vmem:[#allocation8 + $0x20] sm:$0xf] }
 0x402   :  { %2619 = vst [vmem:[#allocation1 + $0x2] ss:$4 sm:$0xff] %v2609_v3  ;;  %v4356_v3 = vld [vmem:[#allocation8 + $0x24] sm:$0xf] }
 0x403   :  { %2621 = vst [vmem:[#allocation1 + $0x3] ss:$4 sm:$0xff] %v2610_v4  ;;  %v3927_v4 = vld [vmem:[#allocation8 + $0x30] sm:$0xf0]  ;;  %3217 = vmatpush.bf16.msrb.mxu1 %v3946_v1 }
 0x404   :  { %v4103_v1 = vld [vmem:[#allocation8 + $0x190] sm:$0xf0] }
 0x40a   :  { %v2622_v6 = vld.sshfl [vmem:[#allocation1] sm:$0xff pattern:$0x73625140] }
 0x40b   :  { %2634 = vst [vmem:[#allocation1] ss:$4 sm:$0xff] %v2626_v5  ;;  %v2624_v8 = vpack.c.bf16 %v2622_v6, %v2622_v6  ;;  %v4086_v5 = vor.u32 %v4398_v2, %v4085_v63  ;;  %v3930_v6 = vor.u32 %v4356_v3, %v3927_v4  ;;  %v3950_v63 = vor.u32 %v4363_v60, %v3949_v58  ;;  %v4400_v2 = vld [vmem:[#allocation8 + $0x184] sm:$0xf]  ;;  %v3933_v4 = vld [vmem:[#allocation8 + $0x28] sm:$0xf] }
 0x40c   :  { %2636 = vst [vmem:[#allocation1 + $0x1] ss:$4 sm:$0xff] %v2627_v57  ;;  %v3926_v3 = vor.u32 %v4358_v62, %v3925_v61  ;;  %v4405_v58 = vld [vmem:[#allocation8 + $0x1ac] sm:$0xf]  ;;  %v4111_v62 = vld [vmem:[#allocation8 + $0x198] sm:$0xf0] }
 0x40d   :  { %2638 = vst [vmem:[#allocation1 + $0x2] ss:$4 sm:$0xff] %v2628_v9  ;;  %3190 = vmatpush.bf16.msrb.mxu2 %v4086_v5  ;;  %3218 = vmatpush.bf16.msrb.mxu1 %v3930_v6  ;;  %v4352_v9 = vld [vmem:[#allocation8 + $0x4] sm:$0xf]  ;;  %v4359_v5 = vld [vmem:[#allocation8 + $0x34] sm:$0xf0] }
 0x40e   :  { %2640 = vst [vmem:[#allocation1 + $0x3] ss:$4 sm:$0xff] %v2629_v11  ;;  %v3911_v11 = vld [vmem:[#allocation8 + $0x10] sm:$0xf0]  ;;  %v3909_v6 = vld [vmem:[#allocation8] sm:$0xf] }
 0x40f   :  { %2625 = vst.msk [vmem:[#allocation7 + $0x4] sm:$0xf] %vm2471_vm5, %v2624_v8  ;;  %v4401_v61 = vld [vmem:[#allocation8 + $0x18c] sm:$0xf] }
 0x415   :  { %v2641_v12 = vld.sshfl [vmem:[#allocation1] sm:$0xff pattern:$0x73625140] }
 0x416   :  { %v2643_v16 = vpack.c.bf16 %v2641_v12, %v2641_v12  ;;  %2658 = vst [vmem:[#allocation1] ss:$4 sm:$0xff] %v2650_v7  ;;  %v3914_v7 = vor.u32 %v4352_v9, %v3911_v11  ;;  %v4029_v12 = vld [vmem:[#allocation8 + $0xe8] sm:$0xf]  ;;  %v3934_v9 = vor.u32 %v4359_v5, %v3933_v4  ;;  %v4396_v11 = vld [vmem:[#allocation8 + $0x164] sm:$0xf] }
 0x417   :  { %2662 = vst [vmem:[#allocation1 + $0x2] ss:$4 sm:$0xff] %v2652_v15  ;;  %v4005_v15 = vld [vmem:[#allocation8 + $0xc0] sm:$0xf]  ;;  %v4415_v4 = vld [vmem:[#allocation8 + $0x1f4] sm:$0xf0] }
 0x418   :  { %2645 = vrot.lane.b32.xlu1 %v2643_v16, %s4576_s0  ;;  %2660 = vst [vmem:[#allocation1 + $0x1] ss:$4 sm:$0xff] %v2651_v13  ;;  %v4383_v13 = vld [vmem:[#allocation8 + $0xf4] sm:$0xf0]  ;;  %3219 = vmatpush.bf16.msrb.mxu1 %v3914_v7  ;;  %v4087_v7 = vld [vmem:[#allocation8 + $0x170] sm:$0xf0] }
 0x419   :  { %2664 = vst [vmem:[#allocation1 + $0x3] ss:$4 sm:$0xff] %v2653_v17  ;;  %v4030_v16 = vor.u32 %v4383_v13, %v4029_v12  ;;  %v4378_v17 = vld [vmem:[#allocation8 + $0xcc] sm:$0xf0]  ;;  %v4090_v13 = vor.u32 %v4396_v11, %v4087_v7  ;;  %v4381_v5 = vld [vmem:[#allocation8 + $0xec] sm:$0xf] }
 0x41c   :  { %3251 = vmatpush.bf16.msra.mxu1 %v4030_v16  ;;  %v4422_v16 = vld [vmem:[#allocation8 + $0x22c] sm:$0xf0] }
 0x420   :  { %2602 = vrot.lane.b32.xlu1 %v2600_v18, %s4579_s25  ;;  %v2665_v20 = vld.sshfl [vmem:[#allocation1] sm:$0xff pattern:$0x73625140]  ;;  %v4069_v18 = vld [vmem:[#allocation8 + $0x140] sm:$0xf] }
 0x421   :  { %v2667_v10 = vpack.c.bf16 %v2665_v20, %v2665_v20  ;;  %2681 = vst [vmem:[#allocation1] ss:$4 sm:$0xff] %v2673_v19  ;;  %v4394_v19 = vld [vmem:[#allocation8 + $0x14c] sm:$0xf0]  ;;  %v4006_v20 = vor.u32 %v4378_v17, %v4005_v15  ;;  %v4181_v15 = vld [vmem:[#allocation8 + $0x220] sm:$0xf] }
 0x422   :  { %2685 = vst [vmem:[#allocation1 + $0x2] ss:$4 sm:$0xff] %v2675_v22  ;;  %v4013_v22 = vld [vmem:[#allocation8 + $0xc8] sm:$0xf]  ;;  %v4182_v17 = vor.u32 %v4422_v16, %v4181_v15  ;;  %v4411_v15 = vld [vmem:[#allocation8 + $0x1d4] sm:$0xf0] }
 0x423   :  { %2669 = vrot.lane.b32.xlu0 %v2667_v10, %s4564_s21  ;;  %2683 = vst [vmem:[#allocation1 + $0x1] ss:$4 sm:$0xff] %v2674_v21  ;;  %v4070_v21 = vor.u32 %v4394_v19, %v4069_v18  ;;  %v4379_v10 = vld [vmem:[#allocation8 + $0xd4] sm:$0xf0]  ;;  %3174 = vmatpush.bf16.msra.mxu3 %v4006_v20  ;;  %v3917_v18 = vld [vmem:[#allocation8 + $0x8] sm:$0xf] }
 0x424   :  { %2687 = vst [vmem:[#allocation1 + $0x3] ss:$4 sm:$0xff] %v2676_v23  ;;  %v3989_v23 = vld [vmem:[#allocation8 + $0xa0] sm:$0xf]  ;;  %v4355_v19 = vld [vmem:[#allocation8 + $0x14] sm:$0xf0] }
 0x425   :  { %3191 = vmatpush.bf16.msrb.mxu2 %v4070_v21  ;;  %v3918_v20 = vor.u32 %v4355_v19, %v3917_v18  ;;  %v4392_v21 = vld [vmem:[#allocation8 + $0x144] sm:$0xf]  ;;  %v4377_v16 = vld [vmem:[#allocation8 + $0xcc] sm:$0xf]  ;;  %v4079_v19 = vld [vmem:[#allocation8 + $0x158] sm:$0xf0] }
 0x426   :  { %v4393_v18 = vld [vmem:[#allocation8 + $0x14c] sm:$0xf] }
 0x42b   :  { %v2688_v29 = vld.sshfl [vmem:[#allocation1] sm:$0xff pattern:$0x73625140] }
 0x42c   :  { %v2690_v27 = vpack.c.bf16 %v2688_v29, %v2688_v29  ;;  %2704 = vst [vmem:[#allocation1] ss:$4 sm:$0xff] %v2696_v24  ;;  %v4014_v24 = vor.u32 %v4379_v10, %v4013_v22  ;;  %v4374_v29 = vld [vmem:[#allocation8 + $0xac] sm:$0xf0]  ;;  %v4071_v22 = vld [vmem:[#allocation8 + $0x150] sm:$0xf0] }
 0x42d   :  { %2708 = vst [vmem:[#allocation1 + $0x2] ss:$4 sm:$0xff] %v2698_v26  ;;  %v4390_v26 = vld [vmem:[#allocation8 + $0x12c] sm:$0xf0]  ;;  %v4074_v10 = vor.u32 %v4392_v21, %v4071_v22  ;;  %v4082_v22 = vor.u32 %v4393_v18, %v4079_v19  ;;  %v4427_v18 = vld [vmem:[#allocation11 + $0x18] sm:$0xff] }
 0x42e   :  { %2692 = vrot.lane.b32.xlu2 %v2690_v27, %s4579_s25  ;;  %2706 = vst [vmem:[#allocation1 + $0x1] ss:$4 sm:$0xff] %v2697_v25  ;;  %v4053_v25 = vld [vmem:[#allocation8 + $0x120] sm:$0xf]  ;;  %v3990_v27 = vor.u32 %v4374_v29, %v3989_v23  ;;  %3252 = vmatpush.bf16.msra.mxu1 %v4014_v24  ;;  %v4388_v23 = vld [vmem:[#allocation8 + $0x124] sm:$0xf] }
 0x42f   :  { %2710 = vst [vmem:[#allocation1 + $0x3] ss:$4 sm:$0xff] %v2699_v28  ;;  %v4054_v28 = vor.u32 %v4390_v26, %v4053_v25  ;;  %v4055_v24 = vld [vmem:[#allocation8 + $0x130] sm:$0xf0]  ;;  %v4165_v29 = vld [vmem:[#allocation8 + $0x200] sm:$0xf] }
 0x430   :  { %3175 = vmatpush.bf16.msra.mxu3 %v3990_v27  ;;  %v4058_v26 = vor.u32 %v4388_v23, %v4055_v24  ;;  %v4418_v27 = vld [vmem:[#allocation8 + $0x20c] sm:$0xf0]  ;;  %v4407_v23 = vld [vmem:[#allocation8 + $0x1b4] sm:$0xf0]  ;;  %v4373_v24 = vld [vmem:[#allocation8 + $0xac] sm:$0xf] }
 0x431   :  { %3192 = vmatpush.bf16.msrb.mxu2 %v4054_v28  ;;  %v4166_v28 = vor.u32 %v4418_v27, %v4165_v29  ;;  %v3999_v29 = vld [vmem:[#allocation8 + $0xb8] sm:$0xf0]  ;;  %s3752_s25 = sshll.u32 %s4581_s24, 4  ;;  %s3753_s25 = int_to_ptr.vmem [resolvable:$true] %s3752_s25 }
 0x432   :  { %3253 = vmatpush.bf16.msra.mxu1 %v3998_v38  ;;  %v4420_v38 = vld [vmem:[#allocation8 + $0x224] sm:$0xf] }
 0x436   :  { %v2711_v32 = vld.sshfl [vmem:[#allocation1] sm:$0xff pattern:$0x73625140]  ;;  %3254 = vmatpush.bf16.msra.mxu1 %v3982_v44 }
 0x437   :  { %v2713_v33 = vpack.c.bf16 %v2711_v32, %v2711_v32  ;;  %v4370_v32 = vld [vmem:[#allocation8 + $0x8c] sm:$0xf0] }
 0x438   :  { %v3974_v35 = vor.u32 %v4370_v32, %v3973_v14  ;;  %v4042_v14 = vor.u32 %v4384_v30, %v4039_v31  ;;  %v4109_v31 = vld [vmem:[#allocation8 + $0x188] sm:$0xf] }
 0x439   :  { %2714 = vst.msk [vmem:[#allocation7 + $0x8] sm:$0xf] %vm2471_vm5, %v2713_v33  ;;  %v4037_v33 = vld [vmem:[#allocation8 + $0x100] sm:$0xf]  ;;  %vm3342_vm5 = vcmask 1045508  }
 0x43a   :  { %v4038_v39 = vor.u32 %v4386_v34, %v4037_v33  ;;  %3176 = vmatpush.bf16.msra.mxu3 %v3974_v35  ;;  %3255 = vmatpush.bf16.msra.mxu1 %v3966_v53  ;;  %v4183_v35 = vld [vmem:[#allocation8 + $0x230] sm:$0xf0]  ;;  %v4419_v53 = vld [vmem:[#allocation8 + $0x214] sm:$0xf0] }
 0x43b   :  { %v4186_v43 = vor.u32 %v4420_v38, %v4183_v35  ;;  %v4174_v56 = vor.u32 %v4419_v53, %v4173_v52  ;;  %v4061_v53 = vld [vmem:[#allocation8 + $0x128] sm:$0xf] }
 0x43c   :  { %3193 = vmatpush.bf16.msrb.mxu2 %v4038_v39 }
 0x43e   :  { %3177 = vmatpush.bf16.msra.mxu3 %v3958_v45  ;;  %3256 = vmatpush.bf16.msra.mxu1 %v3950_v63 }
 0x440   :  { %3225 = vmatpush.bf16.msra.mxu2 %v4154_v0  ;;  %v2716_v63 = vld [vmem:[#allocation7 + $0x8] sm:$0xf] }
 0x442   :  { %3178 = vmatpush.bf16.msra.mxu3 %v3942_v54  ;;  %3257 = vmatpush.bf16.msra.mxu1 %v3934_v9 }
 0x444   :  { %3226 = vmatpush.bf16.msra.mxu2 %v4138_v49  ;;  %v4416_v49 = vld [vmem:[#allocation8 + $0x204] sm:$0xf] }
 0x445   :  { %v4170_v54 = vor.u32 %v4416_v49, %v4167_v50  ;;  %v3951_v49 = vld [vmem:[#allocation8 + $0x58] sm:$0xf0] }
 0x446   :  { %3179 = vmatpush.bf16.msra.mxu3 %v3926_v3  ;;  %3258 = vmatpush.bf16.msra.mxu1 %v3918_v20  ;;  %v4157_v3 = vld [vmem:[#allocation8 + $0x1e8] sm:$0xf]  ;;  %v4431_v50 = vld [vmem:[#allocation11 + $0x38] sm:$0xff] }
 0x447   :  { %v4158_v9 = vor.u32 %v4415_v4, %v4157_v3  ;;  %3694 = vmatpush.bf16.msrb.mxu0 %v4431_v50  ;;  %v4191_v3 = vld [vmem:[#allocation8 + $0x238] sm:$0xf0]  ;;  %v4446_v50 = vld [vmem:[#allocation11 + $0xb0] sm:$0xff] }
 0x448   :  { %3227 = vmatpush.bf16.msra.mxu2 %v4122_v59  ;;  %v4127_v59 = vld [vmem:[#allocation8 + $0x1b8] sm:$0xf0] }
 0x449   :  { %v4130_v60 = vor.u32 %v4405_v58, %v4127_v59  ;;  %v3935_v58 = vld [vmem:[#allocation8 + $0x38] sm:$0xf0] }
 0x451   :  { %v2579_v8 = vpop.permute.xlu2 %2578 }
 0x45e   :  { %v2555_v57 = vpop.permute.xlu0 %2554 }
 0x45f   :  { %2558 = vst.msk [vmem:[#allocation7] sm:$0xf] %vm2557_vm3, %v2555_v57  ;;  %v4354_v57 = vld [vmem:[#allocation8 + $0xc] sm:$0xf0] }
 0x460   :  { %2582 = vst.msk [vmem:[#allocation7] sm:$0xf] %vm2581_vm9, %v2579_v8  ;;  %v4106_v8 = vor.u32 %v4400_v2, %v4103_v1  ;;  %v3910_v12 = vor.u32 %v4354_v57, %v3909_v6  ;;  %v4114_v2 = vor.u32 %v4401_v61, %v4111_v62  ;;  %v2803_v1 = vunpack.c.l.b16 %v2716_v63  ;;  %v4031_v6 = vld [vmem:[#allocation8 + $0xf8] sm:$0xf0]  ;;  %v4397_v57 = vld [vmem:[#allocation8 + $0x16c] sm:$0xf] }
 0x461   :  { %v4034_v7 = vor.u32 %v4381_v5, %v4031_v6  ;;  %v4045_v61 = vld [vmem:[#allocation8 + $0x108] sm:$0xf]  ;;  %v4387_v62 = vld [vmem:[#allocation8 + $0x114] sm:$0xf0]  ;;  %v4353_v63 = vld [vmem:[#allocation8 + $0xc] sm:$0xf] }
 0x462   :  { %3228 = vmatpush.bf16.msra.mxu2 %v4106_v8  ;;  %3180 = vmatpush.bf16.msra.mxu3 %v3910_v12  ;;  %v4095_v8 = vld [vmem:[#allocation8 + $0x178] sm:$0xf0]  ;;  %v5395_v11 = vpack.c.b16 %v2803_v1, %v2803_v1  ;;  %v4421_v1 = vld [vmem:[#allocation8 + $0x22c] sm:$0xf]  ;;  %v4046_v4 = vor.u32 %v4387_v62, %v4045_v61  ;;  %v4424_v61 = vld [vmem:[#allocation11] sm:$0xff] }
 0x463   :  { %v4098_v12 = vor.u32 %v4397_v57, %v4095_v8  ;;  %v4194_v6 = vor.u32 %v4421_v1, %v4191_v3  ;;  %v4417_v57 = vld [vmem:[#allocation8 + $0x20c] sm:$0xf]  ;;  %v4175_v8 = vld [vmem:[#allocation8 + $0x218] sm:$0xf0] }
 0x464   :  { %v4443_v1 = vld [vmem:[#allocation11 + $0x98] sm:$0xff] }
 0x466   :  { %3229 = vmatpush.bf16.msra.mxu2 %v4090_v13  ;;  %3205 = vmatpush.bf16.msrb.mxu3 %v4182_v17  ;;  %v4141_v13 = vld [vmem:[#allocation8 + $0x1c8] sm:$0xf]  ;;  %v4015_v17 = vld [vmem:[#allocation8 + $0xd8] sm:$0xf0] }
 0x467   :  { %v4142_v20 = vor.u32 %v4411_v15, %v4141_v13  ;;  %v4018_v21 = vor.u32 %v4377_v16, %v4015_v17 }
 0x46a   :  { %3230 = vmatpush.bf16.msra.mxu2 %v4074_v10  ;;  %3206 = vmatpush.bf16.msrb.mxu3 %v4166_v28  ;;  %v4125_v10 = vld [vmem:[#allocation8 + $0x1a8] sm:$0xf]  ;;  %v4002_v28 = vor.u32 %v4373_v24, %v3999_v29 }
 0x46b   :  { %v4126_v27 = vor.u32 %v4407_v23, %v4125_v10  ;;  %v4426_v23 = vld [vmem:[#allocation11 + $0x10] sm:$0xff] }
 0x46e   :  { %3231 = vmatpush.bf16.msra.mxu2 %v4058_v26  ;;  %v4063_v26 = vld [vmem:[#allocation8 + $0x138] sm:$0xf0] }
 0x472   :  { %3232 = vmatpush.bf16.msra.mxu2 %v4042_v14  ;;  %v4403_v14 = vld [vmem:[#allocation8 + $0x194] sm:$0xf0] }
 0x473   :  { %v4110_v37 = vor.u32 %v4403_v14, %v4109_v31 }
 0x488   :  { %v2693_v34 = vpop.permute.xlu2 %2692 }
 0x48a   :  { %v2646_v25 = vpop.permute.xlu1 %2645 }
 0x48b   :  { %2648 = vst.msk [vmem:[#allocation7 + $0x4] sm:$0xf] %vm2557_vm3, %v2646_v25  ;;  %v4389_v25 = vld [vmem:[#allocation8 + $0x12c] sm:$0xf] }
 0x48c   :  { %v4066_v30 = vor.u32 %v4389_v25, %v4063_v26  ;;  %v4439_v26 = vld [vmem:[#allocation11 + $0x78] sm:$0xff] }
 0x492   :  { %v2603_v32 = vpop.permute.xlu1 %2602 }
 0x493   :  { %2606 = vst.msk [vmem:[#allocation7] sm:$0xf] %vm2605_vm15, %v2603_v32  ;;  %v4369_v32 = vld [vmem:[#allocation8 + $0x8c] sm:$0xf] }
 0x495   :  { %v2670_v33 = vpop.permute.xlu0 %2669 }
 0x496   :  { %2672 = vst.msk [vmem:[#allocation7 + $0x4] sm:$0xf] %vm2581_vm9, %v2670_v33  ;;  %v3983_v33 = vld [vmem:[#allocation8 + $0x98] sm:$0xf0] }
 0x497   :  { %2695 = vst.msk [vmem:[#allocation7 + $0x4] sm:$0xf] %vm2605_vm15, %v2693_v34  ;;  %v4385_v34 = vld [vmem:[#allocation8 + $0x10c] sm:$0xf]  ;;  %v3986_v38 = vor.u32 %v4369_v32, %v3983_v33 }
 0x498   :  { %v4050_v35 = vor.u32 %v4385_v34, %v4047_v36 }
 0x49e   :  { %v2715_v39 = vld [vmem:[#allocation7] sm:$0xff] }
 0x49f   :  { %v2801_v0 = vunpack.c.l.b16 %v2715_v39  ;;  %v2802_v42 = vunpack.c.h.b16 %v2715_v39  ;;  %v4093_v39 = vld [vmem:[#allocation8 + $0x168] sm:$0xf] }
 0x4a1   :  { %v5388_v44 = vpack.c.b16 %v2801_v0, %v2801_v0  ;;  %v5390_v45 = vpack.c.b16 %v2802_v42, %v2802_v42  ;;  %v3967_v0 = vld [vmem:[#allocation8 + $0x78] sm:$0xf0]  ;;  %v4094_v42 = vor.u32 %v4399_v40, %v4093_v39 }
 0x4a3   :  { %3181 = vmatmul.bf16.vlgmr.msra.gmra.mxu3 %v5388_v44  ;;  %3194 = vmatmul.bf16.vlgmr.msrb.gmra.mxu2 %v5390_v45 }
 0x4a4   :  { %3220 = vmatmul.bf16.vlgmr.msrb.gmra.mxu1 %v5388_v44  ;;  %3244 = vmatpush.bf16.msra.mxu3 %v4186_v43  ;;  %v3970_v43 = vor.u32 %v4365_v41, %v3967_v0 }
 0x4a5   :  { %3303 = vmatpush.bf16.msrb.mxu1 %v4162_v46  ;;  %3283 = vmatpush.bf16.msrb.mxu2 %v4190_v48  ;;  %v4077_v46 = vld [vmem:[#allocation8 + $0x148] sm:$0xf]  ;;  %v4361_v48 = vld [vmem:[#allocation8 + $0x4c] sm:$0xf] }
 0x4a6   :  { %v4078_v51 = vor.u32 %v4395_v47, %v4077_v46  ;;  %v3954_v52 = vor.u32 %v4361_v48, %v3951_v49  ;;  %v4438_v49 = vld [vmem:[#allocation11 + $0x70] sm:$0xff] }
 0x4a8   :  { %3245 = vmatpush.bf16.msra.mxu3 %v4170_v54  ;;  %v4391_v54 = vld [vmem:[#allocation8 + $0x134] sm:$0xf0] }
 0x4a9   :  { %3304 = vmatpush.bf16.msrb.mxu1 %v4146_v55  ;;  %3284 = vmatpush.bf16.msrb.mxu2 %v4174_v56  ;;  %v4430_v55 = vld [vmem:[#allocation11 + $0x30] sm:$0xff]  ;;  %v4357_v56 = vld [vmem:[#allocation8 + $0x2c] sm:$0xf]  ;;  %v4062_v59 = vor.u32 %v4391_v54, %v4061_v53 }
 0x4aa   :  { %3695 = vmatpush.bf16.msrb.mxu0 %v4430_v55  ;;  %v4437_v53 = vld [vmem:[#allocation11 + $0x68] sm:$0xff] }
 0x4ab   :  { %v4445_v54 = vld [vmem:[#allocation11 + $0xa8] sm:$0xff] }
 0x4ad   :  { %3305 = vmatpush.bf16.msrb.mxu1 %v4130_v60  ;;  %v3938_v60 = vor.u32 %v4357_v56, %v3935_v58  ;;  %v4453_v56 = vld [vmem:[#allocation11 + $0xe8] sm:$0xff] }
 0x4b1   :  { %3306 = vmatpush.bf16.msrb.mxu1 %v4114_v2  ;;  %v3919_v2 = vld [vmem:[#allocation8 + $0x18] sm:$0xf0] }
 0x4b2   :  { %v3922_v5 = vor.u32 %v4353_v63, %v3919_v2  ;;  %v4452_v63 = vld [vmem:[#allocation11 + $0xe0] sm:$0xff]  ;;  %v4435_v2 = vld [vmem:[#allocation11 + $0x58] sm:$0xff] }
 0x4b3   :  { %4195 = vmatmul.msk.bf16.vlgmr.msrb.gmra.mxu3 %vm3169_vm0, %v5395_v11  ;;  %3233 = vmatmul.bf16.vlgmr.msra.gmra.mxu2 %v5390_v45 }
 0x4b4   :  { %3259 = vmatmul.bf16.vlgmr.msra.gmra.mxu1 %v5388_v44  ;;  %3264 = vmatpush.bf16.msrb.mxu3 %v4158_v9  ;;  %v4178_v9 = vor.u32 %v4417_v57, %v4175_v8 }
 0x4b5   :  { %3290 = vmatpush.bf16.msra.mxu2 %v4034_v7  ;;  %3307 = vmatpush.bf16.msrb.mxu1 %v4098_v12  ;;  %v4429_v7 = vld [vmem:[#allocation11 + $0x28] sm:$0xff]  ;;  %v4428_v12 = vld [vmem:[#allocation11 + $0x20] sm:$0xff] }
 0x4b6   :  { %3696 = vmatpush.bf16.msrb.mxu0 %v4429_v7  ;;  %v4442_v7 = vld [vmem:[#allocation11 + $0x90] sm:$0xff] }
 0x4b8   :  { %3265 = vmatpush.bf16.msrb.mxu3 %v4142_v20 }
 0x4b9   :  { %3291 = vmatpush.bf16.msra.mxu2 %v4018_v21  ;;  %3308 = vmatpush.bf16.msrb.mxu1 %v4082_v22 }
 0x4ba   :  { %3697 = vmatpush.bf16.msrb.mxu0 %v4428_v12 }
 0x4bc   :  { %3266 = vmatpush.bf16.msrb.mxu3 %v4126_v27  ;;  %v4447_v27 = vld [vmem:[#allocation11 + $0xb8] sm:$0xff] }
 0x4bd   :  { %3292 = vmatpush.bf16.msra.mxu2 %v4002_v28  ;;  %3309 = vmatpush.bf16.msrb.mxu1 %v4066_v30  ;;  %v4455_v28 = vld [vmem:[#allocation11 + $0xf8] sm:$0xff] }
 0x4be   :  { %3698 = vmatpush.bf16.msrb.mxu0 %v4427_v18 }
 0x4c0   :  { %3267 = vmatpush.bf16.msrb.mxu3 %v4110_v37 }
 0x4c1   :  { %3293 = vmatpush.bf16.msra.mxu2 %v3986_v38  ;;  %3310 = vmatpush.bf16.msrb.mxu1 %v4050_v35 }
 0x4c2   :  { %3699 = vmatpush.bf16.msrb.mxu0 %v4426_v23 }
 0x4c3   :  { %4196 = vmatmul.msk.bf16.vlgmr.msra.gmra.mxu3 %vm3169_vm0, %v5395_v11  ;;  %4197 = vmatmul.msk.bf16.vlgmr.msrb.gmra.mxu2 %vm3169_vm0, %v5395_v11 }
 0x4c4   :  { %3311 = vmatmul.bf16.vlgmr.msrb.gmra.mxu1 %v5390_v45  ;;  %3268 = vmatpush.bf16.msrb.mxu3 %v4094_v42 }
 0x4c5   :  { %3294 = vmatpush.bf16.msra.mxu2 %v3970_v43  ;;  %3733 = vmatpush.bf16.msra.mxu1 %v4455_v28 }
 0x4c8   :  { %3269 = vmatpush.bf16.msrb.mxu3 %v4078_v51  ;;  %v4454_v51 = vld [vmem:[#allocation11 + $0xf0] sm:$0xff] }
 0x4c9   :  { %3295 = vmatpush.bf16.msra.mxu2 %v3954_v52  ;;  %v4425_v52 = vld [vmem:[#allocation11 + $0x8] sm:$0xff]  ;;  %3734 = vmatpush.bf16.msra.mxu1 %v4454_v51 }
 0x4ca   :  { %3700 = vmatpush.bf16.msrb.mxu0 %v4425_v52 }
 0x4cc   :  { %3270 = vmatpush.bf16.msrb.mxu3 %v4062_v59  ;;  %v4436_v59 = vld [vmem:[#allocation11 + $0x60] sm:$0xff] }
 0x4cd   :  { %3296 = vmatpush.bf16.msra.mxu2 %v3938_v60  ;;  %v4444_v60 = vld [vmem:[#allocation11 + $0xa0] sm:$0xff]  ;;  %3735 = vmatpush.bf16.msra.mxu1 %v4453_v56 }
 0x4ce   :  { %3701 = vmatpush.bf16.msrb.mxu0 %v4424_v61 }
 0x4d0   :  { %3271 = vmatpush.bf16.msrb.mxu3 %v4046_v4 }
 0x4d1   :  { %3297 = vmatpush.bf16.msra.mxu2 %v3922_v5  ;;  %3736 = vmatpush.bf16.msra.mxu1 %v4452_v63  ;;  %v4451_v5 = vld [vmem:[#allocation11 + $0xd8] sm:$0xff] }
 0x4d3   :  { %3272 = vmatmul.bf16.vlgmr.msrb.gmra.mxu3 %v5390_v45 }
 0x4d4   :  { %3322 = vmatpush.bf16.msra.mxu3 %v4194_v6  ;;  %3298 = vmatmul.bf16.vlgmr.msra.gmra.mxu2 %v5388_v44 }
 0x4d5   :  { %3720 = vmatpush.bf16.msrb.mxu2 %v4447_v27  ;;  %3737 = vmatpush.bf16.msra.mxu1 %v4451_v5 }
 0x4d8   :  { %3323 = vmatpush.bf16.msra.mxu3 %v4178_v9  ;;  %v4434_v9 = vld [vmem:[#allocation11 + $0x50] sm:$0xff] }
 0x4d9   :  { %3721 = vmatpush.bf16.msrb.mxu2 %v4446_v50 }
 0x4dc   :  { %3707 = vmatpush.bf16.msrb.mxu3 %v4439_v26 }
 0x4dd   :  { %3722 = vmatpush.bf16.msrb.mxu2 %v4445_v54 }
 0x4e0   :  { %3708 = vmatpush.bf16.msrb.mxu3 %v4438_v49 }
 0x4e1   :  { %3723 = vmatpush.bf16.msrb.mxu2 %v4444_v60 }
 0x4e3   :  { %4198 = vmatmul.msk.bf16.vlgmr.msra.gmra.mxu3 %vm3169_vm0, %v5395_v11  ;;  %v5415_v11 = vld [vmem:[%s5463_s6] sm:$0xf] }
 0x4e4   :  { %v2791_v10 = vperm.slane %v5415_v11, 0  ;;  %v2792_v25 = vperm.slane %v5415_v11, 1  ;;  %3709 = vmatpush.bf16.msrb.mxu3 %v4437_v53  ;;  %v2793_v62 = vperm.slane %v5415_v11, 2  ;;  %v2794_v4 = vperm.slane %v5415_v11, 3 }
 0x4e5   :  { %3724 = vmatpush.bf16.msrb.mxu2 %v4443_v1 }
 0x4e8   :  { %3710 = vmatpush.bf16.msrb.mxu3 %v4436_v59 }
 0x4e9   :  { %3725 = vmatpush.bf16.msrb.mxu2 %v4442_v7 }
 0x4ec   :  { %3711 = vmatpush.bf16.msrb.mxu3 %v4435_v2 }
 0x4f0   :  { %3712 = vmatpush.bf16.msrb.mxu3 %v4434_v9 }
 0x521   :  { %v3221_v13 = vpop.f32.mrf.mxu1 }
 0x522   :  { %v3222_v14 = vadd.f32 %v3221_v13, %v2792_v25  ;;  %v4450_v13 = vld [vmem:[#allocation11 + $0xd0] sm:$0xff] }
 0x523   :  { %3738 = vmatpush.bf16.msra.mxu1 %v4450_v13 }
 0x526   :  { %v3182_v15 = vpop.f32.mrf.mxu3  ;;  %v3195_v16 = vpop.f32.mrf.mxu2 }
 0x527   :  { %v3183_v30 = vadd.f32 %v3182_v15, %v2791_v10  ;;  %v4448_v10 = vld [vmem:[#allocation11 + $0xc0] sm:$0xff] }
 0x529   :  { %v3223_v17 = vpop.f32.mrf.mxu1  ;;  %v3196_v32 = vadd.f32 %v3195_v16, %v3183_v30  ;;  %v4433_v16 = vld [vmem:[#allocation11 + $0x48] sm:$0xff] }
 0x52a   :  { %v4441_v17 = vld [vmem:[#allocation11 + $0x88] sm:$0xff]  ;;  %3713 = vmatpush.bf16.msrb.mxu3 %v4433_v16 }
 0x52b   :  { %3726 = vmatpush.bf16.msrb.mxu2 %v4441_v17 }
 0x52e   :  { %v3184_v19 = vpop.f32.mrf.mxu3  ;;  %v3197_v20 = vpop.f32.mrf.mxu2 }
 0x52f   :  { %v4449_v19 = vld [vmem:[#allocation11 + $0xc8] sm:$0xff] }
 0x530   :  { %3739 = vmatpush.bf16.msra.mxu1 %v4449_v19 }
 0x531   :  { %v5410_v21 = vpop.f32.mrf.mxu1 }
 0x532   :  { %v3261_v3 = vadd.f32 %v5410_v21, %v2793_v62 }
 0x534   :  { %3740 = vmatpush.bf16.msra.mxu1 %v4448_v10 }
 0x536   :  { %v3208_v45 = vpop.f32.mrf.mxu3  ;;  %v3234_v44 = vpop.f32.mrf.mxu2 }
 0x537   :  { %v3235_v33 = vadd.f32 %v3234_v44, %v3222_v14  ;;  %v3209_v37 = vadd.f32 %v3208_v45, %v3196_v32  ;;  %v4432_v44 = vld [vmem:[#allocation11 + $0x40] sm:$0xff] }
 0x538   :  { %3714 = vmatpush.bf16.msrb.mxu3 %v4432_v44 }
 0x539   :  { %v3262_v22 = vpop.f32.mrf.mxu1  ;;  %v3329_v40 = vmax.f32 %v3209_v37, 0.0 }
 0x53a   :  { %v4440_v22 = vld [vmem:[#allocation11 + $0x80] sm:$0xff] }
 0x53b   :  { %3727 = vmatpush.bf16.msrb.mxu2 %v4440_v22 }
 0x53e   :  { %v3210_v24 = vpop.f32.mrf.mxu3  ;;  %v3236_v29 = vpop.f32.mrf.mxu2 }
 0x541   :  { %v5419_v31 = vpop.f32.mrf.mxu1 }
 0x546   :  { %v3247_v34 = vpop.f32.mrf.mxu3  ;;  %v3286_v36 = vpop.f32.mrf.mxu2 }
 0x547   :  { %v3248_v38 = vadd.f32 %v3247_v34, %v3235_v33 }
 0x549   :  { %v3330_v35 = vmax.f32 %v3248_v38, 0.0  ;;  %v3314_v39 = vpop.f32.mrf.mxu1 }
 0x54b   :  { %v3337_v41 = vrot.slane %v3330_v35, 6 }
 0x54d   :  { %v5422_v0 = vsel %vm3340_vm4, %v3329_v40, %v3337_v41  ;;  %v5425_v42 = vsel %vm3346_vm6, %v3329_v40, %v3337_v41  ;;  %v5428_v43 = vsel %vm3342_vm5, %v3329_v40, %v3337_v41  ;;  %v5431_v46 = vsel %vm1198_vm10, %v3337_v41, %v3329_v40 }
 0x54e   :  { %v3249_v47 = vpop.f32.mrf.mxu3  ;;  %v3288_v48 = vpop.f32.mrf.mxu2 }
 0x556   :  { %v3273_v55 = vpop.f32.mrf.mxu3 }
 0x557   :  { %v3299_v58 = vpop.f32.mrf.mxu2  ;;  %v3274_v57 = vadd.f32 %v3273_v55, %v3261_v3 }
 0x558   :  { %v3300_v12 = vadd.f32 %v3299_v58, %v2794_v4 }
 0x559   :  { %v3287_v15 = vadd.f32 %v3286_v36, %v3274_v57 }
 0x55a   :  { %v3313_v18 = vadd.f32 %v5419_v31, %v3300_v12 }
 0x55b   :  { %v3331_v21 = vmax.f32 %v3287_v15, 0.0 }
 0x55d   :  { %v3338_v23 = vrot.slane %v3331_v21, 4 }
 0x55e   :  { %v3275_v6 = vpop.f32.mrf.mxu3 }
 0x55f   :  { %v3301_v8 = vpop.f32.mrf.mxu2 }
 0x566   :  { %v3325_v20 = vpop.f32.mrf.mxu3 }
 0x567   :  { %v3326_v45 = vadd.f32 %v3325_v20, %v3313_v18  ;;  %v4480_v20 = vld [vmem:[%s5465_s8] ss:$0 sm:$0xff] }
 0x569   :  { %v3332_v11 = vmax.f32 %v3326_v45, 0.0 }
 0x56b   :  { %v3339_v24 = vrot.slane %v3332_v11, 2 }
 0x56d   :  { %v3343_v29 = vsel %vm3342_vm5, %v3338_v23, %v3339_v24  ;;  %v3348_v25 = vsel %vm1198_vm10, %v3339_v24, %v3338_v23  ;;  %v3353_v26 = vsel %vm3340_vm4, %v3338_v23, %v3339_v24  ;;  %v3357_v27 = vsel %vm3346_vm6, %v3338_v23, %v3339_v24 }
 0x56e   :  { %v3350_v28 = vsel %vm3349_vm8, %v5425_v42, %v3348_v25  ;;  %v3354_v30 = vsel %vm3344_vm7, %v3353_v26, %v5428_v43  ;;  %v3358_v31 = vsel %vm3349_vm8, %v3357_v27, %v5431_v46  ;;  %v3327_v14 = vpop.f32.mrf.mxu3  ;;  %v3345_v36 = vsel %vm3344_vm7, %v5422_v0, %v3343_v29 }
 0x56f   :  { %v3351_v32 = vrot.slane %v3350_v28, 2  ;;  %v3355_v33 = vrot.slane %v3354_v30, 4  ;;  %v3359_v34 = vrot.slane %v3358_v31, 6 }
 0x571   :  { %v3364_v37 = vmax.f32 %v3345_v36, %v3351_v32  ;;  %v3365_v38 = vmax.f32 %v3355_v33, %v3359_v34 }
 0x573   :  { %v4199_v35 = vrot.slane %v3364_v37, 9  ;;  %v4200_v39 = vrot.slane %v3365_v38, 9 }
 0x575   :  { %v3374_v40 = vmax.f32 %v3364_v37, %v4199_v35  ;;  %v3375_v41 = vmax.f32 %v3365_v38, %v4200_v39 }
 0x577   :  { %v3378_v47 = vperm.slane %v3374_v40, 0  ;;  %v3382_v42 = vperm.slane %v3375_v41, 0  ;;  %v3379_v48 = vperm.slane %v3374_v40, 2  ;;  %v3383_v49 = vperm.slane %v3375_v41, 2 }
 0x578   :  { %v3380_v43 = vperm.slane %v3374_v40, 4  ;;  %v3384_v50 = vperm.slane %v3375_v41, 4  ;;  %v3381_v46 = vperm.slane %v3374_v40, 6  ;;  %v3385_v51 = vperm.slane %v3375_v41, 6 }
 0x579   :  { %v3394_v52 = vpack.c.bf16 %v3378_v47, %v3378_v47  ;;  %v3398_v53 = vpack.c.bf16 %v3382_v42, %v3382_v42  ;;  %v3395_v54 = vpack.c.bf16 %v3379_v48, %v3379_v48  ;;  %v3399_v55 = vpack.c.bf16 %v3383_v49, %v3383_v49 }
 0x57a   :  { %v3396_v56 = vpack.c.bf16 %v3380_v43, %v3380_v43  ;;  %v3400_v0 = vpack.c.bf16 %v3384_v50, %v3384_v50  ;;  %v3397_v58 = vpack.c.bf16 %v3381_v46, %v3381_v46  ;;  %v3401_v59 = vpack.c.bf16 %v3385_v51, %v3385_v51 }
 0x57b   :  { %v3482_v60 = vunpack.c.l.b16 %v3398_v53  ;;  %v3483_v61 = vunpack.c.l.b16 %v3399_v55  ;;  %v3478_v2 = vunpack.c.l.b16 %v3394_v52  ;;  %v3479_v3 = vunpack.c.l.b16 %v3395_v54 }
 0x57c   :  { %v3484_v62 = vunpack.c.l.b16 %v3400_v0  ;;  %v3485_v63 = vunpack.c.l.b16 %v3401_v59  ;;  %v3480_v5 = vunpack.c.l.b16 %v3396_v56  ;;  %v3481_v57 = vunpack.c.l.b16 %v3397_v58 }
 0x57d   :  { %v3486_v1 = vrot.slane %v3482_v60, 7  ;;  %v3488_v4 = vrot.slane %v3483_v61, 7 }
 0x57e   :  { %v3490_v6 = vrot.slane %v3484_v62, 7  ;;  %v3492_v8 = vrot.slane %v3485_v63, 7 }
 0x57f   :  { %v3487_v9 = vsel %vm1661_vm2, %v3486_v1, %v3478_v2  ;;  %v3489_v7 = vsel %vm1661_vm2, %v3488_v4, %v3479_v3 }
 0x580   :  { %v3494_v12 = vpack.c.b16 %v3487_v9, %v3487_v9  ;;  %v3495_v13 = vpack.c.b16 %v3489_v7, %v3489_v7  ;;  %v3491_v15 = vsel %vm1661_vm2, %v3490_v6, %v3480_v5  ;;  %v3493_v16 = vsel %vm1661_vm2, %v3492_v8, %v3481_v57 }
 0x581   :  { %v3496_v17 = vpack.c.b16 %v3491_v15, %v3491_v15  ;;  %v3497_v18 = vpack.c.b16 %v3493_v16, %v3493_v16 }
 0x582   :  { %3702 = vmatmul.bf16.vlgmr.msrb.gmra.mxu0 %v3494_v12  ;;  %3715 = vmatmul.bf16.vlgmr.msrb.gmra.mxu3 %v3495_v13 }
 0x583   :  { %3728 = vmatmul.bf16.vlgmr.msrb.gmra.mxu2 %v3496_v17  ;;  %3741 = vmatmul.bf16.vlgmr.msra.gmra.mxu1 %v3497_v18 }
 0x5ff   :  { %v3703_v19 = vpop.f32.mrf.mxu0 }
 0x600   :  { %v3742_v21 = vpop.f32.mrf.mxu1  ;;  %v3704_v45 = vadd.f32 %v4480_v20, %v3703_v19 }
 0x605   :  { %v3716_v44 = vpop.f32.mrf.mxu3 }
 0x606   :  { %v3717_v22 = vadd.f32 %v3716_v44, %v3704_v45  ;;  %v3729_v11 = vpop.f32.mrf.mxu2 }
 0x607   :  { %v3705_v10 = vpop.f32.mrf.mxu0 }
 0x608   :  { %v3730_v23 = vadd.f32 %v3729_v11, %v3717_v22  ;;  %v3744_v24 = vpop.f32.mrf.mxu1 }
 0x60a   :  { %v3743_v29 = vadd.f32 %v3742_v21, %v3730_v23 }
 0x60c   :  { %3746 = vst [vmem:[#allocation13] sm:$0x3] %v3743_v29 }
 0x60d   :  { %v3718_v25 = vpop.f32.mrf.mxu3  ;;  %3757 = dma.vmem_to_hbm [thread:$0]  %s3753_s25, 32, %s3755_s13, [#allocation10]  }
 0x60e   :  { %v3731_v26 = vpop.f32.mrf.mxu2 }
 0x60f   :  { %4558 = dma.done.wait [#allocation10], 32  }
 0x610   :  { %4559 = vsyncadd [#allocation10], 4294967264 }
 0x611   :  { %3762 = vsyncpa [#allocation9], 1 }
 0x612   :  { %3763 = vsyncpa [#allocation12], 1 }
 0x613   :  { %3764 = vsyncpa [#allocation10], 1 }

</bundles_post_ra>
